<compile_context>
chip_gen: v7x
topology: tpu7x:2x2x1
jax: 0.10.0
libtpu: 0.0.40
codegen_flags: <defaults>
</compile_context>

<pallas_src>
import jax
import jax.numpy as jnp
from jax.experimental import pallas as pl
from jax.experimental.pallas import tpu as pltpu


def ffn_kernel(x_ref, w1_ref, b1_ref, w2_ref, b2_ref, o_ref):
    # x_ref:  (tm, C)   one tile of tokens (input dtype)
    # w1_ref: (C, F)    bf16 (VMEM resident)
    # b1_ref: (1, F)    f32
    # w2_ref: (F, C)    bf16 (VMEM resident)
    # b2_ref: (1, C)    f32
    x = x_ref[...]
    xb = x.astype(jnp.bfloat16)

    # First linear + bias + ReLU (MXU in bf16, accumulate f32).
    h = jnp.dot(xb, w1_ref[...], preferred_element_type=jnp.float32)
    h = jnp.maximum(h + b1_ref[...], 0.0)

    # TODO(synk): ffn_drop=0.1 dropout omitted (eval-mode identity); training-mode
    # dropout would use pltpu.prng_seed / pltpu.prng_random_bits masks.

    # Second linear (bf16 MXU) + bias + residual, all finalized in f32.
    out = jnp.dot(h.astype(jnp.bfloat16), w2_ref[...],
                  preferred_element_type=jnp.float32)
    out = out + b2_ref[...] + x.astype(jnp.float32)
    o_ref[...] = out.astype(o_ref.dtype)


def _round_up(v, m):
    return ((v + m - 1) // m) * m


def ffn_forward(x, w1, b1, w2, b2, *, tm=256):
    """x: (B, N, C). Returns (B, N, C). Eval-mode FFN with residual add."""
    B, N, C = x.shape
    F = w1.shape[1]
    M = B * N

    # Adapt the token tile to the problem size (keep it a sublane multiple).
    tm = min(tm, _round_up(M, 8))
    assert tm % 8 == 0, "token tile must be a multiple of 8 (sublane)"

    grid_m = pl.cdiv(M, tm)
    M_pad = grid_m * tm

    x2d = x.reshape(M, C)
    if M_pad != M:
        # Zero-pad the token axis; padded rows are computed and discarded.
        x2d = jnp.pad(x2d, ((0, M_pad - M), (0, 0)))

    # Weights in bf16 (native MXU input, halves VMEM/HBM footprint), biases f32.
    w1b = w1.astype(jnp.bfloat16)
    w2b = w2.astype(jnp.bfloat16)
    b1_2d = b1.reshape(1, F).astype(jnp.float32)
    b2_2d = b2.reshape(1, C).astype(jnp.float32)

    itemsize = jnp.dtype(x.dtype).itemsize
    # VMEM budget: double-buffered x/out tiles + (double-buffered) resident
    # weights/biases + f32 hidden intermediate, with 1.5x headroom. Floor at
    # 32 MiB, cap at 64 MiB so the limit is valid on v7x as well as v5e/v6e.
    bytes_tiles = 2 * 2 * (tm * C * itemsize)                 # x + out, 2 bufs each
    bytes_weights = 2 * ((C * F + F * C) * 2 + (F + C) * 4)   # bf16 W, f32 b, 2 bufs
    bytes_hidden = tm * F * 4
    vmem_limit = min(
        max(32 * 1024 * 1024, int(1.5 * (bytes_tiles + bytes_weights + bytes_hidden))),
        64 * 1024 * 1024,
    )

    cost = pl.CostEstimate(
        flops=4 * M_pad * C * F,                            # two (M,C,F)-sized matmuls
        transcendentals=0,
        bytes_accessed=(M_pad * C * itemsize) * 2           # x in + out
        + (C * F + F * C) * 2 + (F + C) * 4,                # weights + biases
    )

    out2d = pl.pallas_call(
        ffn_kernel,
        out_shape=jax.ShapeDtypeStruct((M_pad, C), x.dtype),
        grid_spec=pltpu.PrefetchScalarGridSpec(
            num_scalar_prefetch=0,
            grid=(grid_m,),
            in_specs=[
                pl.BlockSpec((tm, C), lambda i: (i, 0)),   # x tile
                pl.BlockSpec((C, F), lambda i: (0, 0)),    # W1 (resident)
                pl.BlockSpec((1, F), lambda i: (0, 0)),    # b1
                pl.BlockSpec((F, C), lambda i: (0, 0)),    # W2 (resident)
                pl.BlockSpec((1, C), lambda i: (0, 0)),    # b2
            ],
            out_specs=pl.BlockSpec((tm, C), lambda i: (i, 0)),
        ),
        compiler_params=pltpu.CompilerParams(
            dimension_semantics=("parallel",),
            vmem_limit_bytes=vmem_limit,
        ),
        cost_estimate=cost,
    )(x2d, w1b, b1_2d, w2b, b2_2d)

    return out2d[:M].reshape(B, N, C)


def init_ffn_params(key, embed_dims, feedforward_channels):
    # Deterministic synthetic init (uniform like PyTorch Linear default scale).
    k1, k2, k3, k4 = jax.random.split(key, 4)
    lim1 = 1.0 / jnp.sqrt(embed_dims)
    lim2 = 1.0 / jnp.sqrt(feedforward_channels)
    w1 = jax.random.uniform(k1, (embed_dims, feedforward_channels),
                            jnp.float32, -lim1, lim1)
    b1 = jax.random.uniform(k2, (feedforward_channels,), jnp.float32, -lim1, lim1)
    w2 = jax.random.uniform(k3, (feedforward_channels, embed_dims),
                            jnp.float32, -lim2, lim2)
    b2 = jax.random.uniform(k4, (embed_dims,), jnp.float32, -lim2, lim2)
    return w1, b1, w2, b2


if __name__ == "__main__":
    # Module-default channel dims (embed 256, ff 1024) at a small token count.
    # M = 400 is not a multiple of tm = 256, exercising the cdiv + padding path
    # with 2 grid tiles (one per TensorCore on megacore parts).
    B, N = 2, 200
    embed_dims = 256
    feedforward_channels = 1024

    key = jax.random.PRNGKey(0)
    kx, kp = jax.random.split(key)
    x = jax.random.normal(kx, (B, N, embed_dims), jnp.float32)
    w1, b1, w2, b2 = init_ffn_params(kp, embed_dims, feedforward_channels)

    out = ffn_forward(x, w1, b1, w2, b2)
    jax.block_until_ready(out)
    assert out.shape == (B, N, embed_dims)

    # Reference 1: emulate kernel numerics (bf16 matmul inputs, f32 accumulate).
    def bf(a):
        return a.astype(jnp.bfloat16).astype(jnp.float32)
    h_ref = jnp.maximum(bf(x) @ bf(w1) + b1, 0.0)
    ref_bf16 = x + (bf(h_ref) @ bf(w2) + b2)
    assert jnp.allclose(out, ref_bf16, atol=2e-3, rtol=2e-3), (
        float(jnp.max(jnp.abs(out - ref_bf16))))

    # Reference 2: pure f32 FFN (semantics check, loose tol for bf16 matmuls).
    ref_f32 = x + (jnp.maximum(x @ w1 + b1, 0.0) @ w2 + b2)
    assert jnp.allclose(out, ref_f32, atol=5e-2, rtol=5e-2), (
        float(jnp.max(jnp.abs(out - ref_f32))))

    print("KERNEL_OK")
</pallas_src>

<mosaic_0001>
module attributes {stable_mosaic.version = 11 : i64} {
  func.func @ffn_kernel(%arg0: i32, %arg1: memref<256x256xf32, #tpu.memory_space<vmem>>, %arg2: memref<256x1024xbf16, #tpu.memory_space<vmem>>, %arg3: memref<1x1024xf32, #tpu.memory_space<vmem>>, %arg4: memref<1024x256xbf16, #tpu.memory_space<vmem>>, %arg5: memref<1x256xf32, #tpu.memory_space<vmem>>, %arg6: memref<256x256xf32, #tpu.memory_space<vmem>>) attributes {dimension_semantics = [#tpu.dimension_semantics<parallel>], iteration_bounds = array<i64: 2>, scalar_prefetch = 0 : i64, scratch_operands = 0 : i64, tpu.core_type = #tpu.core_type<tc>, window_params = [{transform_indices = @transform_0, window_bounds = array<i64: 256, 256>}, {pipeline_mode = #tpu.pipeline_mode<synchronous>, transform_indices = @transform_1, window_bounds = array<i64: 256, 1024>}, {pipeline_mode = #tpu.pipeline_mode<synchronous>, transform_indices = @transform_2, window_bounds = array<i64: 1, 1024>}, {pipeline_mode = #tpu.pipeline_mode<synchronous>, transform_indices = @transform_3, window_bounds = array<i64: 1024, 256>}, {pipeline_mode = #tpu.pipeline_mode<synchronous>, transform_indices = @transform_4, window_bounds = array<i64: 1, 256>}, {transform_indices = @transform_5, window_bounds = array<i64: 256, 256>}]} {
    %c0 = arith.constant 0 : index
    %c0_0 = arith.constant 0 : index
    %0 = vector.load %arg1[%c0, %c0_0] : memref<256x256xf32, #tpu.memory_space<vmem>>, vector<256x256xf32>
    %1 = arith.truncf %0 : vector<256x256xf32> to vector<256x256xbf16>
    %c0_1 = arith.constant 0 : index
    %c0_2 = arith.constant 0 : index
    %2 = vector.load %arg2[%c0_1, %c0_2] : memref<256x1024xbf16, #tpu.memory_space<vmem>>, vector<256x1024xbf16>
    %cst = arith.constant dense<0.000000e+00> : vector<256x1024xf32>
    %3 = tpu.matmul %1, %2, %cst {dimension_numbers = #tpu.dot_dimension_numbers<[1], [0], [0], [1], [0, 0, 1, 1], [], []>} : vector<256x256xbf16>, vector<256x1024xbf16>, vector<256x1024xf32> -> vector<256x1024xf32>
    %c0_3 = arith.constant 0 : index
    %c0_4 = arith.constant 0 : index
    %4 = vector.load %arg3[%c0_3, %c0_4] : memref<1x1024xf32, #tpu.memory_space<vmem>>, vector<1x1024xf32>
    %5 = vector.broadcast %4 : vector<1x1024xf32> to vector<256x1024xf32>
    %6 = arith.addf %3, %5 : vector<256x1024xf32>
    %cst_5 = arith.constant 0.000000e+00 : f32
    %7 = vector.broadcast %cst_5 : f32 to vector<256x1024xf32>
    %8 = arith.maximumf %6, %7 : vector<256x1024xf32>
    %9 = arith.truncf %8 : vector<256x1024xf32> to vector<256x1024xbf16>
    %c0_6 = arith.constant 0 : index
    %c0_7 = arith.constant 0 : index
    %10 = vector.load %arg4[%c0_6, %c0_7] : memref<1024x256xbf16, #tpu.memory_space<vmem>>, vector<1024x256xbf16>
    %cst_8 = arith.constant dense<0.000000e+00> : vector<256x256xf32>
    %11 = tpu.matmul %9, %10, %cst_8 {dimension_numbers = #tpu.dot_dimension_numbers<[1], [0], [0], [1], [0, 0, 1, 1], [], []>} : vector<256x1024xbf16>, vector<1024x256xbf16>, vector<256x256xf32> -> vector<256x256xf32>
    %c0_9 = arith.constant 0 : index
    %c0_10 = arith.constant 0 : index
    %12 = vector.load %arg5[%c0_9, %c0_10] : memref<1x256xf32, #tpu.memory_space<vmem>>, vector<1x256xf32>
    %13 = vector.broadcast %12 : vector<1x256xf32> to vector<256x256xf32>
    %14 = arith.addf %11, %13 : vector<256x256xf32>
    %15 = arith.addf %14, %0 : vector<256x256xf32>
    %c0_11 = arith.constant 0 : index
    %c0_12 = arith.constant 0 : index
    %16 = vector.load %arg6[%c0_11, %c0_12] : memref<256x256xf32, #tpu.memory_space<vmem>>, vector<256x256xf32>
    tpu.vector_store %arg6[%c0_11, %c0_12], %15 {strides = array<i32>} : memref<256x256xf32, #tpu.memory_space<vmem>>, vector<256x256xf32>,
    return
  }
  func.func @transform_0(%arg0: i32) -> (i32, i32) {
    %c0_i32 = arith.constant 0 : i32
    %c0_i32_0 = arith.constant 0 : i32
    return %arg0, %c0_i32 : i32, i32
  }
  func.func @transform_1(%arg0: i32) -> (i32, i32) {
    %c0_i32 = arith.constant 0 : i32
    %c0_i32_0 = arith.constant 0 : i32
    %c0_i32_1 = arith.constant 0 : i32
    return %c0_i32, %c0_i32_0 : i32, i32
  }
  func.func @transform_2(%arg0: i32) -> (i32, i32) {
    %c0_i32 = arith.constant 0 : i32
    %c0_i32_0 = arith.constant 0 : i32
    %c0_i32_1 = arith.constant 0 : i32
    return %c0_i32, %c0_i32_0 : i32, i32
  }
  func.func @transform_3(%arg0: i32) -> (i32, i32) {
    %c0_i32 = arith.constant 0 : i32
    %c0_i32_0 = arith.constant 0 : i32
    %c0_i32_1 = arith.constant 0 : i32
    return %c0_i32, %c0_i32_0 : i32, i32
  }
  func.func @transform_4(%arg0: i32) -> (i32, i32) {
    %c0_i32 = arith.constant 0 : i32
    %c0_i32_0 = arith.constant 0 : i32
    %c0_i32_1 = arith.constant 0 : i32
    return %c0_i32, %c0_i32_0 : i32, i32
  }
  func.func @transform_5(%arg0: i32) -> (i32, i32) {
    %c0_i32 = arith.constant 0 : i32
    %c0_i32_0 = arith.constant 0 : i32
    return %arg0, %c0_i32 : i32, i32
  }
}

</mosaic_0001>

<bundles_post_ra>
// kernel: tpu_custom_call.1
= control target key start
LH: loop header
LB: loop body
LE: loop exit
PB: predicated region body
PF: predicated region fallthrough
CT: control target
= control target key end

     0   :  { %10 = vsyncpa [#allocation3], 0  ;;  %s6307_s0 = inlined_call_operand.hbm [shape: f32[512,256], index: 0, kind: input, shape index: {}]   ;;  %s6308_s1 = inlined_call_operand.hbm [shape: bf16[256,1024], index: 1, kind: input, shape index: {}]   ;;  %s6309_s2 = inlined_call_operand.hbm [shape: f32[1,1024], index: 2, kind: input, shape index: {}]   ;;  %s6310_s3 = inlined_call_operand.hbm [shape: bf16[1024,256], index: 3, kind: input, shape index: {}]   ;;  %s6311_s4 = inlined_call_operand.vmem [shape: f32[1,256], index: 4, kind: input, shape index: {}]   ;;  %s6312_s5 = inlined_call_operand.hbm [shape: f32[512,256], index: 5, kind: output, shape index: {}]  }
   0x1   :  { %12 = vsyncpa [#allocation3 + $0x1], 0 }
   0x2   :  { %13 = vsyncpa [#allocation6], 0 }
   0x3   :  { %14 = vsyncpa [#allocation9], 0 }
   0x4   :  { %15 = vsyncpa [#allocation4], 0 }
   0x5   :  { %17 = vsyncpa [#allocation4 + $0x1], 0  ;;  %s5260_s18 = smov 0   ;;  %s5262_s19 = smov 0  }
   0x6   :  { %s5264_s20 = smov 0   ;;  %s5266_s21 = smov 0  }
   0x7 LB: > { %s5281_s22 = sadd.s32 4294967295, %s5215_s21   ;;  %s4147_s23 = sadd.s32 4294967294, %s5215_s21   ;;  %s5215_s21 = sphi %s5266_s21, %s6335_s21   ;;  %s5211_s20 = sphi %s5264_s20, %s6334_s20   ;;  %s5207_s19 = sphi %s5262_s19, %s6333_s19   ;;  %s5203_s18 = sphi %s5260_s18, %s6332_s18  }
   0x8   : > { %p43_p0 = scmp.ne.s32.totalorder %s5207_s19, %s5203_s18  ;;  %p6313_p1 = scmp.eq.s32.totalorder %s5281_s22, 0 }
   0x9   : > { %p157_p3 = scmp.eq.s32.totalorder %s4147_s23, 1  ;;  %p4148_p5 = scmp.ge.s32.totalorder %s5215_s21, 1 }
   0xa   : > { %p5290_p4 = por %p6313_p1, %p43_p0  ;;  %p164_p7 = scmp.lt.s32.totalorder %s5215_s21, 3 }
   0xb   : > { %p5295_p6 = por %p157_p3, %p43_p0  ;;  %s5217_s27 = smov [#allocation5]  }
   0xc   : > { %s6316_s24 = scalar_select %p5290_p4, 1, 0 }
   0xd   : > { %s6317_s25 = scalar_select %p5295_p6, 1, 0 }
   0xe   : > { %p5300_p8 = pnand %p4148_p5, %p164_p7  ;;  %s176_s28 = sshll.u32 %s5217_s27, 4  ;;  %s5304_s28 = int_to_ptr.vmem [resolvable:$true] %s176_s28 }
   0xf   : > { %s5218_s30 = smov [#allocation7]   ;;  %s5219_s7 = smov [#allocation8]  }
  0x10   : > { %s6318_s26 = scalar_select %p5300_p8, 1, 0 }
  0x11   : > { %p4701_p9 = pneg %p5300_p8  ;;  %s190_s6 = sshll.u32 %s5218_s30, 4  ;;  %s5315_s6 = int_to_ptr.vmem [resolvable:$true] %s190_s6 }
  0x12   : > { %s5317_s8 = sshll.u32 %s5219_s7, 4  ;;  %s5027_s11 = scalar_lea.hbm %s6308_s1, 16384  ;;  %s201_s8 = int_to_ptr.vmem [resolvable:$true] %s5317_s8 }
  0x13   : > { %p5311_p11 = pnand %p4701_p9, %p6313_p1  ;;  %p5028_p12 = scmp.ne.s32.totalorder %s6308_s1, %s5027_s11 }
  0x14   : > { %p5034_p5 = scmp.lt.u32.totalorder %s5027_s11, %s6308_s1 }
  0x15   : > { %p5327_p13 = pneg %p5311_p11 }
  0x17   : > { %p5030_p0 = pnand %p5327_p13, %p5028_p12 }
  0x19   : > { %p5031_p3 = pneg %p5030_p0 }
  0x1b   : > { %p5036_p7 = pnand %p5034_p5, %p5031_p3 }
  0x1d   : > { %5039 = shalt.err (!%p5036_p7)
}
  0x1e   : > { %s5040_s17 = scalar_lea.vmem %s5304_s28, 16384  ;;  %p5048_p2 = scmp.lt.s32.totalorder %s5304_s28, %s5304_s28 }
  0x1f   : > { %p5041_p9 = scmp.ne.s32.totalorder %s5304_s28, %s5040_s17  ;;  %p5049_p6 = scmp.lt.s32.totalorder %s5040_s17, %s5040_s17 }
  0x21   : > { %p5043_p10 = pnand %p5041_p9, %p5327_p13  ;;  %p5050_p12 = por %p5049_p6, %p5048_p2 }
  0x23   : > { %p5044_p1 = pneg %p5043_p10 }
  0x25   : > { %p5051_p0 = pnand %p5050_p12, %p5044_p1 }
  0x27   : > { %5054 = shalt.err (!%p5051_p0)
}
  0x28   : > { %s5220_s23 = smov 512   ;;  %s5221_s27 = smov 32  }
  0x29   : > { %4704 = dma.hbm_to_vmem [thread:$0]  (!%p5311_p11), %s6308_s1, 16384, %s5304_s28, [#allocation6], %s5220_s23, %s5220_s23, %s5221_s27  }
  0x2a   : > { %s5055_s11 = scalar_lea.hbm %s6309_s2, 128 }
  0x2b   : > { %p5056_p2 = scmp.ne.s32.totalorder %s6309_s2, %s5055_s11  ;;  %p5062_p10 = scmp.lt.u32.totalorder %s5055_s11, %s6309_s2 }
  0x2d   : > { %p5058_p1 = pnand %p5056_p2, %p5327_p13 }
  0x2f   : > { %p5059_p6 = pneg %p5058_p1 }
  0x31   : > { %p5064_p3 = pnand %p5062_p10, %p5059_p6 }
  0x33   : > { %5067 = shalt.err (!%p5064_p3)
}
  0x34   : > { %s5068_s28 = scalar_lea.vmem %s5315_s6, 128  ;;  %p5076_p12 = scmp.lt.s32.totalorder %s5315_s6, %s5315_s6 }
  0x35   : > { %p5069_p5 = scmp.ne.s32.totalorder %s5315_s6, %s5068_s28  ;;  %p5077_p0 = scmp.lt.s32.totalorder %s5068_s28, %s5068_s28 }
  0x37   : > { %p5071_p7 = pnand %p5069_p5, %p5327_p13  ;;  %p5078_p2 = por %p5077_p0, %p5076_p12 }
  0x39   : > { %p5072_p9 = pneg %p5071_p7 }
  0x3b   : > { %p5079_p1 = pnand %p5078_p2, %p5072_p9 }
  0x3d   : > { %5082 = shalt.err (!%p5079_p1)
}
  0x3e   : > { %4707 = dma.hbm_to_vmem [thread:$0]  (!%p5311_p11), %s6309_s2, 128, %s5315_s6, [#allocation6]  }
  0x3f   : > { %s5083_s7 = scalar_lea.hbm %s6310_s3, 16384 }
  0x40   : > { %p5084_p6 = scmp.ne.s32.totalorder %s6310_s3, %s5083_s7  ;;  %p5090_p5 = scmp.lt.u32.totalorder %s5083_s7, %s6310_s3 }
  0x42   : > { %p5086_p10 = pnand %p5084_p6, %p5327_p13 }
  0x44   : > { %p5087_p3 = pneg %p5086_p10 }
  0x46   : > { %p5092_p7 = pnand %p5090_p5, %p5087_p3 }
  0x48   : > { %5095 = shalt.err (!%p5092_p7)
}
  0x49   : > { %s5096_s13 = scalar_lea.vmem %s201_s8, 16384  ;;  %p5104_p2 = scmp.lt.s32.totalorder %s201_s8, %s201_s8 }
  0x4a   : > { %p5097_p9 = scmp.ne.s32.totalorder %s201_s8, %s5096_s13  ;;  %p5105_p1 = scmp.lt.s32.totalorder %s5096_s13, %s5096_s13 }
  0x4c   : > { %p5099_p12 = pnand %p5097_p9, %p5327_p13  ;;  %p5106_p4 = por %p5105_p1, %p5104_p2 }
  0x4e   : > { %p5100_p0 = pneg %p5099_p12 }
  0x50   : > { %p5107_p8 = pnand %p5106_p4, %p5100_p0 }
  0x52   : > { %5110 = shalt.err (!%p5107_p8)
}
  0x53   : > { %s5222_s6 = smov 128   ;;  %s5223_s14 = smov 8  }
  0x54   : > { %4710 = dma.hbm_to_vmem [thread:$0]  (!%p5311_p11), %s6310_s3, 16384, %s201_s8, [#allocation9], %s5222_s6, %s5222_s6, %s5223_s14  }
  0x55   : > { %s5391_s28 = sadd.s32 1, %s5215_s21   ;;  %s30_s23 = sadd.s32 1, %s5211_s20 }
  0x56   : > { %s27_s17 = ssub.s32 %s5215_s21, %s5391_s28  ;;  %p37_p8 = scmp.ne.s32.totalorder %s5211_s20, %s5207_s19 }
  0x57   : > { %p28_p4 = scmp.eq.s32.totalorder %s27_s17, 0  ;;  %p38_p13 = scmp.eq.s32.totalorder %s5215_s21, 0 }
  0x58   : > { %p4722_p6 = scmp.lt.s32.totalorder %s5215_s21, 2  ;;  %p6321_p3 = scmp.eq.s32.totalorder %s5281_s22, 1 }
  0x59   : > { %s5401_s27 = scalar_select %p28_p4, %s5211_s20, %s30_s23  }
  0x5a   : > { %p39_p10 = por %p38_p13, %p37_p8  ;;  %p5405_p5 = por %p6321_p3, %p37_p8 }
  0x5b   : > { %s217_s29 = sand.u32 1, %s5211_s20   ;;  %s4426_s7 = sshll.u32 %s5215_s21, 13 }
  0x5c   : > { %s4153_s8 = sshll.u32 %s217_s29, 9  ;;  %s5414_s11 = scalar_lea.hbm %s6307_s0, %s4426_s7 }
  0x5d   : > { %s221_s12 = scalar_lea.vmem [#allocation2], %s4153_s8  ;;  %p5416_p11 = pnand %p4722_p6, %p39_p10 }
  0x5e   : > { %s229_s13 = sshll.u32 %s221_s12, 4  ;;  %s5422_s14 = scalar_lea.sflag [#allocation3], %s217_s29  ;;  %s5420_s13 = int_to_ptr.vmem [resolvable:$true] %s229_s13 }
  0x5f   : > { %s5111_s15 = scalar_lea.hbm %s5414_s11, 8192  ;;  %p5113_p9 = pneg %p5416_p11 }
  0x60   : > { %p5112_p7 = scmp.ne.s32.totalorder %s5414_s11, %s5111_s15  ;;  %s5116_s23 = scalar_lea.hbm %s6307_s0, 16384 }
  0x61   : > { %p5117_p2 = scmp.lt.u32.totalorder %s5414_s11, %s6307_s0  ;;  %p5118_p1 = scmp.lt.u32.totalorder %s5116_s23, %s5111_s15 }
  0x62   : > { %p5114_p12 = pnand %p5113_p9, %p5112_p7  ;;  %p5120_p8 = scmp.lt.u32.totalorder %s5111_s15, %s5414_s11 }
  0x63   : > { %p5119_p4 = por %p5118_p1, %p5117_p2 }
  0x64   : > { %p5115_p0 = pneg %p5114_p12 }
  0x65   : > { %p5121_p13 = por %p5120_p8, %p5119_p4 }
  0x67   : > { %p5122_p6 = pnand %p5121_p13, %p5115_p0 }
  0x69   : > { %5125 = shalt.err (!%p5122_p6)
}
  0x6a   : > { %s5126_s29 = scalar_lea.vmem %s5420_s13, 8192  ;;  %s5224_s9 = smov [#allocation2]  }
  0x6b   : > { %p5127_p10 = scmp.ne.s32.totalorder %s5420_s13, %s5126_s29  ;;  %s5131_s10 = sshll.u32 %s5224_s9, 4  ;;  %s5132_s10 = int_to_ptr.vmem [resolvable:$false] %s5131_s10 }
  0x6c   : > { %s5133_s12 = scalar_lea.vmem %s5132_s10, 16384  ;;  %p5134_p12 = scmp.lt.s32.totalorder %s5420_s13, %s5132_s10 }
  0x6d   : > { %p5129_p3 = pnand %p5127_p10, %p5113_p9  ;;  %p5135_p2 = scmp.lt.s32.totalorder %s5133_s12, %s5126_s29 }
  0x6f   : > { %p5130_p7 = pneg %p5129_p3  ;;  %p5136_p1 = por %p5135_p2, %p5134_p12 }
  0x71   : > { %p5137_p4 = pnand %p5136_p1, %p5130_p7 }
  0x73   : > { %5140 = shalt.err (!%p5137_p4)
}
  0x74   : > { %s5225_s15 = smov 256   ;;  %s5226_s16 = smov 16  }
  0x75   : > { %4714 = dma.hbm_to_vmem [thread:$0]  (!%p5416_p11), %s5414_s11, 8192, %s5420_s13, %s5422_s14, %s5225_s15, %s5225_s15, %s5226_s16  }
  0x76   : > { %p6324_p9 = scmp.ne.s32.totalorder %s6318_s26, 0 }
  0x77   : > { %s5453_s17 = sand.u32 (!%p6324_p9), 1, %s5207_s19   ;;  %p6325_p0 = scmp.ne.s32.totalorder (!%p6324_p9), %s6316_s24, 0 }
  0x78   : > { %241 = sbr.rel (%p6324_p9) target bundleno = 1163 (0x48b), region = 40  ;;  %s4158_s23 = sshll.u32 (!%p6324_p9), %s5453_s17, 9 }
  0x79   : > { %s244_s7 = scalar_lea.sflag (!%p6324_p9), [#allocation3], %s5453_s17  ;;  %s5459_s8 = scalar_lea.vmem (!%p6324_p9), [#allocation2], %s4158_s23 }
  0x7f   : > { %5186 = dma.done.wait (%p6325_p0), %s244_s7, 8192  }
  0x80   : > { %5188 = vsyncadd (%p6325_p0), %s244_s7, 4294959104  ;;  %p6326_p11 = scmp.eq.s32.totalorder %s5281_s22, 0 }
  0x82   : > { %5190 = dma.done.wait (%p6326_p11), [#allocation6], 16512   ;;  %p6327_p8 = pmov %p6326_p11 }
  0x84   : > { %5192 = vsyncadd (%p6327_p8), [#allocation6], 4294950784  ;;  %p6328_p13 = pmov %p6327_p8 }
  0x85   : > { %p6329_p6 = pmov %p6327_p8 }
  0x86   : > { %5194 = dma.done.wait (%p6328_p13), [#allocation9], 16384  }
  0x87   : > { %5196 = vsyncadd (%p6329_p6), [#allocation9], 4294950912  ;;  %v384_v0 = vld [vmem:[#allocation5] sm:$0xff]  ;;  %v289_v17 = vld [vmem:[%s5459_s8 + $0x8] sm:$0xff]  ;;  %s6068_s11 = scalar_lea.vmem [#allocation10], %s4158_s23  ;;  %s4428_s13 = sshll.u32 %s5281_s22, 13 }
  0x88   : > { %v388_v1 = vld [vmem:[#allocation5 + $0x20] sm:$0xff]  ;;  %v291_v18 = vld [vmem:[%s5459_s8 + $0x18] sm:$0xff]  ;;  %s4045_s6 = sshll.u32 %s6068_s11, 4  ;;  %s6257_s22 = scalar_lea.hbm %s6312_s5, %s4428_s13  ;;  %s6259_s6 = int_to_ptr.vmem [resolvable:$true] %s4045_s6 }
  0x89   : > { %v392_v2 = vld [vmem:[#allocation5 + $0x40] sm:$0xff]  ;;  %v4164_v3 = vcombine.high %v384_v0, %v388_v1  ;;  %v4163_v4 = vcombine.low %v384_v0, %v388_v1  ;;  %v5475_v20 = vpack.c.bf16 %v291_v18, %v289_v17  ;;  %v385_v1 = vld [vmem:[#allocation5 + $0x8] sm:$0xff]  ;;  %s4031_s9 = scalar_lea.sflag [#allocation4], %s5453_s17  ;;  %s5141_s10 = scalar_lea.vmem %s6259_s6, 8192 }
  0x8a   : > { %v396_v5 = vld [vmem:[#allocation5 + $0x60] sm:$0xff]  ;;  %p5142_p10 = scmp.ne.s32.totalorder %s6259_s6, %s5141_s10  ;;  %s5227_s12 = smov [#allocation10]  }
  0x8b   : > { %v4172_v6 = vcombine.high %v392_v2, %v396_v5  ;;  %v400_v7 = vld [vmem:[#allocation5 + $0x80] sm:$0xff]  ;;  %1194 = vmatprep.subr.bf16.mxu1 %v4164_v3  ;;  %v4171_v9 = vcombine.low %v392_v2, %v396_v5  ;;  %1226 = vmatprep.mubr.bf16.mxu1 %v5475_v20  ;;  %v389_v2 = vld [vmem:[#allocation5 + $0x28] sm:$0xff]  ;;  %v290_v5 = vld [vmem:[%s5459_s8 + $0x10] sm:$0xff]  ;;  %s5145_s15 = sshll.u32 %s5227_s12, 4  ;;  %s5146_s15 = int_to_ptr.vmem [resolvable:$false] %s5145_s15 }
  0x8c   : > { %v404_v8 = vld [vmem:[#allocation5 + $0xa0] sm:$0xff]  ;;  %1195 = vmatpush1.bf16.msra.mxu1 %v4163_v4  ;;  %p5143_p3 = pnand %p5142_p10, %p5405_p5  ;;  %s5147_s16 = scalar_lea.vmem %s5146_s15, 16384 }
  0x8d   : > { %1196 = vmatprep.subr.bf16.mxu1 %v4172_v6  ;;  %v4180_v10 = vcombine.high %v400_v7, %v404_v8  ;;  %v408_v11 = vld [vmem:[#allocation5 + $0xc0] sm:$0xff]  ;;  %v4179_v13 = vcombine.low %v400_v7, %v404_v8  ;;  %v293_v6 = vld [vmem:[%s5459_s8 + $0x28] sm:$0xff]  ;;  %v295_v7 = vld [vmem:[%s5459_s8 + $0x38] sm:$0xff]  ;;  %p5148_p12 = scmp.lt.s32.totalorder %s6259_s6, %s5146_s15  ;;  %p5149_p2 = scmp.lt.s32.totalorder %s5147_s16, %s5141_s10 }
  0x8e   : > { %v412_v12 = vld [vmem:[#allocation5 + $0xe0] sm:$0xff]  ;;  %p5144_p7 = pneg %p5143_p3 }
  0x8f   : > { %v4188_v14 = vcombine.high %v408_v11, %v412_v12  ;;  %v416_v15 = vld [vmem:[#allocation5 + $0x100] sm:$0xff]  ;;  %v4187_v19 = vcombine.low %v408_v11, %v412_v12  ;;  %v4166_v11 = vcombine.high %v385_v1, %v389_v2  ;;  %p5150_p1 = por %p5149_p2, %p5148_p12 }
  0x90   : > { %1197 = vmatpush1.bf16.msra.mxu1 %v4171_v9  ;;  %v420_v16 = vld [vmem:[#allocation5 + $0x120] sm:$0xff]  ;;  %v393_v9 = vld [vmem:[#allocation5 + $0x48] sm:$0xff] }
  0x91   : > { %1198 = vmatprep.subr.bf16.mxu1 %v4180_v10  ;;  %v4196_v21 = vcombine.high %v416_v15, %v420_v16  ;;  %v424_v22 = vld [vmem:[#allocation5 + $0x140] sm:$0xff]  ;;  %v4195_v24 = vcombine.low %v416_v15, %v420_v16  ;;  %v397_v10 = vld [vmem:[#allocation5 + $0x68] sm:$0xff]  ;;  %p5151_p4 = pnand %p5150_p1, %p5144_p7 }
  0x92   : > { %v428_v23 = vld [vmem:[#allocation5 + $0x160] sm:$0xff]  ;;  %v401_v15 = vld [vmem:[#allocation5 + $0x88] sm:$0xff]  ;;  %v4174_v17 = vcombine.high %v393_v9, %v397_v10 }
  0x93   : > { %v4204_v25 = vcombine.high %v424_v22, %v428_v23  ;;  %v432_v26 = vld [vmem:[#allocation5 + $0x180] sm:$0xff]  ;;  %v4203_v28 = vcombine.low %v424_v22, %v428_v23  ;;  %v405_v16 = vld [vmem:[#allocation5 + $0xa8] sm:$0xff]  ;;  %v299_v22 = vld [vmem:[%s5459_s8 + $0x58] sm:$0xff] }
  0x94   : > { %1199 = vmatpush1.bf16.msra.mxu1 %v4179_v13  ;;  %v436_v27 = vld [vmem:[#allocation5 + $0x1a0] sm:$0xff]  ;;  %v4165_v13 = vcombine.low %v385_v1, %v389_v2  ;;  %v5491_v23 = vld [vmem:[#allocation5 + $0x10] sm:$0xff] }
  0x95   : > { %1200 = vmatprep.subr.bf16.mxu1 %v4188_v14  ;;  %v4212_v29 = vcombine.high %v432_v26, %v436_v27  ;;  %v440_v30 = vld [vmem:[#allocation5 + $0x1c0] sm:$0xff]  ;;  %v4211_v32 = vcombine.low %v432_v26, %v436_v27  ;;  %v5484_v14 = vpack.c.bf16 %v295_v7, %v293_v6  ;;  %v409_v26 = vld [vmem:[#allocation5 + $0xc8] sm:$0xff]  ;;  %v306_v2 = vld [vmem:[%s5459_s8 + $0x90] sm:$0xff] }
  0x96   : > { %v444_v31 = vld [vmem:[#allocation5 + $0x1e0] sm:$0xff]  ;;  %v413_v27 = vld [vmem:[#allocation5 + $0xe8] sm:$0xff]  ;;  %v311_v6 = vld [vmem:[%s5459_s8 + $0xb8] sm:$0xff] }
  0x97   : > { %v4220_v33 = vcombine.high %v440_v30, %v444_v31  ;;  %v448_v34 = vld [vmem:[#allocation5 + $0x200] sm:$0xff]  ;;  %v4219_v36 = vcombine.low %v440_v30, %v444_v31 }
  0x98   : > { %1201 = vmatpush1.bf16.msra.mxu1 %v4187_v19  ;;  %v452_v35 = vld [vmem:[#allocation5 + $0x220] sm:$0xff]  ;;  %v294_v19 = vld [vmem:[%s5459_s8 + $0x30] sm:$0xff] }
  0x99   : > { %1202 = vmatprep.subr.bf16.mxu1 %v4196_v21  ;;  %v4228_v37 = vcombine.high %v448_v34, %v452_v35  ;;  %v456_v38 = vld [vmem:[#allocation5 + $0x240] sm:$0xff]  ;;  %v4227_v40 = vcombine.low %v448_v34, %v452_v35  ;;  %v297_v21 = vld [vmem:[%s5459_s8 + $0x48] sm:$0xff]  ;;  %v4190_v35 = vcombine.high %v409_v26, %v413_v27 }
  0x9a   : > { %v460_v39 = vld [vmem:[#allocation5 + $0x260] sm:$0xff]  ;;  %v5500_v31 = vpack.c.bf16 %v299_v22, %v297_v21  ;;  %v421_v34 = vld [vmem:[#allocation5 + $0x128] sm:$0xff]  ;;  %v310_v21 = vld [vmem:[%s5459_s8 + $0xb0] sm:$0xff] }
  0x9b   : > { %v4236_v41 = vcombine.high %v456_v38, %v460_v39  ;;  %v464_v42 = vld [vmem:[#allocation5 + $0x280] sm:$0xff]  ;;  %v4235_v44 = vcombine.low %v456_v38, %v460_v39  ;;  %v301_v38 = vld [vmem:[%s5459_s8 + $0x68] sm:$0xff]  ;;  %v303_v39 = vld [vmem:[%s5459_s8 + $0x78] sm:$0xff] }
  0x9c   : > { %1203 = vmatpush1.bf16.msra.mxu1 %v4195_v24  ;;  %v468_v43 = vld [vmem:[#allocation5 + $0x2a0] sm:$0xff]  ;;  %v5493_v24 = vld [vmem:[#allocation5 + $0x30] sm:$0xff] }
  0x9d   : > { %1204 = vmatprep.subr.bf16.mxu1 %v4204_v25  ;;  %v4244_v45 = vcombine.high %v464_v42, %v468_v43  ;;  %v472_v46 = vld [vmem:[#allocation5 + $0x2c0] sm:$0xff]  ;;  %v4243_v48 = vcombine.low %v464_v42, %v468_v43  ;;  %v4173_v25 = vcombine.low %v393_v9, %v397_v10  ;;  %v429_v42 = vld [vmem:[#allocation5 + $0x168] sm:$0xff] }
  0x9e   : > { %v476_v47 = vld [vmem:[#allocation5 + $0x2e0] sm:$0xff]  ;;  %v461_v9 = vld [vmem:[#allocation5 + $0x268] sm:$0xff] }
  0x9f   : > { %v480_v49 = vld [vmem:[#allocation5 + $0x300] sm:$0xff]  ;;  %v4252_v51 = vcombine.high %v472_v46, %v476_v47  ;;  %v4251_v52 = vcombine.low %v472_v46, %v476_v47  ;;  %v433_v47 = vld [vmem:[#allocation5 + $0x188] sm:$0xff] }
  0xa0   : > { %1205 = vmatpush1.bf16.msra.mxu1 %v4203_v28  ;;  %v484_v50 = vld [vmem:[#allocation5 + $0x320] sm:$0xff]  ;;  %v4167_v28 = vcombine.low %v5491_v23, %v5493_v24 }
  0xa1   : > { %1206 = vmatprep.subr.bf16.mxu1 %v4212_v29  ;;  %v488_v53 = vld [vmem:[#allocation5 + $0x340] sm:$0xff]  ;;  %v4260_v55 = vcombine.high %v480_v49, %v484_v50  ;;  %v4259_v56 = vcombine.low %v480_v49, %v484_v50  ;;  %v4182_v29 = vcombine.high %v401_v15, %v405_v16 }
  0xa2   : > { %v492_v54 = vld [vmem:[#allocation5 + $0x360] sm:$0xff] }
  0xa3   : > { %v496_v57 = vld [vmem:[#allocation5 + $0x380] sm:$0xff]  ;;  %v4268_v59 = vcombine.high %v488_v53, %v492_v54  ;;  %v4267_v60 = vcombine.low %v488_v53, %v492_v54  ;;  %v307_v53 = vld [vmem:[%s5459_s8 + $0x98] sm:$0xff] }
  0xa4   : > { %1207 = vmatpush1.bf16.msra.mxu1 %v4211_v32  ;;  %v500_v58 = vld [vmem:[#allocation5 + $0x3a0] sm:$0xff]  ;;  %v4181_v32 = vcombine.low %v401_v15, %v405_v16  ;;  %v465_v16 = vld [vmem:[#allocation5 + $0x288] sm:$0xff] }
  0xa5   : > { %1208 = vmatprep.subr.bf16.mxu1 %v4220_v33  ;;  %v504_v61 = vld [vmem:[#allocation5 + $0x3c0] sm:$0xff]  ;;  %v4276_v63 = vcombine.high %v496_v57, %v500_v58  ;;  %v4275_v0 = vcombine.low %v496_v57, %v500_v58  ;;  %v417_v33 = vld [vmem:[#allocation5 + $0x108] sm:$0xff] }
  0xa6   : > { %v508_v62 = vld [vmem:[#allocation5 + $0x3e0] sm:$0xff]  ;;  %v4198_v43 = vcombine.high %v417_v33, %v421_v34  ;;  %v4197_v46 = vcombine.low %v417_v33, %v421_v34  ;;  %v473_v33 = vld [vmem:[#allocation5 + $0x2c8] sm:$0xff] }
  0xa7   : > { %v4284_v3 = vcombine.high %v504_v61, %v508_v62  ;;  %v288_v4 = vld [vmem:[%s5459_s8] sm:$0xff]  ;;  %v4283_v8 = vcombine.low %v504_v61, %v508_v62  ;;  %v449_v62 = vld [vmem:[#allocation5 + $0x208] sm:$0xff] }
  0xa8   : > { %1209 = vmatpush1.bf16.msra.mxu1 %v4219_v36  ;;  %v5482_v12 = vpack.c.bf16 %v290_v5, %v288_v4  ;;  %v292_v18 = vld [vmem:[%s5459_s8 + $0x20] sm:$0xff]  ;;  %v4772_v4 = vld [vmem:[#allocation8] ss:$8 sps:$4 sm:$0xff]  }
  0xa9   : > { %1210 = vmatprep.subr.bf16.mxu1 %v4228_v37  ;;  %v5498_v30 = vpack.c.bf16 %v294_v19, %v292_v18  ;;  %v296_v36 = vld [vmem:[%s5459_s8 + $0x40] sm:$0xff]  ;;  %v298_v37 = vld [vmem:[%s5459_s8 + $0x50] sm:$0xff]  ;;  %v309_v5 = vld [vmem:[%s5459_s8 + $0xa8] sm:$0xff] }
  0xaa   : > { %v300_v50 = vld [vmem:[%s5459_s8 + $0x60] sm:$0xff]  ;;  %v477_v34 = vld [vmem:[#allocation5 + $0x2e8] sm:$0xff] }
  0xab   : > { %v304_v1 = vld [vmem:[%s5459_s8 + $0x80] sm:$0xff] }
  0xac   : > { %1211 = vmatpush1.bf16.msra.mxu1 %v4227_v40  ;;  %v4189_v40 = vcombine.low %v409_v26, %v413_v27  ;;  %v5528_v10 = vpack.c.bf16 %v306_v2, %v304_v1  ;;  %v308_v18 = vld [vmem:[%s5459_s8 + $0xa0] sm:$0xff]  ;;  %v4776_v26 = vld [vmem:[#allocation8 + $0x24] ss:$8 sps:$4 sm:$0xff]  }
  0xad   : > { %1212 = vmatprep.subr.bf16.mxu1 %v4236_v41  ;;  %v425_v41 = vld [vmem:[#allocation5 + $0x148] sm:$0xff]  ;;  %v4773_v19 = vld [vmem:[#allocation8 + $0x14] ss:$8 sps:$4 sm:$0xff]   ;;  %v318_v2 = vld [vmem:[%s5459_s8 + $0xf0] sm:$0xff] }
  0xae   : > { %v4206_v49 = vcombine.high %v425_v41, %v429_v42  ;;  %v4205_v54 = vcombine.low %v425_v41, %v429_v42  ;;  %v313_v27 = vld [vmem:[%s5459_s8 + $0xc8] sm:$0xff]  ;;  %v312_v42 = vld [vmem:[%s5459_s8 + $0xc0] sm:$0xff] }
  0xaf   : > { %v485_v41 = vld [vmem:[#allocation5 + $0x328] sm:$0xff]  ;;  %v4785_v1 = vld [vmem:[#allocation8 + $0x54] ss:$8 sps:$4 sm:$0xff]  }
  0xb0   : > { %1213 = vmatpush1.bf16.msra.mxu1 %v4235_v44  ;;  %v5508_v44 = vpack.c.bf16 %v298_v37, %v296_v36  ;;  %v5538_v36 = vpack.c.bf16 %v310_v21, %v308_v18  ;;  %v320_v21 = vld [vmem:[%s5459_s8 + $0x100] sm:$0xff] }
  0xb1   : > { %1214 = vmatprep.subr.bf16.mxu1 %v4244_v45  ;;  %v5510_v45 = vpack.c.bf16 %v303_v39, %v301_v38  ;;  %v4254_v39 = vcombine.high %v473_v33, %v477_v34 }
  0xb4   : > { %1215 = vmatpush1.bf16.msra.mxu1 %v4243_v48  ;;  %v437_v48 = vld [vmem:[#allocation5 + $0x1a8] sm:$0xff] }
  0xb5   : > { %1216 = vmatprep.subr.bf16.mxu1 %v4252_v51  ;;  %v302_v51 = vld [vmem:[%s5459_s8 + $0x70] sm:$0xff]  ;;  %v4214_v57 = vcombine.high %v433_v47, %v437_v48 }
  0xb6   : > { %v5518_v58 = vpack.c.bf16 %v302_v51, %v300_v50  ;;  %v317_v50 = vld [vmem:[%s5459_s8 + $0xe8] sm:$0xff]  ;;  %v319_v51 = vld [vmem:[%s5459_s8 + $0xf8] sm:$0xff] }
  0xb8   : > { %1217 = vmatpush1.bf16.msra.mxu1 %v4251_v52  ;;  %v305_v52 = vld [vmem:[%s5459_s8 + $0x88] sm:$0xff] }
  0xb9   : > { %1218 = vmatprep.subr.bf16.mxu1 %v4260_v55  ;;  %v441_v55 = vld [vmem:[#allocation5 + $0x1c8] sm:$0xff] }
  0xbc   : > { %1219 = vmatpush1.bf16.msra.mxu1 %v4259_v56  ;;  %v445_v56 = vld [vmem:[#allocation5 + $0x1e8] sm:$0xff] }
  0xbd   : > { %1220 = vmatprep.subr.bf16.mxu1 %v4268_v59  ;;  %v5520_v59 = vpack.c.bf16 %v307_v53, %v305_v52  ;;  %v4222_v61 = vcombine.high %v441_v55, %v445_v56  ;;  %v489_v53 = vld [vmem:[#allocation5 + $0x348] sm:$0xff] }
  0xc0   : > { %1221 = vmatpush1.bf16.msra.mxu1 %v4267_v60  ;;  %v4213_v60 = vcombine.low %v433_v47, %v437_v48  ;;  %v4253_v47 = vcombine.low %v473_v33, %v477_v34  ;;  %v4781_v48 = vld [vmem:[#allocation8 + $0x30] ss:$8 sps:$4 sm:$0xff]   ;;  %v4168_v34 = vcombine.high %v5491_v23, %v5493_v24  ;;  %v418_v23 = vld [vmem:[#allocation5 + $0x110] sm:$0xff] }
  0xc1   : > { %1222 = vmatprep.subr.bf16.mxu1 %v4276_v63  ;;  %v453_v63 = vld [vmem:[#allocation5 + $0x228] sm:$0xff]  ;;  %v327_v33 = vld [vmem:[%s5459_s8 + $0x138] sm:$0xff]  ;;  %v422_v24 = vld [vmem:[#allocation5 + $0x130] sm:$0xff] }
  0xc2   : > { %v4230_v7 = vcombine.high %v449_v62, %v453_v63 }
  0xc4   : > { %1223 = vmatpush1.bf16.msra.mxu1 %v4275_v0  ;;  %v4770_v0 = vld [vmem:[#allocation8 + $0x4] ss:$8 sps:$4 sm:$0xff]  }
  0xc5   : > { %1224 = vmatprep.subr.bf16.mxu1 %v4284_v3  ;;  %v4221_v3 = vcombine.low %v441_v55, %v445_v56  ;;  %3130 = vmatprep.subr.bf16.mxu0 %v4770_v0  ;;  %v4784_v55 = vld [vmem:[#allocation8 + $0x40] ss:$8 sps:$4 sm:$0xff]   ;;  %v316_v0 = vld [vmem:[%s5459_s8 + $0xe0] sm:$0xff] }
  0xc6   : > { %3131 = vmatpush1.bf16.msra.mxu0 %v4772_v4  ;;  %v4787_v4 = vld [vmem:[#allocation8 + $0x50] ss:$8 sps:$4 sm:$0xff]  }
  0xc7   : > { %3132 = vmatprep.subr.bf16.mxu0 %v4773_v19 }
  0xc8   : > { %1225 = vmatpush1.bf16.msra.mxu1 %v4283_v8  ;;  %v457_v8 = vld [vmem:[#allocation5 + $0x248] sm:$0xff] }
  0xc9   : > { %1387 = vmatprep.subr.bf16.mxu1 %v4166_v11  ;;  %v5530_v11 = vpack.c.bf16 %v311_v6, %v309_v5  ;;  %v4238_v15 = vcombine.high %v457_v8, %v461_v9  ;;  %v4237_v22 = vcombine.low %v457_v8, %v461_v9  ;;  %v4788_v5 = vld [vmem:[#allocation8 + $0x64] ss:$8 sps:$4 sm:$0xff]  }
  0xca   : > { %v321_v6 = vld [vmem:[%s5459_s8 + $0x108] sm:$0xff] }
  0xcb   : > { %1227 = vmatmul.mubr.bf16.vlgmr.msra.gmra.mrb[0].mxu1 %v5482_v12  ;;  %v505_v9 = vld [vmem:[#allocation5 + $0x3c8] sm:$0xff] }
  0xcc   : > { %1388 = vmatpush1.bf16.msra.mxu1 %v4165_v13  ;;  %1236 = vmatprep.mubr.bf16.mxu1 %v5484_v14  ;;  %v4229_v13 = vcombine.low %v449_v62, %v453_v63  ;;  %v497_v62 = vld [vmem:[#allocation5 + $0x388] sm:$0xff] }
  0xcd   : > { %1389 = vmatprep.subr.bf16.mxu1 %v4174_v17  ;;  %v469_v17 = vld [vmem:[#allocation5 + $0x2a8] sm:$0xff] }
  0xce   : > { %v4245_v38 = vcombine.low %v465_v16, %v469_v17  ;;  %v501_v63 = vld [vmem:[#allocation5 + $0x3a8] sm:$0xff] }
  0xcf   : > { %v4278_v8 = vcombine.high %v497_v62, %v501_v63  ;;  %v4277_v18 = vcombine.low %v497_v62, %v501_v63  ;;  %v335_v62 = vld [vmem:[%s5459_s8 + $0x178] sm:$0xff]  ;;  %v4808_v63 = vld [vmem:[#allocation8 + $0xc0] ss:$8 sps:$4 sm:$0xff]  }
  0xd0   : > { %1390 = vmatpush1.bf16.msra.mxu1 %v4173_v25  ;;  %v4775_v25 = vld [vmem:[#allocation8 + $0x10] ss:$8 sps:$4 sm:$0xff]  }
  0xd1   : > { %1391 = vmatprep.subr.bf16.mxu1 %v4182_v29  ;;  %v315_v29 = vld [vmem:[%s5459_s8 + $0xd8] sm:$0xff]  ;;  %3133 = vmatpush1.bf16.msra.mxu0 %v4775_v25  ;;  %v322_v25 = vld [vmem:[%s5459_s8 + $0x110] sm:$0xff] }
  0xd2   : > { %3134 = vmatprep.subr.bf16.mxu0 %v4776_v26  ;;  %v5540_v37 = vpack.c.bf16 %v315_v29, %v313_v27  ;;  %v4793_v27 = vld [vmem:[#allocation8 + $0x70] ss:$8 sps:$4 sm:$0xff]   ;;  %v4794_v29 = vld [vmem:[#allocation8 + $0x84] ss:$8 sps:$4 sm:$0xff]  }
  0xd3   : > { %1237 = vmatmul.mubr.bf16.gmra.mrb[4].mxu1 %v5498_v30 }
  0xd4   : > { %1246 = vmatprep.mubr.bf16.mxu1 %v5500_v31  ;;  %1392 = vmatpush1.bf16.msra.mxu1 %v4181_v32  ;;  %v4246_v32 = vcombine.high %v465_v16, %v469_v17  ;;  %v5558_v16 = vpack.c.bf16 %v318_v2, %v316_v0  ;;  %v4809_v2 = vld [vmem:[#allocation8 + $0xd4] ss:$8 sps:$4 sm:$0xff]  }
  0xd5   : > { %1393 = vmatprep.subr.bf16.mxu1 %v4190_v35  ;;  %v4778_v35 = vld [vmem:[#allocation8 + $0x20] ss:$8 sps:$4 sm:$0xff]  }
  0xd6   : > { %3135 = vmatpush1.bf16.msra.mxu0 %v4778_v35  ;;  %v4796_v35 = vld [vmem:[#allocation8 + $0x80] ss:$8 sps:$4 sm:$0xff]  }
  0xd8   : > { %1394 = vmatpush1.bf16.msra.mxu1 %v4189_v40  ;;  %v481_v40 = vld [vmem:[#allocation5 + $0x308] sm:$0xff] }
  0xd9   : > { %1395 = vmatprep.subr.bf16.mxu1 %v4198_v43  ;;  %v4779_v43 = vld [vmem:[#allocation8 + $0x34] ss:$8 sps:$4 sm:$0xff]   ;;  %v4262_v52 = vcombine.high %v481_v40, %v485_v41 }
  0xda   : > { %3136 = vmatprep.subr.bf16.mxu0 %v4779_v43  ;;  %v4799_v43 = vld [vmem:[#allocation8 + $0x90] ss:$8 sps:$4 sm:$0xff]  }
  0xdb   : > { %1247 = vmatmul.mubr.bf16.gmra.mrb[8].mxu1 %v5508_v44  ;;  %3137 = vmatpush1.bf16.msra.mxu0 %v4781_v48  ;;  %v331_v48 = vld [vmem:[%s5459_s8 + $0x158] sm:$0xff] }
  0xdc   : > { %1256 = vmatprep.mubr.bf16.mxu1 %v5510_v45  ;;  %1396 = vmatpush1.bf16.msra.mxu1 %v4197_v46  ;;  %v314_v46 = vld [vmem:[%s5459_s8 + $0xd0] sm:$0xff] }
  0xdd   : > { %1397 = vmatprep.subr.bf16.mxu1 %v4206_v49  ;;  %v4782_v49 = vld [vmem:[#allocation8 + $0x44] ss:$8 sps:$4 sm:$0xff]   ;;  %v5548_v56 = vpack.c.bf16 %v314_v46, %v312_v42 }
  0xde   : > { %3138 = vmatprep.subr.bf16.mxu0 %v4782_v49  ;;  %v326_v42 = vld [vmem:[%s5459_s8 + $0x130] sm:$0xff] }
  0xdf   : > { %3139 = vmatpush1.bf16.msra.mxu0 %v4784_v55  ;;  %v4800_v46 = vld [vmem:[#allocation8 + $0xa4] ss:$8 sps:$4 sm:$0xff]   ;;  %v4802_v49 = vld [vmem:[#allocation8 + $0xa0] ss:$8 sps:$4 sm:$0xff]   ;;  %v4805_v55 = vld [vmem:[#allocation8 + $0xb0] ss:$8 sps:$4 sm:$0xff]  }
  0xe0   : > { %1398 = vmatpush1.bf16.msra.mxu1 %v4205_v54  ;;  %v493_v54 = vld [vmem:[#allocation5 + $0x368] sm:$0xff]  ;;  %3140 = vmatprep.subr.bf16.mxu0 %v4785_v1 }
  0xe1   : > { %1399 = vmatprep.subr.bf16.mxu1 %v4214_v57  ;;  %v5550_v57 = vpack.c.bf16 %v319_v51, %v317_v50 }
  0xe3   : > { %1257 = vmatmul.mubr.bf16.gmra.mrb[12].mxu1 %v5518_v58  ;;  %3141 = vmatpush1.bf16.msra.mxu0 %v4787_v4  ;;  %v334_v4 = vld [vmem:[%s5459_s8 + $0x170] sm:$0xff] }
  0xe4   : > { %1266 = vmatprep.mubr.bf16.mxu1 %v5520_v59  ;;  %1400 = vmatpush1.bf16.msra.mxu1 %v4213_v60  ;;  %v4261_v60 = vcombine.low %v481_v40, %v485_v41  ;;  %v324_v40 = vld [vmem:[%s5459_s8 + $0x120] sm:$0xff] }
  0xe5   : > { %1401 = vmatprep.subr.bf16.mxu1 %v4222_v61  ;;  %v4270_v61 = vcombine.high %v489_v53, %v493_v54  ;;  %3142 = vmatprep.subr.bf16.mxu0 %v4788_v5  ;;  %v4797_v41 = vld [vmem:[#allocation8 + $0x94] ss:$8 sps:$4 sm:$0xff]   ;;  %v5580_v50 = vpack.c.bf16 %v326_v42, %v324_v40  ;;  %v4811_v5 = vld [vmem:[#allocation8 + $0xd0] ss:$8 sps:$4 sm:$0xff]   ;;  %v4820_v40 = vld [vmem:[#allocation8 + $0x104] ss:$8 sps:$4 sm:$0xff]  }
  0xe8   : > { %1402 = vmatpush1.bf16.msra.mxu1 %v4221_v3  ;;  %v4269_v3 = vcombine.low %v489_v53, %v493_v54  ;;  %v4803_v53 = vld [vmem:[#allocation8 + $0xb4] ss:$8 sps:$4 sm:$0xff]   ;;  %v330_v54 = vld [vmem:[%s5459_s8 + $0x150] sm:$0xff] }
  0xe9   : > { %1403 = vmatprep.subr.bf16.mxu1 %v4230_v7  ;;  %v323_v7 = vld [vmem:[%s5459_s8 + $0x118] sm:$0xff] }
  0xea   : > { %v5560_v17 = vpack.c.bf16 %v323_v7, %v321_v6  ;;  %v337_v6 = vld [vmem:[%s5459_s8 + $0x188] sm:$0xff]  ;;  %v339_v7 = vld [vmem:[%s5459_s8 + $0x198] sm:$0xff] }
  0xeb   : > { %1267 = vmatmul.mubr.bf16.gmra.mrb[16].mxu1 %v5528_v10 }
  0xec   : > { %1276 = vmatprep.mubr.bf16.mxu1 %v5530_v11  ;;  %1404 = vmatpush1.bf16.msra.mxu1 %v4229_v13  ;;  %v509_v13 = vld [vmem:[#allocation5 + $0x3e8] sm:$0xff] }
  0xed   : > { %1405 = vmatprep.subr.bf16.mxu1 %v4238_v15  ;;  %v4790_v15 = vld [vmem:[#allocation8 + $0x60] ss:$8 sps:$4 sm:$0xff]   ;;  %v4286_v19 = vcombine.high %v505_v9, %v509_v13  ;;  %v4285_v26 = vcombine.low %v505_v9, %v509_v13  ;;  %v4812_v9 = vld [vmem:[#allocation8 + $0xe4] ss:$8 sps:$4 sm:$0xff]   ;;  %v5602_v13 = vpack.c.bf16 %v339_v7, %v337_v6  ;;  %v5647_v7 = vld [vmem:[#allocation5 + $0x18] sm:$0xff] }
  0xee   : > { %3143 = vmatpush1.bf16.msra.mxu0 %v4790_v15  ;;  %v4814_v15 = vld [vmem:[#allocation8 + $0xe0] ss:$8 sps:$4 sm:$0xff]  }
  0xef   : > { %v414_v6 = vld [vmem:[#allocation5 + $0xf0] sm:$0xff] }
  0xf0   : > { %1406 = vmatpush1.bf16.msra.mxu1 %v4237_v22  ;;  %v4791_v22 = vld [vmem:[#allocation8 + $0x74] ss:$8 sps:$4 sm:$0xff]  }
  0xf1   : > { %1407 = vmatprep.subr.bf16.mxu1 %v4246_v32  ;;  %v325_v32 = vld [vmem:[%s5459_s8 + $0x128] sm:$0xff]  ;;  %3144 = vmatprep.subr.bf16.mxu0 %v4791_v22  ;;  %v4817_v22 = vld [vmem:[#allocation8 + $0xf0] ss:$8 sps:$4 sm:$0xff]  }
  0xf2   : > { %3145 = vmatpush1.bf16.msra.mxu0 %v4793_v27 }
  0xf3   : > { %1277 = vmatmul.mubr.bf16.gmra.mrb[20].mxu1 %v5538_v36  ;;  %3146 = vmatprep.subr.bf16.mxu0 %v4794_v29 }
  0xf4   : > { %1286 = vmatprep.mubr.bf16.mxu1 %v5540_v37  ;;  %1408 = vmatpush1.bf16.msra.mxu1 %v4245_v38  ;;  %v5570_v38 = vpack.c.bf16 %v322_v25, %v320_v21  ;;  %v338_v21 = vld [vmem:[%s5459_s8 + $0x190] sm:$0xff]  ;;  %v341_v25 = vld [vmem:[%s5459_s8 + $0x1a8] sm:$0xff] }
  0xf5   : > { %1409 = vmatprep.subr.bf16.mxu1 %v4254_v39  ;;  %v5572_v39 = vpack.c.bf16 %v327_v33, %v325_v32  ;;  %v340_v32 = vld [vmem:[%s5459_s8 + $0x1a0] sm:$0xff]  ;;  %v342_v33 = vld [vmem:[%s5459_s8 + $0x1b0] sm:$0xff] }
  0xf6   : > { %3147 = vmatpush1.bf16.msra.mxu0 %v4796_v35  ;;  %v347_v35 = vld [vmem:[%s5459_s8 + $0x1d8] sm:$0xff] }
  0xf7   : > { %3148 = vmatprep.subr.bf16.mxu0 %v4797_v41  ;;  %v5620_v41 = vpack.c.bf16 %v342_v33, %v340_v32  ;;  %v434_v33 = vld [vmem:[#allocation5 + $0x190] sm:$0xff] }
  0xf8   : > { %1410 = vmatpush1.bf16.msra.mxu1 %v4253_v47  ;;  %v329_v47 = vld [vmem:[%s5459_s8 + $0x148] sm:$0xff] }
  0xf9   : > { %1411 = vmatprep.subr.bf16.mxu1 %v4262_v52  ;;  %v5582_v51 = vpack.c.bf16 %v331_v48, %v329_v47  ;;  %v328_v52 = vld [vmem:[%s5459_s8 + $0x140] sm:$0xff]  ;;  %v349_v47 = vld [vmem:[%s5459_s8 + $0x1e8] sm:$0xff]  ;;  %v351_v48 = vld [vmem:[%s5459_s8 + $0x1f8] sm:$0xff] }
  0xfa   : > { %3149 = vmatpush1.bf16.msra.mxu0 %v4799_v43  ;;  %v5590_v0 = vpack.c.bf16 %v330_v54, %v328_v52  ;;  %v344_v43 = vld [vmem:[%s5459_s8 + $0x1c0] sm:$0xff]  ;;  %v5632_v52 = vpack.c.bf16 %v351_v48, %v349_v47  ;;  %v350_v54 = vld [vmem:[%s5459_s8 + $0x1f0] sm:$0xff] }
  0xfb   : > { %1287 = vmatmul.mubr.bf16.gmra.mrb[24].mxu1 %v5548_v56  ;;  %3150 = vmatprep.subr.bf16.mxu0 %v4800_v46  ;;  %v346_v46 = vld [vmem:[%s5459_s8 + $0x1d0] sm:$0xff] }
  0xfc   : > { %1296 = vmatprep.mubr.bf16.mxu1 %v5550_v57  ;;  %1412 = vmatpush1.bf16.msra.mxu1 %v4261_v60  ;;  %v4806_v60 = vld [vmem:[#allocation8 + $0xc4] ss:$8 sps:$4 sm:$0xff]  }
  0xfd   : > { %1413 = vmatprep.subr.bf16.mxu1 %v4270_v61  ;;  %v333_v61 = vld [vmem:[%s5459_s8 + $0x168] sm:$0xff] }
  0xfe   : > { %3151 = vmatpush1.bf16.msra.mxu0 %v4802_v49  ;;  %v5592_v1 = vpack.c.bf16 %v335_v62, %v333_v61  ;;  %v5630_v49 = vpack.c.bf16 %v346_v46, %v344_v43  ;;  %v398_v61 = vld [vmem:[#allocation5 + $0x70] sm:$0xff] }
  0xff   : > { %3152 = vmatprep.subr.bf16.mxu0 %v4803_v53  ;;  %v348_v53 = vld [vmem:[%s5459_s8 + $0x1e0] sm:$0xff]  ;;  %v442_v43 = vld [vmem:[#allocation5 + $0x1d0] sm:$0xff] }
 0x100   : > { %1414 = vmatpush1.bf16.msra.mxu1 %v4269_v3  ;;  %v332_v3 = vld [vmem:[%s5459_s8 + $0x160] sm:$0xff]  ;;  %v446_v46 = vld [vmem:[#allocation5 + $0x1f0] sm:$0xff] }
 0x101   : > { %1415 = vmatprep.subr.bf16.mxu1 %v4278_v8  ;;  %v5600_v8 = vpack.c.bf16 %v334_v4, %v332_v3  ;;  %v4224_v48 = vcombine.high %v442_v43, %v446_v46 }
 0x102   : > { %3153 = vmatpush1.bf16.msra.mxu0 %v4805_v55  ;;  %v5638_v55 = vpack.c.bf16 %v350_v54, %v348_v53  ;;  %v450_v53 = vld [vmem:[#allocation5 + $0x210] sm:$0xff] }
 0x103   : > { %1297 = vmatmul.mubr.bf16.gmra.mrb[28].mxu1 %v5558_v16  ;;  %3154 = vmatprep.subr.bf16.mxu0 %v4806_v60  ;;  %v394_v60 = vld [vmem:[#allocation5 + $0x50] sm:$0xff] }
 0x104   : > { %1306 = vmatprep.mubr.bf16.mxu1 %v5560_v17  ;;  %1416 = vmatpush1.bf16.msra.mxu1 %v4277_v18  ;;  %v4815_v18 = vld [vmem:[#allocation8 + $0xf4] ss:$8 sps:$4 sm:$0xff]   ;;  %v4176_v62 = vcombine.high %v394_v60, %v398_v61  ;;  %v4175_v3 = vcombine.low %v394_v60, %v398_v61  ;;  %v454_v54 = vld [vmem:[#allocation5 + $0x230] sm:$0xff]  ;;  %v4223_v60 = vcombine.low %v442_v43, %v446_v46 }
 0x105   : > { %1417 = vmatprep.subr.bf16.mxu1 %v4286_v19  ;;  %v336_v19 = vld [vmem:[%s5459_s8 + $0x180] sm:$0xff]  ;;  %v4232_v61 = vcombine.high %v450_v53, %v454_v54  ;;  %v502_v43 = vld [vmem:[#allocation5 + $0x3b0] sm:$0xff] }
 0x106   : > { %3155 = vmatpush1.bf16.msra.mxu0 %v4808_v63  ;;  %v5610_v27 = vpack.c.bf16 %v338_v21, %v336_v19  ;;  %v402_v63 = vld [vmem:[#allocation5 + $0x90] sm:$0xff]  ;;  %v4200_v21 = vcombine.high %v418_v23, %v422_v24 }
 0x107   : > { %3156 = vmatprep.subr.bf16.mxu0 %v4809_v2  ;;  %v406_v2 = vld [vmem:[#allocation5 + $0xb0] sm:$0xff] }
 0x108   : > { %1418 = vmatpush1.bf16.msra.mxu1 %v4285_v26  ;;  %v343_v26 = vld [vmem:[%s5459_s8 + $0x1b8] sm:$0xff]  ;;  %v4184_v4 = vcombine.high %v402_v63, %v406_v2 }
 0x109   : > { %1580 = vmatprep.subr.bf16.mxu1 %v4168_v34  ;;  %v5612_v29 = vpack.c.bf16 %v343_v26, %v341_v25  ;;  %v345_v34 = vld [vmem:[%s5459_s8 + $0x1c8] sm:$0xff]  ;;  %v430_v25 = vld [vmem:[#allocation5 + $0x170] sm:$0xff]  ;;  %v4199_v26 = vcombine.low %v418_v23, %v422_v24 }
 0x10a   : > { %3157 = vmatpush1.bf16.msra.mxu0 %v4811_v5  ;;  %v5622_v42 = vpack.c.bf16 %v347_v35, %v345_v34  ;;  %v410_v5 = vld [vmem:[#allocation5 + $0xd0] sm:$0xff] }
 0x10b   : > { %1307 = vmatmul.mubr.bf16.gmra.mrb[32].mxu1 %v5570_v38  ;;  %3158 = vmatprep.subr.bf16.mxu0 %v4812_v9  ;;  %v5649_v9 = vld [vmem:[#allocation5 + $0x38] sm:$0xff]  ;;  %v4192_v19 = vcombine.high %v410_v5, %v414_v6  ;;  %v438_v34 = vld [vmem:[#allocation5 + $0x1b0] sm:$0xff] }
 0x10c   : > { %1316 = vmatprep.mubr.bf16.mxu1 %v5572_v39  ;;  %v4215_v47 = vcombine.low %v434_v33, %v438_v34  ;;  %v478_v23 = vld [vmem:[#allocation5 + $0x2f0] sm:$0xff] }
 0x10e   : > { %3159 = vmatpush1.bf16.msra.mxu0 %v4814_v15  ;;  %v4183_v15 = vcombine.low %v402_v63, %v406_v2  ;;  %v462_v63 = vld [vmem:[#allocation5 + $0x270] sm:$0xff]  ;;  %v4231_v2 = vcombine.low %v450_v53, %v454_v54 }
 0x10f   : > { %3160 = vmatprep.subr.bf16.mxu0 %v4815_v18  ;;  %v4169_v18 = vcombine.low %v5647_v7, %v5649_v9  ;;  %v510_v53 = vld [vmem:[#allocation5 + $0x3f0] sm:$0xff] }
 0x112   : > { %3161 = vmatpush1.bf16.msra.mxu0 %v4817_v22  ;;  %v426_v22 = vld [vmem:[#allocation5 + $0x150] sm:$0xff] }
 0x113   : > { %1317 = vmatmul.mubr.bf16.gmra.mrb[36].mxu1 %v5580_v50  ;;  %3323 = vmatprep.subr.bf16.mxu0 %v4820_v40  ;;  %v4208_v32 = vcombine.high %v426_v22, %v430_v25  ;;  %v4207_v35 = vcombine.low %v426_v22, %v430_v25  ;;  %v4216_v40 = vcombine.high %v434_v33, %v438_v34  ;;  %v486_v22 = vld [vmem:[#allocation5 + $0x330] sm:$0xff] }
 0x114   : > { %1326 = vmatprep.mubr.bf16.mxu1 %v5582_v51  ;;  %v494_v33 = vld [vmem:[#allocation5 + $0x370] sm:$0xff] }
 0x11b   : > { %1327 = vmatmul.mubr.bf16.gmra.mrb[40].mxu1 %v5590_v0 }
 0x11c   : > { %1336 = vmatprep.mubr.bf16.mxu1 %v5592_v1 }
 0x123   : > { %1337 = vmatmul.mubr.bf16.gmra.mrb[44].mxu1 %v5600_v8 }
 0x124   : > { %1346 = vmatprep.mubr.bf16.mxu1 %v5602_v13 }
 0x12b   : > { %1347 = vmatmul.mubr.bf16.gmra.mrb[48].mxu1 %v5610_v27 }
 0x12c   : > { %1356 = vmatprep.mubr.bf16.mxu1 %v5612_v29 }
 0x133   : > { %1357 = vmatmul.mubr.bf16.gmra.mrb[52].mxu1 %v5620_v41 }
 0x134   : > { %1366 = vmatprep.mubr.bf16.mxu1 %v5622_v42 }
 0x13b   : > { %1367 = vmatmul.mubr.bf16.gmra.mrb[56].mxu1 %v5630_v49 }
 0x13c   : > { %1376 = vmatprep.mubr.bf16.mxu1 %v5632_v52 }
 0x143   : > { %1377 = vmatmul.mubr.bf16.gmra.mrb[60].mxu1 %v5638_v55 }
 0x144   : > { %1419 = vmatprep.mubr.bf16.mxu1 %v5475_v20 }
 0x14b   : > { %1420 = vmatmul.mubr.bf16.vlgmr.msra.gmra.mrb[64].mxu1 %v5482_v12 }
 0x14c   : > { %1581 = vmatpush1.bf16.msra.mxu1 %v4167_v28  ;;  %1429 = vmatprep.mubr.bf16.mxu1 %v5484_v14  ;;  %v4191_v28 = vcombine.low %v410_v5, %v414_v6  ;;  %v470_v5 = vld [vmem:[#allocation5 + $0x2b0] sm:$0xff] }
 0x14d   : > { %1582 = vmatprep.subr.bf16.mxu1 %v4176_v62  ;;  %v458_v62 = vld [vmem:[#allocation5 + $0x250] sm:$0xff] }
 0x14e   : > { %v4239_v6 = vcombine.low %v458_v62, %v462_v63 }
 0x150   : > { %1583 = vmatpush1.bf16.msra.mxu1 %v4175_v3  ;;  %v4240_v3 = vcombine.high %v458_v62, %v462_v63  ;;  %v4170_v62 = vcombine.high %v5647_v7, %v5649_v9  ;;  %v514_v63 = vlaneseq }
 0x151   : > { %1584 = vmatprep.subr.bf16.mxu1 %v4184_v4  ;;  %v466_v4 = vld [vmem:[#allocation5 + $0x290] sm:$0xff] }
 0x152   : > { %v4247_v24 = vcombine.low %v466_v4, %v470_v5 }
 0x153   : > { %1430 = vmatmul.mubr.bf16.gmra.mrb[68].mxu1 %v5498_v30 }
 0x154   : > { %1439 = vmatprep.mubr.bf16.mxu1 %v5500_v31  ;;  %1585 = vmatpush1.bf16.msra.mxu1 %v4183_v15  ;;  %v4248_v15 = vcombine.high %v466_v4, %v470_v5  ;;  %v5676_v4 = vld [vmem:[#allocation7] sm:$0xff] }
 0x155   : > { %1586 = vmatprep.subr.bf16.mxu1 %v4192_v19  ;;  %v474_v19 = vld [vmem:[#allocation5 + $0x2d0] sm:$0xff] }
 0x156   : > { %v4255_v25 = vcombine.low %v474_v19, %v478_v23 }
 0x158   : > { %1587 = vmatpush1.bf16.msra.mxu1 %v4191_v28  ;;  %v4256_v28 = vcombine.high %v474_v19, %v478_v23 }
 0x159   : > { %1588 = vmatprep.subr.bf16.mxu1 %v4200_v21  ;;  %v482_v21 = vld [vmem:[#allocation5 + $0x310] sm:$0xff] }
 0x15a   : > { %v4263_v34 = vcombine.low %v482_v21, %v486_v22 }
 0x15b   : > { %1440 = vmatmul.mubr.bf16.gmra.mrb[72].mxu1 %v5508_v44 }
 0x15c   : > { %1449 = vmatprep.mubr.bf16.mxu1 %v5510_v45  ;;  %1589 = vmatpush1.bf16.msra.mxu1 %v4199_v26  ;;  %v4264_v26 = vcombine.high %v482_v21, %v486_v22 }
 0x15d   : > { %1590 = vmatprep.subr.bf16.mxu1 %v4208_v32  ;;  %v490_v32 = vld [vmem:[#allocation5 + $0x350] sm:$0xff] }
 0x15e   : > { %v4271_v46 = vcombine.low %v490_v32, %v494_v33 }
 0x160   : > { %1591 = vmatpush1.bf16.msra.mxu1 %v4207_v35  ;;  %v4272_v35 = vcombine.high %v490_v32, %v494_v33 }
 0x161   : > { %1592 = vmatprep.subr.bf16.mxu1 %v4216_v40  ;;  %v498_v40 = vld [vmem:[#allocation5 + $0x390] sm:$0xff] }
 0x162   : > { %v4279_v54 = vcombine.low %v498_v40, %v502_v43 }
 0x163   : > { %1450 = vmatmul.mubr.bf16.gmra.mrb[76].mxu1 %v5518_v58 }
 0x164   : > { %1459 = vmatprep.mubr.bf16.mxu1 %v5520_v59  ;;  %1593 = vmatpush1.bf16.msra.mxu1 %v4215_v47  ;;  %v4280_v47 = vcombine.high %v498_v40, %v502_v43 }
 0x165   : > { %1594 = vmatprep.subr.bf16.mxu1 %v4224_v48  ;;  %v506_v48 = vld [vmem:[#allocation5 + $0x3d0] sm:$0xff] }
 0x168   : > { %1595 = vmatpush1.bf16.msra.mxu1 %v4223_v60  ;;  %v4288_v60 = vcombine.high %v506_v48, %v510_v53 }
 0x169   : > { %1596 = vmatprep.subr.bf16.mxu1 %v4232_v61  ;;  %v4287_v61 = vcombine.low %v506_v48, %v510_v53 }
 0x16b   : > { %1460 = vmatmul.mubr.bf16.gmra.mrb[80].mxu1 %v5528_v10 }
 0x16c   : > { %1469 = vmatprep.mubr.bf16.mxu1 %v5530_v11  ;;  %1597 = vmatpush1.bf16.msra.mxu1 %v4231_v2  ;;  %v5672_v2 = vshrl.u32 %v514_v63, 7 }
 0x16d   : > { %1598 = vmatprep.subr.bf16.mxu1 %v4240_v3 }
 0x16e   : > { %v516_v3 = vsub.s32 0, %v5672_v2  ;;  %v520_v5 = vsub.s32 1, %v5672_v2 }
 0x170   : > { %1599 = vmatpush1.bf16.msra.mxu1 %v4239_v6  ;;  %v5683_v6 = vrot.slane %v5676_v4, %v516_v3 }
 0x171   : > { %1600 = vmatprep.subr.bf16.mxu1 %v4248_v15  ;;  %v5688_v15 = vrot.slane %v5676_v4, %v520_v5 }
 0x173   : > { %1470 = vmatmul.mubr.bf16.gmra.mrb[84].mxu1 %v5538_v36 }
 0x174   : > { %1479 = vmatprep.mubr.bf16.mxu1 %v5540_v37  ;;  %1601 = vmatpush1.bf16.msra.mxu1 %v4247_v24 }
 0x175   : > { %1602 = vmatprep.subr.bf16.mxu1 %v4256_v28 }
 0x178   : > { %1603 = vmatpush1.bf16.msra.mxu1 %v4255_v25 }
 0x179   : > { %1604 = vmatprep.subr.bf16.mxu1 %v4264_v26 }
 0x17b   : > { %1480 = vmatmul.mubr.bf16.gmra.mrb[88].mxu1 %v5548_v56 }
 0x17c   : > { %1489 = vmatprep.mubr.bf16.mxu1 %v5550_v57  ;;  %1605 = vmatpush1.bf16.msra.mxu1 %v4263_v34 }
 0x17d   : > { %1606 = vmatprep.subr.bf16.mxu1 %v4272_v35 }
 0x180   : > { %1607 = vmatpush1.bf16.msra.mxu1 %v4271_v46 }
 0x181   : > { %1608 = vmatprep.subr.bf16.mxu1 %v4280_v47  ;;  %v4818_v47 = vld [vmem:[#allocation8 + $0x100] ss:$8 sps:$4 sm:$0xff]  }
 0x183   : > { %1490 = vmatmul.mubr.bf16.gmra.mrb[92].mxu1 %v5558_v16 }
 0x184   : > { %1499 = vmatprep.mubr.bf16.mxu1 %v5560_v17  ;;  %1609 = vmatpush1.bf16.msra.mxu1 %v4279_v54  ;;  %v4823_v54 = vld [vmem:[#allocation8 + $0x114] ss:$8 sps:$4 sm:$0xff]  }
 0x185   : > { %1610 = vmatprep.subr.bf16.mxu1 %v4288_v60 }
 0x188   : > { %1611 = vmatpush1.bf16.msra.mxu1 %v4287_v61 }
 0x189   : > { %1773 = vmatprep.subr.bf16.mxu1 %v4170_v62 }
 0x18b   : > { %1500 = vmatmul.mubr.bf16.gmra.mrb[96].mxu1 %v5570_v38 }
 0x18c   : > { %1509 = vmatprep.mubr.bf16.mxu1 %v5572_v39 }
 0x193   : > { %1510 = vmatmul.mubr.bf16.gmra.mrb[100].mxu1 %v5580_v50 }
 0x194   : > { %1519 = vmatprep.mubr.bf16.mxu1 %v5582_v51 }
 0x19b   : > { %1520 = vmatmul.mubr.bf16.gmra.mrb[104].mxu1 %v5590_v0 }
 0x19c   : > { %1529 = vmatprep.mubr.bf16.mxu1 %v5592_v1 }
 0x19e   : > { %v1228_v19 = vpop.f32.mrb[0].mxu1 }
 0x19f   : > { %v1229_v23 = vadd.f32 %v1228_v19, %v5683_v6  ;;  %v1230_v24 = vpop.f32.mrb[1].mxu1 }
 0x1a0   : > { %v1231_v28 = vadd.f32 %v1230_v24, %v5688_v15  ;;  %v1232_v21 = vpop.f32.mrb[2].mxu1 }
 0x1a1   : > { %v1233_v22 = vadd.f32 %v1232_v21, %v5683_v6  ;;  %v1234_v25 = vpop.f32.mrb[3].mxu1  ;;  %v1966_v32 = vmax.f32 %v1229_v23, 0.0  ;;  %v4821_v23 = vld [vmem:[#allocation8 + $0x110] ss:$8 sps:$4 sm:$0xff]   ;;  %v4826_v21 = vld [vmem:[#allocation8 + $0x124] ss:$8 sps:$4 sm:$0xff]  }
 0x1a2   : > { %v1235_v26 = vadd.f32 %v1234_v25, %v5688_v15  ;;  %v1967_v34 = vmax.f32 %v1231_v28, 0.0 }
 0x1a3   : > { %v1974_v33 = vmax.f32 %v1233_v22, 0.0  ;;  %1530 = vmatmul.mubr.bf16.gmra.mrb[108].mxu1 %v5600_v8 }
 0x1a4   : > { %v1975_v35 = vmax.f32 %v1235_v26, 0.0  ;;  %1539 = vmatprep.mubr.bf16.mxu1 %v5602_v13 }
 0x1a5   : > { %v2222_v40 = vpack.c.bf16 %v1974_v33, %v1966_v32 }
 0x1a6   : > { %v1238_v43 = vpop.f32.mrb[4].mxu1  ;;  %v2223_v46 = vpack.c.bf16 %v1975_v35, %v1967_v34  ;;  %v4824_v34 = vld [vmem:[#allocation8 + $0x120] ss:$8 sps:$4 sm:$0xff]  }
 0x1a7   : > { %v1239_v48 = vadd.f32 %v1238_v43, %v5683_v6  ;;  %v1240_v53 = vpop.f32.mrb[5].mxu1  ;;  %v4829_v43 = vld [vmem:[#allocation8 + $0x134] ss:$8 sps:$4 sm:$0xff]  }
 0x1a8   : > { %v1241_v60 = vadd.f32 %v1240_v53, %v5688_v15  ;;  %v1242_v61 = vpop.f32.mrb[6].mxu1  ;;  %3162 = vmatprep.mubr.bf16.mxu0 %v2223_v46 }
 0x1a9   : > { %v1243_v62 = vadd.f32 %v1242_v61, %v5683_v6  ;;  %v1244_v63 = vpop.f32.mrb[7].mxu1  ;;  %3163 = vmatmul.mubr.bf16.vlgmr.msra.gmra.mrb[0].mxu0 %v2222_v40  ;;  %v1982_v24 = vmax.f32 %v1239_v48, 0.0 }
 0x1aa   : > { %v1245_v19 = vadd.f32 %v1244_v63, %v5688_v15  ;;  %3324 = vmatpush1.bf16.msra.mxu0 %v4818_v47  ;;  %v1983_v22 = vmax.f32 %v1241_v60, 0.0  ;;  %v4827_v60 = vld [vmem:[#allocation8 + $0x130] ss:$8 sps:$4 sm:$0xff]   ;;  %v4832_v63 = vld [vmem:[#allocation8 + $0x144] ss:$8 sps:$4 sm:$0xff]  }
 0x1ab   : > { %v1990_v28 = vmax.f32 %v1243_v62, 0.0  ;;  %1540 = vmatmul.mubr.bf16.gmra.mrb[112].mxu1 %v5610_v27  ;;  %3325 = vmatprep.subr.bf16.mxu0 %v4823_v54 }
 0x1ac   : > { %v1991_v25 = vmax.f32 %v1245_v19, 0.0  ;;  %1549 = vmatprep.mubr.bf16.mxu1 %v5612_v29 }
 0x1ad   : > { %v2230_v26 = vpack.c.bf16 %v1990_v28, %v1982_v24 }
 0x1ae   : > { %v2231_v32 = vpack.c.bf16 %v1991_v25, %v1983_v22  ;;  %v1248_v33 = vpop.f32.mrb[8].mxu1  ;;  %3326 = vmatpush1.bf16.msra.mxu0 %v4821_v23  ;;  %v4830_v22 = vld [vmem:[#allocation8 + $0x140] ss:$8 sps:$4 sm:$0xff]  }
 0x1af   : > { %v1249_v35 = vadd.f32 %v1248_v33, %v5683_v6  ;;  %v1250_v40 = vpop.f32.mrb[9].mxu1  ;;  %3327 = vmatprep.subr.bf16.mxu0 %v4826_v21 }
 0x1b0   : > { %v1251_v46 = vadd.f32 %v1250_v40, %v5688_v15  ;;  %v1252_v47 = vpop.f32.mrb[10].mxu1  ;;  %3172 = vmatprep.mubr.bf16.mxu0 %v2231_v32  ;;  %v4835_v32 = vld [vmem:[#allocation8 + $0x154] ss:$8 sps:$4 sm:$0xff]  }
 0x1b1   : > { %v1253_v48 = vadd.f32 %v1252_v47, %v5683_v6  ;;  %v1254_v53 = vpop.f32.mrb[11].mxu1  ;;  %3173 = vmatmul.mubr.bf16.gmra.mrb[4].mxu0 %v2230_v26  ;;  %v1998_v61 = vmax.f32 %v1249_v35, 0.0 }
 0x1b2   : > { %v1255_v54 = vadd.f32 %v1254_v53, %v5688_v15  ;;  %3328 = vmatpush1.bf16.msra.mxu0 %v4824_v34  ;;  %v1999_v19 = vmax.f32 %v1251_v46, 0.0  ;;  %v4833_v46 = vld [vmem:[#allocation8 + $0x150] ss:$8 sps:$4 sm:$0xff]   ;;  %v4838_v53 = vld [vmem:[#allocation8 + $0x164] ss:$8 sps:$4 sm:$0xff]  }
 0x1b3   : > { %v2006_v62 = vmax.f32 %v1253_v48, 0.0  ;;  %1550 = vmatmul.mubr.bf16.gmra.mrb[116].mxu1 %v5620_v41  ;;  %3329 = vmatprep.subr.bf16.mxu0 %v4829_v43 }
 0x1b4   : > { %v2007_v23 = vmax.f32 %v1255_v54, 0.0  ;;  %1559 = vmatprep.mubr.bf16.mxu1 %v5622_v42 }
 0x1b5   : > { %v2238_v24 = vpack.c.bf16 %v2006_v62, %v1998_v61 }
 0x1b6   : > { %v2239_v28 = vpack.c.bf16 %v2007_v23, %v1999_v19  ;;  %v1258_v21 = vpop.f32.mrb[12].mxu1  ;;  %3330 = vmatpush1.bf16.msra.mxu0 %v4827_v60  ;;  %v4836_v19 = vld [vmem:[#allocation8 + $0x160] ss:$8 sps:$4 sm:$0xff]  }
 0x1b7   : > { %v1259_v25 = vadd.f32 %v1258_v21, %v5683_v6  ;;  %v1260_v26 = vpop.f32.mrb[13].mxu1  ;;  %3331 = vmatprep.subr.bf16.mxu0 %v4832_v63 }
 0x1b8   : > { %v1261_v33 = vadd.f32 %v1260_v26, %v5688_v15  ;;  %v1262_v34 = vpop.f32.mrb[14].mxu1  ;;  %3182 = vmatprep.mubr.bf16.mxu0 %v2239_v28  ;;  %v4841_v28 = vld [vmem:[#allocation8 + $0x174] ss:$8 sps:$4 sm:$0xff]  }
 0x1b9   : > { %v1263_v35 = vadd.f32 %v1262_v34, %v5683_v6  ;;  %v1264_v40 = vpop.f32.mrb[15].mxu1  ;;  %3183 = vmatmul.mubr.bf16.gmra.mrb[8].mxu0 %v2238_v24  ;;  %v2014_v47 = vmax.f32 %v1259_v25, 0.0 }
 0x1ba   : > { %v1265_v43 = vadd.f32 %v1264_v40, %v5688_v15  ;;  %3332 = vmatpush1.bf16.msra.mxu0 %v4830_v22  ;;  %v2015_v54 = vmax.f32 %v1261_v33, 0.0  ;;  %v4839_v33 = vld [vmem:[#allocation8 + $0x170] ss:$8 sps:$4 sm:$0xff]   ;;  %v4844_v40 = vld [vmem:[#allocation8 + $0x184] ss:$8 sps:$4 sm:$0xff]  }
 0x1bb   : > { %v2022_v48 = vmax.f32 %v1263_v35, 0.0  ;;  %1560 = vmatmul.mubr.bf16.gmra.mrb[120].mxu1 %v5630_v49  ;;  %3333 = vmatprep.subr.bf16.mxu0 %v4835_v32 }
 0x1bc   : > { %v2023_v60 = vmax.f32 %v1265_v43, 0.0  ;;  %1569 = vmatprep.mubr.bf16.mxu1 %v5632_v52 }
 0x1bd   : > { %v2246_v61 = vpack.c.bf16 %v2022_v48, %v2014_v47 }
 0x1be   : > { %v2247_v62 = vpack.c.bf16 %v2023_v60, %v2015_v54  ;;  %v1268_v63 = vpop.f32.mrb[16].mxu1  ;;  %3334 = vmatpush1.bf16.msra.mxu0 %v4833_v46  ;;  %v395_v54 = vld [vmem:[#allocation5 + $0x58] sm:$0xff] }
 0x1bf   : > { %v1269_v23 = vadd.f32 %v1268_v63, %v5683_v6  ;;  %v1270_v24 = vpop.f32.mrb[17].mxu1  ;;  %3335 = vmatprep.subr.bf16.mxu0 %v4838_v53  ;;  %v399_v60 = vld [vmem:[#allocation5 + $0x78] sm:$0xff] }
 0x1c0   : > { %v1271_v21 = vadd.f32 %v1270_v24, %v5688_v15  ;;  %v1272_v22 = vpop.f32.mrb[18].mxu1  ;;  %3192 = vmatprep.mubr.bf16.mxu0 %v2247_v62 }
 0x1c1   : > { %v1273_v25 = vadd.f32 %v1272_v22, %v5683_v6  ;;  %v1274_v26 = vpop.f32.mrb[19].mxu1  ;;  %3193 = vmatmul.mubr.bf16.gmra.mrb[12].mxu0 %v2246_v61  ;;  %v2030_v34 = vmax.f32 %v1269_v23, 0.0  ;;  %v4842_v61 = vld [vmem:[#allocation8 + $0x180] ss:$8 sps:$4 sm:$0xff]   ;;  %v4178_v22 = vcombine.high %v395_v54, %v399_v60 }
 0x1c2   : > { %v1275_v32 = vadd.f32 %v1274_v26, %v5688_v15  ;;  %3336 = vmatpush1.bf16.msra.mxu0 %v4836_v19  ;;  %v2031_v43 = vmax.f32 %v1271_v21, 0.0  ;;  %v4847_v19 = vld [vmem:[#allocation8 + $0x194] ss:$8 sps:$4 sm:$0xff]  }
 0x1c3   : > { %v2038_v35 = vmax.f32 %v1273_v25, 0.0  ;;  %1570 = vmatmul.mubr.bf16.gmra.mrb[124].mxu1 %v5638_v55  ;;  %3337 = vmatprep.subr.bf16.mxu0 %v4841_v28  ;;  %v403_v26 = vld [vmem:[#allocation5 + $0x98] sm:$0xff] }
 0x1c4   : > { %v2039_v46 = vmax.f32 %v1275_v32, 0.0  ;;  %1612 = vmatprep.mubr.bf16.mxu1 %v5475_v20  ;;  %v407_v32 = vld [vmem:[#allocation5 + $0xb8] sm:$0xff] }
 0x1c5   : > { %v2254_v47 = vpack.c.bf16 %v2038_v35, %v2030_v34 }
 0x1c6   : > { %v2255_v48 = vpack.c.bf16 %v2039_v46, %v2031_v43  ;;  %v1278_v53 = vpop.f32.mrb[20].mxu1  ;;  %3338 = vmatpush1.bf16.msra.mxu0 %v4839_v33  ;;  %v4845_v33 = vld [vmem:[#allocation8 + $0x190] ss:$8 sps:$4 sm:$0xff]  }
 0x1c7   : > { %v1279_v62 = vadd.f32 %v1278_v53, %v5683_v6  ;;  %v1280_v63 = vpop.f32.mrb[21].mxu1  ;;  %3339 = vmatprep.subr.bf16.mxu0 %v4844_v40  ;;  %v4850_v40 = vld [vmem:[#allocation8 + $0x1a4] ss:$8 sps:$4 sm:$0xff]   ;;  %v4186_v53 = vcombine.high %v403_v26, %v407_v32 }
 0x1c8   : > { %v1281_v23 = vadd.f32 %v1280_v63, %v5688_v15  ;;  %v1282_v24 = vpop.f32.mrb[22].mxu1  ;;  %3202 = vmatprep.mubr.bf16.mxu0 %v2255_v48 }
 0x1c9   : > { %v1283_v28 = vadd.f32 %v1282_v24, %v5683_v6  ;;  %v1284_v21 = vpop.f32.mrb[23].mxu1  ;;  %3203 = vmatmul.mubr.bf16.gmra.mrb[16].mxu0 %v2254_v47  ;;  %v2046_v34 = vmax.f32 %v1279_v62, 0.0  ;;  %v4177_v47 = vcombine.low %v395_v54, %v399_v60  ;;  %v411_v62 = vld [vmem:[#allocation5 + $0xd8] sm:$0xff] }
 0x1ca   : > { %v1285_v25 = vadd.f32 %v1284_v21, %v5688_v15  ;;  %3340 = vmatpush1.bf16.msra.mxu0 %v4842_v61  ;;  %v2047_v43 = vmax.f32 %v1281_v23, 0.0  ;;  %v415_v24 = vld [vmem:[#allocation5 + $0xf8] sm:$0xff] }
 0x1cb   : > { %v2054_v35 = vmax.f32 %v1283_v28, 0.0  ;;  %1613 = vmatmul.mubr.bf16.vlgmr.msra.gmra.mrb[128].mxu1 %v5482_v12  ;;  %3341 = vmatprep.subr.bf16.mxu0 %v4847_v19  ;;  %v4848_v28 = vld [vmem:[#allocation8 + $0x1a0] ss:$8 sps:$4 sm:$0xff]   ;;  %v4853_v21 = vld [vmem:[#allocation8 + $0x1b4] ss:$8 sps:$4 sm:$0xff]  }
 0x1cc   : > { %v2055_v46 = vmax.f32 %v1285_v25, 0.0  ;;  %1774 = vmatpush1.bf16.msra.mxu1 %v4169_v18  ;;  %1622 = vmatprep.mubr.bf16.mxu1 %v5484_v14  ;;  %v4185_v18 = vcombine.low %v403_v26, %v407_v32  ;;  %v4193_v32 = vcombine.low %v411_v62, %v415_v24 }
 0x1cd   : > { %v2262_v48 = vpack.c.bf16 %v2054_v35, %v2046_v34  ;;  %1775 = vmatprep.subr.bf16.mxu1 %v4178_v22  ;;  %v4194_v22 = vcombine.high %v411_v62, %v415_v24  ;;  %v423_v34 = vld [vmem:[#allocation5 + $0x138] sm:$0xff] }
 0x1ce   : > { %v2263_v61 = vpack.c.bf16 %v2055_v46, %v2047_v43  ;;  %v1288_v63 = vpop.f32.mrb[24].mxu1  ;;  %3342 = vmatpush1.bf16.msra.mxu0 %v4845_v33  ;;  %v419_v33 = vld [vmem:[#allocation5 + $0x118] sm:$0xff]  ;;  %v4856_v46 = vld [vmem:[#allocation8 + $0x1c4] ss:$8 sps:$4 sm:$0xff]  }
 0x1cf   : > { %v1289_v19 = vadd.f32 %v1288_v63, %v5683_v6  ;;  %v1290_v23 = vpop.f32.mrb[25].mxu1  ;;  %3343 = vmatprep.subr.bf16.mxu0 %v4850_v40  ;;  %v4851_v35 = vld [vmem:[#allocation8 + $0x1b0] ss:$8 sps:$4 sm:$0xff]   ;;  %v4201_v62 = vcombine.low %v419_v33, %v423_v34 }
 0x1d0   : > { %v1291_v7 = vadd.f32 %v1290_v23, %v5688_v15  ;;  %v1292_v9 = vpop.f32.mrb[26].mxu1  ;;  %3212 = vmatprep.mubr.bf16.mxu0 %v2263_v61  ;;  %1776 = vmatpush1.bf16.msra.mxu1 %v4177_v47  ;;  %v427_v23 = vld [vmem:[#allocation5 + $0x158] sm:$0xff] }
 0x1d1   : > { %v1293_v54 = vadd.f32 %v1292_v9, %v5683_v6  ;;  %v1294_v60 = vpop.f32.mrb[27].mxu1  ;;  %3213 = vmatmul.mubr.bf16.gmra.mrb[20].mxu0 %v2262_v48  ;;  %1777 = vmatprep.subr.bf16.mxu1 %v4186_v53  ;;  %v2062_v40 = vmax.f32 %v1289_v19, 0.0  ;;  %v4202_v53 = vcombine.high %v419_v33, %v423_v34  ;;  %v4854_v19 = vld [vmem:[#allocation8 + $0x1c0] ss:$8 sps:$4 sm:$0xff]  }
 0x1d2   : > { %v1295_v25 = vadd.f32 %v1294_v60, %v5688_v15  ;;  %3344 = vmatpush1.bf16.msra.mxu0 %v4848_v28  ;;  %v2063_v47 = vmax.f32 %v1291_v7, 0.0  ;;  %v431_v28 = vld [vmem:[#allocation5 + $0x178] sm:$0xff] }
 0x1d3   : > { %v2070_v43 = vmax.f32 %v1293_v54, 0.0  ;;  %1623 = vmatmul.mubr.bf16.gmra.mrb[132].mxu1 %v5498_v30  ;;  %3345 = vmatprep.subr.bf16.mxu0 %v4853_v21  ;;  %v4859_v21 = vld [vmem:[#allocation8 + $0x1d4] ss:$8 sps:$4 sm:$0xff]   ;;  %v4209_v34 = vcombine.low %v427_v23, %v431_v28 }
 0x1d4   : > { %v2071_v26 = vmax.f32 %v1295_v25, 0.0  ;;  %1632 = vmatprep.mubr.bf16.mxu1 %v5500_v31  ;;  %1778 = vmatpush1.bf16.msra.mxu1 %v4185_v18 }
 0x1d5   : > { %v2270_v48 = vpack.c.bf16 %v2070_v43, %v2062_v40  ;;  %1779 = vmatprep.subr.bf16.mxu1 %v4194_v22  ;;  %v4210_v22 = vcombine.high %v427_v23, %v431_v28  ;;  %v439_v40 = vld [vmem:[#allocation5 + $0x1b8] sm:$0xff] }
 0x1d6   : > { %v2271_v61 = vpack.c.bf16 %v2071_v26, %v2063_v47  ;;  %v1298_v63 = vpop.f32.mrb[28].mxu1  ;;  %3346 = vmatpush1.bf16.msra.mxu0 %v4851_v35  ;;  %v435_v35 = vld [vmem:[#allocation5 + $0x198] sm:$0xff]  ;;  %v4862_v26 = vld [vmem:[#allocation8 + $0x1e4] ss:$8 sps:$4 sm:$0xff]  }
 0x1d7   : > { %v1299_v9 = vadd.f32 %v1298_v63, %v5683_v6  ;;  %v1300_v54 = vpop.f32.mrb[29].mxu1  ;;  %3347 = vmatprep.subr.bf16.mxu0 %v4856_v46  ;;  %v4857_v43 = vld [vmem:[#allocation8 + $0x1d0] ss:$8 sps:$4 sm:$0xff]   ;;  %v4217_v23 = vcombine.low %v435_v35, %v439_v40 }
 0x1d8   : > { %v1301_v7 = vadd.f32 %v1300_v54, %v5688_v15  ;;  %v1302_v60 = vpop.f32.mrb[30].mxu1  ;;  %3222 = vmatprep.mubr.bf16.mxu0 %v2271_v61  ;;  %1780 = vmatpush1.bf16.msra.mxu1 %v4193_v32  ;;  %v443_v54 = vld [vmem:[#allocation5 + $0x1d8] sm:$0xff] }
 0x1d9   : > { %v1303_v24 = vadd.f32 %v1302_v60, %v5683_v6  ;;  %v1304_v18 = vpop.f32.mrb[31].mxu1  ;;  %3223 = vmatmul.mubr.bf16.gmra.mrb[24].mxu0 %v2270_v48  ;;  %1781 = vmatprep.subr.bf16.mxu1 %v4202_v53  ;;  %v2078_v46 = vmax.f32 %v1299_v9, 0.0  ;;  %v4218_v53 = vcombine.high %v435_v35, %v439_v40  ;;  %v4860_v9 = vld [vmem:[#allocation8 + $0x1e0] ss:$8 sps:$4 sm:$0xff]  }
 0x1da   : > { %v1305_v25 = vadd.f32 %v1304_v18, %v5688_v15  ;;  %3348 = vmatpush1.bf16.msra.mxu0 %v4854_v19  ;;  %v2079_v32 = vmax.f32 %v1301_v7, 0.0  ;;  %v447_v19 = vld [vmem:[#allocation5 + $0x1f8] sm:$0xff] }
 0x1db   : > { %v2086_v47 = vmax.f32 %v1303_v24, 0.0  ;;  %1633 = vmatmul.mubr.bf16.gmra.mrb[136].mxu1 %v5508_v44  ;;  %3349 = vmatprep.subr.bf16.mxu0 %v4859_v21  ;;  %v4865_v21 = vld [vmem:[#allocation8 + $0x1f4] ss:$8 sps:$4 sm:$0xff]   ;;  %v4225_v40 = vcombine.low %v443_v54, %v447_v19 }
 0x1dc   : > { %v2087_v33 = vmax.f32 %v1305_v25, 0.0  ;;  %1642 = vmatprep.mubr.bf16.mxu1 %v5510_v45  ;;  %1782 = vmatpush1.bf16.msra.mxu1 %v4201_v62 }
 0x1dd   : > { %v2278_v48 = vpack.c.bf16 %v2086_v47, %v2078_v46  ;;  %1783 = vmatprep.subr.bf16.mxu1 %v4210_v22  ;;  %v4226_v22 = vcombine.high %v443_v54, %v447_v19  ;;  %v455_v46 = vld [vmem:[#allocation5 + $0x238] sm:$0xff] }
 0x1de   : > { %v2279_v61 = vpack.c.bf16 %v2087_v33, %v2079_v32  ;;  %v1308_v63 = vpop.f32.mrb[32].mxu1  ;;  %3350 = vmatpush1.bf16.msra.mxu0 %v4857_v43  ;;  %v451_v43 = vld [vmem:[#allocation5 + $0x218] sm:$0xff]  ;;  %v4868_v33 = vld [vmem:[#allocation8 + $0x204] ss:$8 sps:$4 sm:$0xff]  }
 0x1df   : > { %v1309_v60 = vadd.f32 %v1308_v63, %v5683_v6  ;;  %v1310_v24 = vpop.f32.mrb[33].mxu1  ;;  %3351 = vmatprep.subr.bf16.mxu0 %v4862_v26  ;;  %v4863_v47 = vld [vmem:[#allocation8 + $0x1f0] ss:$8 sps:$4 sm:$0xff]  }
 0x1e0   : > { %v1311_v7 = vadd.f32 %v1310_v24, %v5688_v15  ;;  %v1312_v18 = vpop.f32.mrb[34].mxu1  ;;  %3232 = vmatprep.mubr.bf16.mxu0 %v2279_v61  ;;  %1784 = vmatpush1.bf16.msra.mxu1 %v4209_v34  ;;  %v459_v24 = vld [vmem:[#allocation5 + $0x258] sm:$0xff] }
 0x1e1   : > { %v1313_v28 = vadd.f32 %v1312_v18, %v5683_v6  ;;  %v1314_v62 = vpop.f32.mrb[35].mxu1  ;;  %3233 = vmatmul.mubr.bf16.gmra.mrb[28].mxu0 %v2278_v48  ;;  %1785 = vmatprep.subr.bf16.mxu1 %v4218_v53  ;;  %v2094_v26 = vmax.f32 %v1309_v60, 0.0  ;;  %v4234_v53 = vcombine.high %v451_v43, %v455_v46 }
 0x1e2   : > { %v1315_v25 = vadd.f32 %v1314_v62, %v5688_v15  ;;  %3352 = vmatpush1.bf16.msra.mxu0 %v4860_v9  ;;  %v2095_v34 = vmax.f32 %v1311_v7, 0.0  ;;  %v463_v9 = vld [vmem:[#allocation5 + $0x278] sm:$0xff] }
 0x1e3   : > { %v2102_v32 = vmax.f32 %v1313_v28, 0.0  ;;  %1643 = vmatmul.mubr.bf16.gmra.mrb[140].mxu1 %v5518_v58  ;;  %3353 = vmatprep.subr.bf16.mxu0 %v4865_v21  ;;  %v4233_v28 = vcombine.low %v451_v43, %v455_v46  ;;  %v4241_v43 = vcombine.low %v459_v24, %v463_v9 }
 0x1e4   : > { %v2103_v35 = vmax.f32 %v1315_v25, 0.0  ;;  %1652 = vmatprep.mubr.bf16.mxu1 %v5520_v59  ;;  %1786 = vmatpush1.bf16.msra.mxu1 %v4217_v23  ;;  %v4242_v23 = vcombine.high %v459_v24, %v463_v9  ;;  %v471_v25 = vld [vmem:[#allocation5 + $0x2b8] sm:$0xff] }
 0x1e5   : > { %v2286_v48 = vpack.c.bf16 %v2102_v32, %v2094_v26  ;;  %1787 = vmatprep.subr.bf16.mxu1 %v4226_v22  ;;  %v467_v22 = vld [vmem:[#allocation5 + $0x298] sm:$0xff] }
 0x1e6   : > { %v2287_v61 = vpack.c.bf16 %v2103_v35, %v2095_v34  ;;  %v1318_v63 = vpop.f32.mrb[36].mxu1  ;;  %3354 = vmatpush1.bf16.msra.mxu0 %v4863_v47  ;;  %v4250_v34 = vcombine.high %v467_v22, %v471_v25 }
 0x1e7   : > { %v1319_v60 = vadd.f32 %v1318_v63, %v5683_v6  ;;  %v1320_v18 = vpop.f32.mrb[37].mxu1  ;;  %3516 = vmatprep.subr.bf16.mxu0 %v4868_v33 }
 0x1e8   : > { %v1321_v21 = vadd.f32 %v1320_v18, %v5688_v15  ;;  %v1322_v7 = vpop.f32.mrb[38].mxu1  ;;  %3242 = vmatprep.mubr.bf16.mxu0 %v2287_v61  ;;  %1788 = vmatpush1.bf16.msra.mxu1 %v4225_v40 }
 0x1e9   : > { %v1323_v54 = vadd.f32 %v1322_v7, %v5683_v6  ;;  %v1324_v19 = vpop.f32.mrb[39].mxu1  ;;  %3243 = vmatmul.mubr.bf16.gmra.mrb[32].mxu0 %v2286_v48  ;;  %1789 = vmatprep.subr.bf16.mxu1 %v4234_v53  ;;  %v2110_v47 = vmax.f32 %v1319_v60, 0.0  ;;  %v475_v48 = vld [vmem:[#allocation5 + $0x2d8] sm:$0xff] }
 0x1ea   : > { %v1325_v62 = vadd.f32 %v1324_v19, %v5688_v15  ;;  %v2111_v32 = vmax.f32 %v1321_v21, 0.0  ;;  %v479_v53 = vld [vmem:[#allocation5 + $0x2f8] sm:$0xff]  ;;  %v4249_v21 = vcombine.low %v467_v22, %v471_v25 }
 0x1eb   : > { %v2118_v26 = vmax.f32 %v1323_v54, 0.0  ;;  %1653 = vmatmul.mubr.bf16.gmra.mrb[144].mxu1 %v5528_v10  ;;  %v4258_v24 = vcombine.high %v475_v48, %v479_v53  ;;  %v483_v54 = vld [vmem:[#allocation5 + $0x318] sm:$0xff]  ;;  %v4257_v22 = vcombine.low %v475_v48, %v479_v53 }
 0x1ec   : > { %v2119_v33 = vmax.f32 %v1325_v62, 0.0  ;;  %1662 = vmatprep.mubr.bf16.mxu1 %v5530_v11  ;;  %1790 = vmatpush1.bf16.msra.mxu1 %v4233_v28  ;;  %v487_v19 = vld [vmem:[#allocation5 + $0x338] sm:$0xff] }
 0x1ed   : > { %v2294_v46 = vpack.c.bf16 %v2118_v26, %v2110_v47  ;;  %1791 = vmatprep.subr.bf16.mxu1 %v4242_v23 }
 0x1ee   : > { %v2295_v35 = vpack.c.bf16 %v2119_v33, %v2111_v32  ;;  %v1328_v40 = vpop.f32.mrb[40].mxu1  ;;  %v4266_v32 = vcombine.high %v483_v54, %v487_v19 }
 0x1ef   : > { %v1329_v61 = vadd.f32 %v1328_v40, %v5683_v6  ;;  %v1330_v63 = vpop.f32.mrb[41].mxu1 }
 0x1f0   : > { %v1331_v60 = vadd.f32 %v1330_v63, %v5688_v15  ;;  %v1332_v18 = vpop.f32.mrb[42].mxu1  ;;  %3252 = vmatprep.mubr.bf16.mxu0 %v2295_v35  ;;  %1792 = vmatpush1.bf16.msra.mxu1 %v4241_v43 }
 0x1f1   : > { %v1333_v7 = vadd.f32 %v1332_v18, %v5683_v6  ;;  %v1334_v28 = vpop.f32.mrb[43].mxu1  ;;  %3253 = vmatmul.mubr.bf16.gmra.mrb[36].mxu0 %v2294_v46  ;;  %1793 = vmatprep.subr.bf16.mxu1 %v4250_v34  ;;  %v2126_v23 = vmax.f32 %v1329_v61, 0.0  ;;  %v491_v46 = vld [vmem:[#allocation5 + $0x358] sm:$0xff] }
 0x1f2   : > { %v1335_v9 = vadd.f32 %v1334_v28, %v5688_v15  ;;  %v2127_v47 = vmax.f32 %v1331_v60, 0.0  ;;  %v495_v34 = vld [vmem:[#allocation5 + $0x378] sm:$0xff]  ;;  %v4265_v60 = vcombine.low %v483_v54, %v487_v19 }
 0x1f3   : > { %v2134_v62 = vmax.f32 %v1333_v7, 0.0  ;;  %1663 = vmatmul.mubr.bf16.gmra.mrb[148].mxu1 %v5538_v36  ;;  %v4274_v48 = vcombine.high %v491_v46, %v495_v34  ;;  %v499_v7 = vld [vmem:[#allocation5 + $0x398] sm:$0xff]  ;;  %v4273_v54 = vcombine.low %v491_v46, %v495_v34 }
 0x1f4   : > { %v2135_v26 = vmax.f32 %v1335_v9, 0.0  ;;  %1672 = vmatprep.mubr.bf16.mxu1 %v5540_v37  ;;  %1794 = vmatpush1.bf16.msra.mxu1 %v4249_v21  ;;  %v503_v28 = vld [vmem:[#allocation5 + $0x3b8] sm:$0xff] }
 0x1f5   : > { %v2302_v25 = vpack.c.bf16 %v2134_v62, %v2126_v23  ;;  %1795 = vmatprep.subr.bf16.mxu1 %v4258_v24 }
 0x1f6   : > { %v2303_v33 = vpack.c.bf16 %v2135_v26, %v2127_v47  ;;  %v1338_v43 = vpop.f32.mrb[44].mxu1  ;;  %v4282_v47 = vcombine.high %v499_v7, %v503_v28 }
 0x1f7   : > { %v1339_v35 = vadd.f32 %v1338_v43, %v5683_v6  ;;  %v1340_v40 = vpop.f32.mrb[45].mxu1 }
 0x1f8   : > { %v1341_v61 = vadd.f32 %v1340_v40, %v5688_v15  ;;  %v1342_v63 = vpop.f32.mrb[46].mxu1  ;;  %3262 = vmatprep.mubr.bf16.mxu0 %v2303_v33  ;;  %1796 = vmatpush1.bf16.msra.mxu1 %v4257_v22 }
 0x1f9   : > { %v1343_v18 = vadd.f32 %v1342_v63, %v5683_v6  ;;  %v1344_v21 = vpop.f32.mrb[47].mxu1  ;;  %3263 = vmatmul.mubr.bf16.gmra.mrb[40].mxu0 %v2302_v25  ;;  %1797 = vmatprep.subr.bf16.mxu1 %v4266_v32  ;;  %v2142_v24 = vmax.f32 %v1339_v35, 0.0  ;;  %v507_v25 = vld [vmem:[#allocation5 + $0x3d8] sm:$0xff] }
 0x1fa   : > { %v1345_v53 = vadd.f32 %v1344_v21, %v5688_v15  ;;  %v2143_v23 = vmax.f32 %v1341_v61, 0.0  ;;  %v511_v32 = vld [vmem:[#allocation5 + $0x3f8] sm:$0xff]  ;;  %v4281_v61 = vcombine.low %v499_v7, %v503_v28 }
 0x1fb   : > { %v2150_v9 = vmax.f32 %v1343_v18, 0.0  ;;  %1673 = vmatmul.mubr.bf16.gmra.mrb[152].mxu1 %v5548_v56  ;;  %v4290_v46 = vcombine.high %v507_v25, %v511_v32 }
 0x1fc   : > { %v2151_v62 = vmax.f32 %v1345_v53, 0.0  ;;  %1682 = vmatprep.mubr.bf16.mxu1 %v5550_v57  ;;  %1798 = vmatpush1.bf16.msra.mxu1 %v4265_v60 }
 0x1fd   : > { %v2310_v19 = vpack.c.bf16 %v2150_v9, %v2142_v24  ;;  %1799 = vmatprep.subr.bf16.mxu1 %v4274_v48  ;;  %v4289_v24 = vcombine.low %v507_v25, %v511_v32 }
 0x1fe   : > { %v2311_v26 = vpack.c.bf16 %v2151_v62, %v2143_v23  ;;  %v1348_v22 = vpop.f32.mrb[48].mxu1 }
 0x1ff   : > { %v1349_v33 = vadd.f32 %v1348_v22, %v5683_v6  ;;  %v1350_v43 = vpop.f32.mrb[49].mxu1 }
 0x200   : > { %v1351_v35 = vadd.f32 %v1350_v43, %v5688_v15  ;;  %v1352_v40 = vpop.f32.mrb[50].mxu1  ;;  %3272 = vmatprep.mubr.bf16.mxu0 %v2311_v26  ;;  %1800 = vmatpush1.bf16.msra.mxu1 %v4273_v54 }
 0x201   : > { %v1353_v63 = vadd.f32 %v1352_v40, %v5683_v6  ;;  %v1354_v60 = vpop.f32.mrb[51].mxu1  ;;  %3273 = vmatmul.mubr.bf16.gmra.mrb[44].mxu0 %v2310_v19  ;;  %1801 = vmatprep.subr.bf16.mxu1 %v4282_v47  ;;  %v2158_v18 = vmax.f32 %v1349_v33, 0.0 }
 0x202   : > { %v1355_v34 = vadd.f32 %v1354_v60, %v5688_v15  ;;  %v2159_v48 = vmax.f32 %v1351_v35, 0.0 }
 0x203   : > { %v2166_v21 = vmax.f32 %v1353_v63, 0.0  ;;  %1683 = vmatmul.mubr.bf16.gmra.mrb[156].mxu1 %v5558_v16 }
 0x204   : > { %v2167_v53 = vmax.f32 %v1355_v34, 0.0  ;;  %1692 = vmatprep.mubr.bf16.mxu1 %v5560_v17  ;;  %1802 = vmatpush1.bf16.msra.mxu1 %v4281_v61 }
 0x205   : > { %v2318_v9 = vpack.c.bf16 %v2166_v21, %v2158_v18  ;;  %1803 = vmatprep.subr.bf16.mxu1 %v4290_v46 }
 0x206   : > { %v2319_v7 = vpack.c.bf16 %v2167_v53, %v2159_v48  ;;  %v1358_v28 = vpop.f32.mrb[52].mxu1 }
 0x207   : > { %v1359_v23 = vadd.f32 %v1358_v28, %v5683_v6  ;;  %v1360_v62 = vpop.f32.mrb[53].mxu1 }
 0x208   : > { %v1361_v54 = vadd.f32 %v1360_v62, %v5688_v15  ;;  %v1362_v19 = vpop.f32.mrb[54].mxu1  ;;  %3282 = vmatprep.mubr.bf16.mxu0 %v2319_v7  ;;  %1804 = vmatpush1.bf16.msra.mxu1 %v4289_v24 }
 0x209   : > { %v1363_v47 = vadd.f32 %v1362_v19, %v5683_v6  ;;  %v1364_v26 = vpop.f32.mrb[55].mxu1  ;;  %3283 = vmatmul.mubr.bf16.gmra.mrb[48].mxu0 %v2318_v9  ;;  %v2174_v33 = vmax.f32 %v1359_v23, 0.0 }
 0x20a   : > { %v1365_v22 = vadd.f32 %v1364_v26, %v5688_v15  ;;  %v2175_v32 = vmax.f32 %v1361_v54, 0.0 }
 0x20b   : > { %v2182_v25 = vmax.f32 %v1363_v47, 0.0  ;;  %1693 = vmatmul.mubr.bf16.gmra.mrb[160].mxu1 %v5570_v38  ;;  %v524_v47 = vsub.s32 2, %v5672_v2 }
 0x20c   : > { %v2183_v43 = vmax.f32 %v1365_v22, 0.0  ;;  %1702 = vmatprep.mubr.bf16.mxu1 %v5572_v39 }
 0x20d   : > { %v2326_v35 = vpack.c.bf16 %v2182_v25, %v2174_v33  ;;  %v528_v33 = vsub.s32 3, %v5672_v2 }
 0x20e   : > { %v2327_v40 = vpack.c.bf16 %v2183_v43, %v2175_v32  ;;  %v1368_v61 = vpop.f32.mrb[56].mxu1 }
 0x20f   : > { %v1369_v63 = vadd.f32 %v1368_v61, %v5683_v6  ;;  %v1370_v60 = vpop.f32.mrb[57].mxu1  ;;  %v5792_v61 = vrot.slane %v5676_v4, %v524_v47 }
 0x210   : > { %v1371_v46 = vadd.f32 %v1370_v60, %v5688_v15  ;;  %v1372_v34 = vpop.f32.mrb[58].mxu1  ;;  %3292 = vmatprep.mubr.bf16.mxu0 %v2327_v40 }
 0x211   : > { %v1373_v18 = vadd.f32 %v1372_v34, %v5683_v6  ;;  %v1374_v21 = vpop.f32.mrb[59].mxu1  ;;  %3293 = vmatmul.mubr.bf16.gmra.mrb[52].mxu0 %v2326_v35  ;;  %v2190_v53 = vmax.f32 %v1369_v63, 0.0 }
 0x212   : > { %v1375_v48 = vadd.f32 %v1374_v21, %v5688_v15  ;;  %v2191_v9 = vmax.f32 %v1371_v46, 0.0  ;;  %v5795_v46 = vrot.slane %v5676_v4, %v528_v33 }
 0x213   : > { %v2198_v24 = vmax.f32 %v1373_v18, 0.0  ;;  %1703 = vmatmul.mubr.bf16.gmra.mrb[164].mxu1 %v5580_v50 }
 0x214   : > { %v2199_v7 = vmax.f32 %v1375_v48, 0.0  ;;  %1712 = vmatprep.mubr.bf16.mxu1 %v5582_v51 }
 0x215   : > { %v2334_v28 = vpack.c.bf16 %v2198_v24, %v2190_v53 }
 0x216   : > { %v2335_v23 = vpack.c.bf16 %v2199_v7, %v2191_v9  ;;  %v1378_v62 = vpop.f32.mrb[60].mxu1 }
 0x217   : > { %v1379_v54 = vadd.f32 %v1378_v62, %v5683_v6  ;;  %v1380_v19 = vpop.f32.mrb[61].mxu1 }
 0x218   : > { %v1381_v26 = vadd.f32 %v1380_v19, %v5688_v15  ;;  %v1382_v22 = vpop.f32.mrb[62].mxu1  ;;  %3302 = vmatprep.mubr.bf16.mxu0 %v2335_v23 }
 0x219   : > { %v1383_v25 = vadd.f32 %v1382_v22, %v5683_v6  ;;  %v1384_v32 = vpop.f32.mrb[63].mxu1  ;;  %3303 = vmatmul.mubr.bf16.gmra.mrb[56].mxu0 %v2334_v28  ;;  %v2206_v35 = vmax.f32 %v1379_v54, 0.0 }
 0x21a   : > { %v1385_v43 = vadd.f32 %v1384_v32, %v5688_v15  ;;  %v2207_v63 = vmax.f32 %v1381_v26, 0.0  ;;  %v4866_v26 = vld [vmem:[#allocation8 + $0x200] ss:$8 sps:$4 sm:$0xff]  }
 0x21b   : > { %v2214_v40 = vmax.f32 %v1383_v25, 0.0  ;;  %1713 = vmatmul.mubr.bf16.gmra.mrb[168].mxu1 %v5590_v0  ;;  %v4871_v25 = vld [vmem:[#allocation8 + $0x214] ss:$8 sps:$4 sm:$0xff]  }
 0x21c   : > { %v2215_v60 = vmax.f32 %v1385_v43, 0.0  ;;  %1722 = vmatprep.mubr.bf16.mxu1 %v5592_v1 }
 0x21d   : > { %v2342_v34 = vpack.c.bf16 %v2214_v40, %v2206_v35 }
 0x21e   : > { %v2343_v6 = vpack.c.bf16 %v2215_v60, %v2207_v63  ;;  %v1421_v18 = vpop.f32.mrb[64].mxu1  ;;  %v4869_v60 = vld [vmem:[#allocation8 + $0x210] ss:$8 sps:$4 sm:$0xff]  }
 0x21f   : > { %v1422_v21 = vadd.f32 %v1421_v18, %v5792_v61  ;;  %v1423_v15 = vpop.f32.mrb[65].mxu1  ;;  %v4874_v18 = vld [vmem:[#allocation8 + $0x224] ss:$8 sps:$4 sm:$0xff]  }
 0x220   : > { %v1424_v48 = vadd.f32 %v1423_v15, %v5795_v46  ;;  %v1425_v53 = vpop.f32.mrb[66].mxu1  ;;  %3312 = vmatprep.mubr.bf16.mxu0 %v2343_v6 }
 0x221   : > { %v1426_v24 = vadd.f32 %v1425_v53, %v5792_v61  ;;  %v1427_v9 = vpop.f32.mrb[67].mxu1  ;;  %3313 = vmatmul.mubr.bf16.gmra.mrb[60].mxu0 %v2342_v34  ;;  %v1968_v4 = vmax.f32 %v1422_v21, 0.0 }
 0x222   : > { %v1428_v7 = vadd.f32 %v1427_v9, %v5795_v46  ;;  %v1969_v23 = vmax.f32 %v1424_v48, 0.0  ;;  %v4872_v9 = vld [vmem:[#allocation8 + $0x220] ss:$8 sps:$4 sm:$0xff]  }
 0x223   : > { %v1976_v28 = vmax.f32 %v1426_v24, 0.0  ;;  %1723 = vmatmul.mubr.bf16.gmra.mrb[172].mxu1 %v5600_v8 }
 0x224   : > { %v1977_v62 = vmax.f32 %v1428_v7, 0.0  ;;  %1732 = vmatprep.mubr.bf16.mxu1 %v5602_v13 }
 0x225   : > { %v2224_v54 = vpack.c.bf16 %v1976_v28, %v1968_v4  ;;  %v4877_v28 = vld [vmem:[#allocation8 + $0x234] ss:$8 sps:$4 sm:$0xff]  }
 0x226   : > { %v2225_v19 = vpack.c.bf16 %v1977_v62, %v1969_v23  ;;  %v1431_v47 = vpop.f32.mrb[68].mxu1 }
 0x227   : > { %v1432_v22 = vadd.f32 %v1431_v47, %v5792_v61  ;;  %v1433_v33 = vpop.f32.mrb[69].mxu1 }
 0x228   : > { %v1434_v32 = vadd.f32 %v1433_v33, %v5795_v46  ;;  %v1435_v43 = vpop.f32.mrb[70].mxu1  ;;  %3355 = vmatprep.mubr.bf16.mxu0 %v2225_v19 }
 0x229   : > { %v1436_v35 = vadd.f32 %v1435_v43, %v5792_v61  ;;  %v1437_v40 = vpop.f32.mrb[71].mxu1  ;;  %3356 = vmatmul.mubr.bf16.vlgmr.msra.gmra.mrb[0].mxu0 %v2224_v54  ;;  %v1984_v34 = vmax.f32 %v1432_v22, 0.0 }
 0x22a   : > { %v1438_v63 = vadd.f32 %v1437_v40, %v5795_v46  ;;  %3517 = vmatpush1.bf16.msra.mxu0 %v4866_v26  ;;  %v1985_v21 = vmax.f32 %v1434_v32, 0.0  ;;  %v4875_v26 = vld [vmem:[#allocation8 + $0x230] ss:$8 sps:$4 sm:$0xff]  }
 0x22b   : > { %v1992_v6 = vmax.f32 %v1436_v35, 0.0  ;;  %1733 = vmatmul.mubr.bf16.gmra.mrb[176].mxu1 %v5610_v27  ;;  %3518 = vmatprep.subr.bf16.mxu0 %v4871_v25  ;;  %v4880_v25 = vld [vmem:[#allocation8 + $0x244] ss:$8 sps:$4 sm:$0xff]  }
 0x22c   : > { %v1993_v15 = vmax.f32 %v1438_v63, 0.0  ;;  %1742 = vmatprep.mubr.bf16.mxu1 %v5612_v29 }
 0x22d   : > { %v2232_v48 = vpack.c.bf16 %v1992_v6, %v1984_v34 }
 0x22e   : > { %v2233_v53 = vpack.c.bf16 %v1993_v15, %v1985_v21  ;;  %v1441_v24 = vpop.f32.mrb[72].mxu1  ;;  %3519 = vmatpush1.bf16.msra.mxu0 %v4869_v60  ;;  %v4878_v60 = vld [vmem:[#allocation8 + $0x240] ss:$8 sps:$4 sm:$0xff]  }
 0x22f   : > { %v1442_v7 = vadd.f32 %v1441_v24, %v5792_v61  ;;  %v1443_v4 = vpop.f32.mrb[73].mxu1  ;;  %3520 = vmatprep.subr.bf16.mxu0 %v4874_v18  ;;  %v4883_v18 = vld [vmem:[#allocation8 + $0x254] ss:$8 sps:$4 sm:$0xff]  }
 0x230   : > { %v1444_v23 = vadd.f32 %v1443_v4, %v5795_v46  ;;  %v1445_v62 = vpop.f32.mrb[74].mxu1  ;;  %3365 = vmatprep.mubr.bf16.mxu0 %v2233_v53 }
 0x231   : > { %v1446_v54 = vadd.f32 %v1445_v62, %v5792_v61  ;;  %v1447_v19 = vpop.f32.mrb[75].mxu1  ;;  %3366 = vmatmul.mubr.bf16.gmra.mrb[4].mxu0 %v2232_v48  ;;  %v2000_v22 = vmax.f32 %v1442_v7, 0.0 }
 0x232   : > { %v1448_v47 = vadd.f32 %v1447_v19, %v5795_v46  ;;  %3521 = vmatpush1.bf16.msra.mxu0 %v4872_v9  ;;  %v2001_v32 = vmax.f32 %v1444_v23, 0.0  ;;  %v4881_v9 = vld [vmem:[#allocation8 + $0x250] ss:$8 sps:$4 sm:$0xff]  }
 0x233   : > { %v2008_v33 = vmax.f32 %v1446_v54, 0.0  ;;  %1743 = vmatmul.mubr.bf16.gmra.mrb[180].mxu1 %v5620_v41  ;;  %3522 = vmatprep.subr.bf16.mxu0 %v4877_v28  ;;  %v4886_v28 = vld [vmem:[#allocation8 + $0x264] ss:$8 sps:$4 sm:$0xff]  }
 0x234   : > { %v2009_v43 = vmax.f32 %v1448_v47, 0.0  ;;  %1752 = vmatprep.mubr.bf16.mxu1 %v5622_v42 }
 0x235   : > { %v2240_v35 = vpack.c.bf16 %v2008_v33, %v2000_v22 }
 0x236   : > { %v2241_v40 = vpack.c.bf16 %v2009_v43, %v2001_v32  ;;  %v1451_v63 = vpop.f32.mrb[76].mxu1  ;;  %3523 = vmatpush1.bf16.msra.mxu0 %v4875_v26  ;;  %v4884_v26 = vld [vmem:[#allocation8 + $0x260] ss:$8 sps:$4 sm:$0xff]  }
 0x237   : > { %v1452_v34 = vadd.f32 %v1451_v63, %v5792_v61  ;;  %v1453_v6 = vpop.f32.mrb[77].mxu1  ;;  %3524 = vmatprep.subr.bf16.mxu0 %v4880_v25  ;;  %v4889_v25 = vld [vmem:[#allocation8 + $0x274] ss:$8 sps:$4 sm:$0xff]  }
 0x238   : > { %v1454_v21 = vadd.f32 %v1453_v6, %v5795_v46  ;;  %v1455_v15 = vpop.f32.mrb[78].mxu1  ;;  %3375 = vmatprep.mubr.bf16.mxu0 %v2241_v40 }
 0x239   : > { %v1456_v48 = vadd.f32 %v1455_v15, %v5792_v61  ;;  %v1457_v53 = vpop.f32.mrb[79].mxu1  ;;  %3376 = vmatmul.mubr.bf16.gmra.mrb[8].mxu0 %v2240_v35  ;;  %v2016_v7 = vmax.f32 %v1452_v34, 0.0 }
 0x23a   : > { %v1458_v24 = vadd.f32 %v1457_v53, %v5795_v46  ;;  %3525 = vmatpush1.bf16.msra.mxu0 %v4878_v60  ;;  %v2017_v23 = vmax.f32 %v1454_v21, 0.0  ;;  %v4887_v60 = vld [vmem:[#allocation8 + $0x270] ss:$8 sps:$4 sm:$0xff]  }
 0x23b   : > { %v2024_v4 = vmax.f32 %v1456_v48, 0.0  ;;  %1753 = vmatmul.mubr.bf16.gmra.mrb[184].mxu1 %v5630_v49  ;;  %3526 = vmatprep.subr.bf16.mxu0 %v4883_v18  ;;  %v4892_v18 = vld [vmem:[#allocation8 + $0x284] ss:$8 sps:$4 sm:$0xff]  }
 0x23c   : > { %v2025_v62 = vmax.f32 %v1458_v24, 0.0  ;;  %1762 = vmatprep.mubr.bf16.mxu1 %v5632_v52 }
 0x23d   : > { %v2248_v54 = vpack.c.bf16 %v2024_v4, %v2016_v7 }
 0x23e   : > { %v2249_v19 = vpack.c.bf16 %v2025_v62, %v2017_v23  ;;  %v1461_v47 = vpop.f32.mrb[80].mxu1  ;;  %3527 = vmatpush1.bf16.msra.mxu0 %v4881_v9  ;;  %v4890_v9 = vld [vmem:[#allocation8 + $0x280] ss:$8 sps:$4 sm:$0xff]  }
 0x23f   : > { %v1462_v22 = vadd.f32 %v1461_v47, %v5792_v61  ;;  %v1463_v33 = vpop.f32.mrb[81].mxu1  ;;  %3528 = vmatprep.subr.bf16.mxu0 %v4886_v28  ;;  %v4895_v28 = vld [vmem:[#allocation8 + $0x294] ss:$8 sps:$4 sm:$0xff]   ;;  %v4893_v47 = vld [vmem:[#allocation8 + $0x290] ss:$8 sps:$4 sm:$0xff]  }
 0x240   : > { %v1464_v32 = vadd.f32 %v1463_v33, %v5795_v46  ;;  %v1465_v43 = vpop.f32.mrb[82].mxu1  ;;  %3385 = vmatprep.mubr.bf16.mxu0 %v2249_v19  ;;  %v4898_v33 = vld [vmem:[#allocation8 + $0x2a4] ss:$8 sps:$4 sm:$0xff]  }
 0x241   : > { %v1466_v35 = vadd.f32 %v1465_v43, %v5792_v61  ;;  %v1467_v40 = vpop.f32.mrb[83].mxu1  ;;  %3386 = vmatmul.mubr.bf16.gmra.mrb[12].mxu0 %v2248_v54  ;;  %v2032_v34 = vmax.f32 %v1462_v22, 0.0 }
 0x242   : > { %v1468_v63 = vadd.f32 %v1467_v40, %v5795_v46  ;;  %3529 = vmatpush1.bf16.msra.mxu0 %v4884_v26  ;;  %v2033_v21 = vmax.f32 %v1464_v32, 0.0 }
 0x243   : > { %v2040_v6 = vmax.f32 %v1466_v35, 0.0  ;;  %1763 = vmatmul.mubr.bf16.gmra.mrb[188].mxu1 %v5638_v55  ;;  %3530 = vmatprep.subr.bf16.mxu0 %v4889_v25 }
 0x244   : > { %v2041_v15 = vmax.f32 %v1468_v63, 0.0  ;;  %1805 = vmatprep.mubr.bf16.mxu1 %v5475_v20  ;;  %v4896_v63 = vld [vmem:[#allocation8 + $0x2a0] ss:$8 sps:$4 sm:$0xff]  }
 0x245   : > { %v2256_v48 = vpack.c.bf16 %v2040_v6, %v2032_v34  ;;  %v4901_v6 = vld [vmem:[#allocation8 + $0x2b4] ss:$8 sps:$4 sm:$0xff]  }
 0x246   : > { %v2257_v53 = vpack.c.bf16 %v2041_v15, %v2033_v21  ;;  %v1471_v24 = vpop.f32.mrb[84].mxu1  ;;  %3531 = vmatpush1.bf16.msra.mxu0 %v4887_v60 }
 0x247   : > { %v1472_v7 = vadd.f32 %v1471_v24, %v5792_v61  ;;  %v1473_v4 = vpop.f32.mrb[85].mxu1  ;;  %3532 = vmatprep.subr.bf16.mxu0 %v4892_v18 }
 0x248   : > { %v1474_v23 = vadd.f32 %v1473_v4, %v5795_v46  ;;  %v1475_v62 = vpop.f32.mrb[86].mxu1  ;;  %3395 = vmatprep.mubr.bf16.mxu0 %v2257_v53 }
 0x249   : > { %v1476_v54 = vadd.f32 %v1475_v62, %v5792_v61  ;;  %v1477_v19 = vpop.f32.mrb[87].mxu1  ;;  %3396 = vmatmul.mubr.bf16.gmra.mrb[16].mxu0 %v2256_v48  ;;  %v2048_v26 = vmax.f32 %v1472_v7, 0.0  ;;  %v4899_v48 = vld [vmem:[#allocation8 + $0x2b0] ss:$8 sps:$4 sm:$0xff]  }
 0x24a   : > { %v1478_v20 = vadd.f32 %v1477_v19, %v5795_v46  ;;  %3533 = vmatpush1.bf16.msra.mxu0 %v4890_v9  ;;  %v2049_v25 = vmax.f32 %v1474_v23, 0.0  ;;  %v4904_v9 = vld [vmem:[#allocation8 + $0x2c4] ss:$8 sps:$4 sm:$0xff]  }
 0x24b   : > { %v2056_v22 = vmax.f32 %v1476_v54, 0.0  ;;  %1806 = vmatmul.mubr.bf16.vlgmr.msra.gmra.mrb[192].mxu1 %v5482_v12  ;;  %3534 = vmatprep.subr.bf16.mxu0 %v4895_v28  ;;  %v4902_v54 = vld [vmem:[#allocation8 + $0x2c0] ss:$8 sps:$4 sm:$0xff]  }
 0x24c   : > { %v2057_v32 = vmax.f32 %v1478_v20, 0.0  ;;  %1815 = vmatprep.mubr.bf16.mxu1 %v5484_v14 }
 0x24d   : > { %v2264_v43 = vpack.c.bf16 %v2056_v22, %v2048_v26 }
 0x24e   : > { %v2265_v35 = vpack.c.bf16 %v2057_v32, %v2049_v25  ;;  %v1481_v40 = vpop.f32.mrb[88].mxu1  ;;  %3535 = vmatpush1.bf16.msra.mxu0 %v4893_v47  ;;  %v4907_v47 = vld [vmem:[#allocation8 + $0x2d4] ss:$8 sps:$4 sm:$0xff]   ;;  %v4905_v25 = vld [vmem:[#allocation8 + $0x2d0] ss:$8 sps:$4 sm:$0xff]  }
 0x24f   : > { %v1482_v60 = vadd.f32 %v1481_v40, %v5792_v61  ;;  %v1483_v34 = vpop.f32.mrb[89].mxu1  ;;  %3536 = vmatprep.subr.bf16.mxu0 %v4898_v33 }
 0x250   : > { %v1484_v18 = vadd.f32 %v1483_v34, %v5795_v46  ;;  %v1485_v21 = vpop.f32.mrb[90].mxu1  ;;  %3405 = vmatprep.mubr.bf16.mxu0 %v2265_v35  ;;  %v4910_v35 = vld [vmem:[#allocation8 + $0x2e4] ss:$8 sps:$4 sm:$0xff]  }
 0x251   : > { %v1486_v12 = vadd.f32 %v1485_v21, %v5792_v61  ;;  %v1487_v15 = vpop.f32.mrb[91].mxu1  ;;  %3406 = vmatmul.mubr.bf16.gmra.mrb[20].mxu0 %v2264_v43  ;;  %v2064_v53 = vmax.f32 %v1482_v60, 0.0 }
 0x252   : > { %v1488_v14 = vadd.f32 %v1487_v15, %v5795_v46  ;;  %3537 = vmatpush1.bf16.msra.mxu0 %v4896_v63  ;;  %v2065_v7 = vmax.f32 %v1484_v18, 0.0  ;;  %v4908_v18 = vld [vmem:[#allocation8 + $0x2e0] ss:$8 sps:$4 sm:$0xff]   ;;  %v4913_v15 = vld [vmem:[#allocation8 + $0x2f4] ss:$8 sps:$4 sm:$0xff]  }
 0x253   : > { %v2072_v24 = vmax.f32 %v1486_v12, 0.0  ;;  %1816 = vmatmul.mubr.bf16.gmra.mrb[196].mxu1 %v5498_v30  ;;  %3538 = vmatprep.subr.bf16.mxu0 %v4901_v6 }
 0x254   : > { %v2073_v4 = vmax.f32 %v1488_v14, 0.0  ;;  %1825 = vmatprep.mubr.bf16.mxu1 %v5500_v31 }
 0x255   : > { %v2272_v28 = vpack.c.bf16 %v2072_v24, %v2064_v53  ;;  %v4911_v24 = vld [vmem:[#allocation8 + $0x2f0] ss:$8 sps:$4 sm:$0xff]  }
 0x256   : > { %v2273_v23 = vpack.c.bf16 %v2073_v4, %v2065_v7  ;;  %v1491_v62 = vpop.f32.mrb[92].mxu1  ;;  %3539 = vmatpush1.bf16.msra.mxu0 %v4899_v48  ;;  %v4916_v4 = vld [vmem:[#allocation8 + $0x304] ss:$8 sps:$4 sm:$0xff]  }
 0x257   : > { %v1492_v19 = vadd.f32 %v1491_v62, %v5792_v61  ;;  %v1493_v20 = vpop.f32.mrb[93].mxu1  ;;  %3540 = vmatprep.subr.bf16.mxu0 %v4904_v9 }
 0x258   : > { %v1494_v26 = vadd.f32 %v1493_v20, %v5795_v46  ;;  %v1495_v22 = vpop.f32.mrb[94].mxu1  ;;  %3415 = vmatprep.mubr.bf16.mxu0 %v2273_v23 }
 0x259   : > { %v1496_v30 = vadd.f32 %v1495_v22, %v5792_v61  ;;  %v1497_v33 = vpop.f32.mrb[95].mxu1  ;;  %3416 = vmatmul.mubr.bf16.gmra.mrb[24].mxu0 %v2272_v28  ;;  %v2080_v32 = vmax.f32 %v1492_v19, 0.0 }
 0x25a   : > { %v1498_v31 = vadd.f32 %v1497_v33, %v5795_v46  ;;  %3541 = vmatpush1.bf16.msra.mxu0 %v4902_v54  ;;  %v2081_v40 = vmax.f32 %v1494_v26, 0.0 }
 0x25b   : > { %v2088_v43 = vmax.f32 %v1496_v30, 0.0  ;;  %1826 = vmatmul.mubr.bf16.gmra.mrb[200].mxu1 %v5508_v44  ;;  %3542 = vmatprep.subr.bf16.mxu0 %v4907_v47 }
 0x25c   : > { %v2089_v63 = vmax.f32 %v1498_v31, 0.0  ;;  %1835 = vmatprep.mubr.bf16.mxu1 %v5510_v45 }
 0x25d   : > { %v2280_v60 = vpack.c.bf16 %v2088_v43, %v2080_v32 }
 0x25e   : > { %v2281_v34 = vpack.c.bf16 %v2089_v63, %v2081_v40  ;;  %v1501_v6 = vpop.f32.mrb[96].mxu1  ;;  %3543 = vmatpush1.bf16.msra.mxu0 %v4905_v25 }
 0x25f   : > { %v1502_v21 = vadd.f32 %v1501_v6, %v5792_v61  ;;  %v1503_v12 = vpop.f32.mrb[97].mxu1  ;;  %3544 = vmatprep.subr.bf16.mxu0 %v4910_v35 }
 0x260   : > { %v1504_v14 = vadd.f32 %v1503_v12, %v5795_v46  ;;  %v1505_v48 = vpop.f32.mrb[98].mxu1  ;;  %3425 = vmatprep.mubr.bf16.mxu0 %v2281_v34 }
 0x261   : > { %v1506_v44 = vadd.f32 %v1505_v48, %v5792_v61  ;;  %v1507_v53 = vpop.f32.mrb[99].mxu1  ;;  %3426 = vmatmul.mubr.bf16.gmra.mrb[28].mxu0 %v2280_v60  ;;  %v2096_v9 = vmax.f32 %v1502_v21, 0.0 }
 0x262   : > { %v1508_v45 = vadd.f32 %v1507_v53, %v5795_v46  ;;  %3545 = vmatpush1.bf16.msra.mxu0 %v4908_v18  ;;  %v2097_v28 = vmax.f32 %v1504_v14, 0.0 }
 0x263   : > { %v2104_v7 = vmax.f32 %v1506_v44, 0.0  ;;  %1836 = vmatmul.mubr.bf16.gmra.mrb[204].mxu1 %v5518_v58  ;;  %3546 = vmatprep.subr.bf16.mxu0 %v4913_v15 }
 0x264   : > { %v2105_v23 = vmax.f32 %v1508_v45, 0.0  ;;  %1845 = vmatprep.mubr.bf16.mxu1 %v5520_v59 }
 0x265   : > { %v2288_v62 = vpack.c.bf16 %v2104_v7, %v2096_v9 }
 0x266   : > { %v2289_v54 = vpack.c.bf16 %v2105_v23, %v2097_v28  ;;  %v1511_v19 = vpop.f32.mrb[100].mxu1  ;;  %3547 = vmatpush1.bf16.msra.mxu0 %v4911_v24 }
 0x267   : > { %v1512_v20 = vadd.f32 %v1511_v19, %v5792_v61  ;;  %v1513_v47 = vpop.f32.mrb[101].mxu1  ;;  %3709 = vmatprep.subr.bf16.mxu0 %v4916_v4 }
 0x268   : > { %v1514_v26 = vadd.f32 %v1513_v47, %v5795_v46  ;;  %v1515_v22 = vpop.f32.mrb[102].mxu1  ;;  %3435 = vmatprep.mubr.bf16.mxu0 %v2289_v54 }
 0x269   : > { %v1516_v58 = vadd.f32 %v1515_v22, %v5792_v61  ;;  %v1517_v30 = vpop.f32.mrb[103].mxu1  ;;  %3436 = vmatmul.mubr.bf16.gmra.mrb[32].mxu0 %v2288_v62  ;;  %v2112_v31 = vmax.f32 %v1512_v20, 0.0 }
 0x26a   : > { %v1518_v33 = vadd.f32 %v1517_v30, %v5795_v46  ;;  %v2113_v25 = vmax.f32 %v1514_v26, 0.0 }
 0x26b   : > { %v2120_v59 = vmax.f32 %v1516_v58, 0.0  ;;  %1846 = vmatmul.mubr.bf16.gmra.mrb[208].mxu1 %v5528_v10 }
 0x26c   : > { %v2121_v32 = vmax.f32 %v1518_v33, 0.0  ;;  %1855 = vmatprep.mubr.bf16.mxu1 %v5530_v11 }
 0x26d   : > { %v2296_v43 = vpack.c.bf16 %v2120_v59, %v2112_v31 }
 0x26e   : > { %v2297_v35 = vpack.c.bf16 %v2121_v32, %v2113_v25  ;;  %v1521_v40 = vpop.f32.mrb[104].mxu1 }
 0x26f   : > { %v1522_v63 = vadd.f32 %v1521_v40, %v5792_v61  ;;  %v1523_v60 = vpop.f32.mrb[105].mxu1 }
 0x270   : > { %v1524_v34 = vadd.f32 %v1523_v60, %v5795_v46  ;;  %v1525_v6 = vpop.f32.mrb[106].mxu1  ;;  %3445 = vmatprep.mubr.bf16.mxu0 %v2297_v35 }
 0x271   : > { %v1526_v18 = vadd.f32 %v1525_v6, %v5792_v61  ;;  %v1527_v21 = vpop.f32.mrb[107].mxu1  ;;  %3446 = vmatmul.mubr.bf16.gmra.mrb[36].mxu0 %v2296_v43  ;;  %v2128_v12 = vmax.f32 %v1522_v63, 0.0 }
 0x272   : > { %v1528_v10 = vadd.f32 %v1527_v21, %v5795_v46  ;;  %v2129_v11 = vmax.f32 %v1524_v34, 0.0 }
 0x273   : > { %v2136_v15 = vmax.f32 %v1526_v18, 0.0  ;;  %1856 = vmatmul.mubr.bf16.gmra.mrb[212].mxu1 %v5538_v36 }
 0x274   : > { %v2137_v14 = vmax.f32 %v1528_v10, 0.0  ;;  %1865 = vmatprep.mubr.bf16.mxu1 %v5540_v37 }
 0x275   : > { %v2304_v48 = vpack.c.bf16 %v2136_v15, %v2128_v12 }
 0x276   : > { %v2305_v44 = vpack.c.bf16 %v2137_v14, %v2129_v11  ;;  %v1531_v53 = vpop.f32.mrb[108].mxu1 }
 0x277   : > { %v1532_v45 = vadd.f32 %v1531_v53, %v5792_v61  ;;  %v1533_v24 = vpop.f32.mrb[109].mxu1 }
 0x278   : > { %v1534_v9 = vadd.f32 %v1533_v24, %v5795_v46  ;;  %v1535_v7 = vpop.f32.mrb[110].mxu1  ;;  %3455 = vmatprep.mubr.bf16.mxu0 %v2305_v44 }
 0x279   : > { %v1536_v4 = vadd.f32 %v1535_v7, %v5792_v61  ;;  %v1537_v28 = vpop.f32.mrb[111].mxu1  ;;  %3456 = vmatmul.mubr.bf16.gmra.mrb[40].mxu0 %v2304_v48  ;;  %v2144_v23 = vmax.f32 %v1532_v45, 0.0 }
 0x27a   : > { %v1538_v36 = vadd.f32 %v1537_v28, %v5795_v46  ;;  %v2145_v37 = vmax.f32 %v1534_v9, 0.0 }
 0x27b   : > { %v2152_v62 = vmax.f32 %v1536_v4, 0.0  ;;  %1866 = vmatmul.mubr.bf16.gmra.mrb[216].mxu1 %v5548_v56 }
 0x27c   : > { %v2153_v54 = vmax.f32 %v1538_v36, 0.0  ;;  %1875 = vmatprep.mubr.bf16.mxu1 %v5550_v57 }
 0x27d   : > { %v2312_v19 = vpack.c.bf16 %v2152_v62, %v2144_v23 }
 0x27e   : > { %v2313_v20 = vpack.c.bf16 %v2153_v54, %v2145_v37  ;;  %v1541_v47 = vpop.f32.mrb[112].mxu1 }
 0x27f   : > { %v1542_v26 = vadd.f32 %v1541_v47, %v5792_v61  ;;  %v1543_v22 = vpop.f32.mrb[113].mxu1 }
 0x280   : > { %v1544_v58 = vadd.f32 %v1543_v22, %v5795_v46  ;;  %v1545_v30 = vpop.f32.mrb[114].mxu1  ;;  %3465 = vmatprep.mubr.bf16.mxu0 %v2313_v20  ;;  %v532_v20 = vsub.s32 4, %v5672_v2  ;;  %v536_v22 = vsub.s32 5, %v5672_v2 }
 0x281   : > { %v1546_v33 = vadd.f32 %v1545_v30, %v5792_v61  ;;  %v1547_v31 = vpop.f32.mrb[115].mxu1  ;;  %3466 = vmatmul.mubr.bf16.gmra.mrb[44].mxu0 %v2312_v19  ;;  %v2160_v59 = vmax.f32 %v1542_v26, 0.0 }
 0x282   : > { %v1548_v56 = vadd.f32 %v1547_v31, %v5795_v46  ;;  %v2161_v57 = vmax.f32 %v1544_v58, 0.0  ;;  %v5895_v31 = vld [vmem:[#allocation7] sm:$0xff] }
 0x283   : > { %v2168_v25 = vmax.f32 %v1546_v33, 0.0  ;;  %1876 = vmatmul.mubr.bf16.gmra.mrb[220].mxu1 %v5558_v16 }
 0x284   : > { %v2169_v32 = vmax.f32 %v1548_v56, 0.0  ;;  %1885 = vmatprep.mubr.bf16.mxu1 %v5560_v17  ;;  %v5898_v56 = vrot.slane %v5895_v31, %v532_v20 }
 0x285   : > { %v2320_v43 = vpack.c.bf16 %v2168_v25, %v2160_v59 }
 0x286   : > { %v2321_v35 = vpack.c.bf16 %v2169_v32, %v2161_v57  ;;  %v1551_v40 = vpop.f32.mrb[116].mxu1  ;;  %v5901_v57 = vrot.slane %v5895_v31, %v536_v22 }
 0x287   : > { %v1552_v63 = vadd.f32 %v1551_v40, %v5792_v61  ;;  %v1553_v60 = vpop.f32.mrb[117].mxu1 }
 0x288   : > { %v1554_v34 = vadd.f32 %v1553_v60, %v5795_v46  ;;  %v1555_v6 = vpop.f32.mrb[118].mxu1  ;;  %3475 = vmatprep.mubr.bf16.mxu0 %v2321_v35 }
 0x289   : > { %v1556_v18 = vadd.f32 %v1555_v6, %v5792_v61  ;;  %v1557_v21 = vpop.f32.mrb[119].mxu1  ;;  %3476 = vmatmul.mubr.bf16.gmra.mrb[48].mxu0 %v2320_v43  ;;  %v2176_v10 = vmax.f32 %v1552_v63, 0.0 }
 0x28a   : > { %v1558_v16 = vadd.f32 %v1557_v21, %v5795_v46  ;;  %v2177_v17 = vmax.f32 %v1554_v34, 0.0 }
 0x28b   : > { %v2184_v12 = vmax.f32 %v1556_v18, 0.0  ;;  %1886 = vmatmul.mubr.bf16.gmra.mrb[224].mxu1 %v5570_v38 }
 0x28c   : > { %v2185_v15 = vmax.f32 %v1558_v16, 0.0  ;;  %1895 = vmatprep.mubr.bf16.mxu1 %v5572_v39 }
 0x28d   : > { %v2328_v11 = vpack.c.bf16 %v2184_v12, %v2176_v10 }
 0x28e   : > { %v2329_v14 = vpack.c.bf16 %v2185_v15, %v2177_v17  ;;  %v1561_v48 = vpop.f32.mrb[120].mxu1  ;;  %v4914_v17 = vld [vmem:[#allocation8 + $0x300] ss:$8 sps:$4 sm:$0xff]  }
 0x28f   : > { %v1562_v44 = vadd.f32 %v1561_v48, %v5792_v61  ;;  %v1563_v53 = vpop.f32.mrb[121].mxu1 }
 0x290   : > { %v1564_v45 = vadd.f32 %v1563_v53, %v5795_v46  ;;  %v1565_v24 = vpop.f32.mrb[122].mxu1  ;;  %3485 = vmatprep.mubr.bf16.mxu0 %v2329_v14  ;;  %v4919_v14 = vld [vmem:[#allocation8 + $0x314] ss:$8 sps:$4 sm:$0xff]  }
 0x291   : > { %v1566_v9 = vadd.f32 %v1565_v24, %v5792_v61  ;;  %v1567_v7 = vpop.f32.mrb[123].mxu1  ;;  %3486 = vmatmul.mubr.bf16.gmra.mrb[52].mxu0 %v2328_v11  ;;  %v2192_v4 = vmax.f32 %v1562_v44, 0.0 }
 0x292   : > { %v1568_v38 = vadd.f32 %v1567_v7, %v5795_v46  ;;  %v2193_v39 = vmax.f32 %v1564_v45, 0.0  ;;  %v4922_v7 = vld [vmem:[#allocation8 + $0x324] ss:$8 sps:$4 sm:$0xff]  }
 0x293   : > { %v2200_v28 = vmax.f32 %v1566_v9, 0.0  ;;  %1896 = vmatmul.mubr.bf16.gmra.mrb[228].mxu1 %v5580_v50 }
 0x294   : > { %v2201_v36 = vmax.f32 %v1568_v38, 0.0  ;;  %1905 = vmatprep.mubr.bf16.mxu1 %v5582_v51 }
 0x295   : > { %v2336_v23 = vpack.c.bf16 %v2200_v28, %v2192_v4 }
 0x296   : > { %v2337_v62 = vpack.c.bf16 %v2201_v36, %v2193_v39  ;;  %v1571_v37 = vpop.f32.mrb[124].mxu1 }
 0x297   : > { %v1572_v54 = vadd.f32 %v1571_v37, %v5792_v61  ;;  %v1573_v19 = vpop.f32.mrb[125].mxu1 }
 0x298   : > { %v1574_v47 = vadd.f32 %v1573_v19, %v5795_v46  ;;  %v1575_v26 = vpop.f32.mrb[126].mxu1  ;;  %3495 = vmatprep.mubr.bf16.mxu0 %v2337_v62 }
 0x299   : > { %v1576_v50 = vadd.f32 %v1575_v26, %v5792_v61  ;;  %v1577_v58 = vpop.f32.mrb[127].mxu1  ;;  %3496 = vmatmul.mubr.bf16.gmra.mrb[56].mxu0 %v2336_v23  ;;  %v2208_v30 = vmax.f32 %v1572_v54, 0.0  ;;  %v4920_v23 = vld [vmem:[#allocation8 + $0x320] ss:$8 sps:$4 sm:$0xff]   ;;  %v4925_v54 = vld [vmem:[#allocation8 + $0x334] ss:$8 sps:$4 sm:$0xff]  }
 0x29a   : > { %v1578_v51 = vadd.f32 %v1577_v58, %v5795_v46  ;;  %v2209_v59 = vmax.f32 %v1574_v47, 0.0  ;;  %v4923_v26 = vld [vmem:[#allocation8 + $0x330] ss:$8 sps:$4 sm:$0xff]   ;;  %v4928_v58 = vld [vmem:[#allocation8 + $0x344] ss:$8 sps:$4 sm:$0xff]  }
 0x29b   : > { %v2216_v33 = vmax.f32 %v1576_v50, 0.0  ;;  %1906 = vmatmul.mubr.bf16.gmra.mrb[232].mxu1 %v5590_v0 }
 0x29c   : > { %v2217_v25 = vmax.f32 %v1578_v51, 0.0  ;;  %1915 = vmatprep.mubr.bf16.mxu1 %v5592_v1 }
 0x29d   : > { %v2344_v61 = vpack.c.bf16 %v2216_v33, %v2208_v30 }
 0x29e   : > { %v2345_v32 = vpack.c.bf16 %v2217_v25, %v2209_v59  ;;  %v1614_v43 = vpop.f32.mrb[128].mxu1 }
 0x29f   : > { %v1615_v46 = vadd.f32 %v1614_v43, %v5898_v56  ;;  %v1616_v35 = vpop.f32.mrb[129].mxu1 }
 0x2a0   : > { %v1617_v0 = vadd.f32 %v1616_v35, %v5901_v57  ;;  %v1618_v40 = vpop.f32.mrb[130].mxu1  ;;  %3505 = vmatprep.mubr.bf16.mxu0 %v2345_v32 }
 0x2a1   : > { %v1619_v63 = vadd.f32 %v1618_v40, %v5898_v56  ;;  %v1620_v60 = vpop.f32.mrb[131].mxu1  ;;  %3506 = vmatmul.mubr.bf16.gmra.mrb[60].mxu0 %v2344_v61  ;;  %v1970_v6 = vmax.f32 %v1615_v46, 0.0  ;;  %v4926_v61 = vld [vmem:[#allocation8 + $0x340] ss:$8 sps:$4 sm:$0xff]   ;;  %v4931_v46 = vld [vmem:[#allocation8 + $0x354] ss:$8 sps:$4 sm:$0xff]  }
 0x2a2   : > { %v1621_v34 = vadd.f32 %v1620_v60, %v5901_v57  ;;  %v1971_v1 = vmax.f32 %v1617_v0, 0.0 }
 0x2a3   : > { %v1978_v18 = vmax.f32 %v1619_v63, 0.0  ;;  %1916 = vmatmul.mubr.bf16.gmra.mrb[236].mxu1 %v5600_v8  ;;  %v4929_v63 = vld [vmem:[#allocation8 + $0x350] ss:$8 sps:$4 sm:$0xff]  }
 0x2a4   : > { %v1979_v21 = vmax.f32 %v1621_v34, 0.0  ;;  %1925 = vmatprep.mubr.bf16.mxu1 %v5602_v13  ;;  %v4917_v13 = vld [vmem:[#allocation8 + $0x310] ss:$8 sps:$4 sm:$0xff]  }
 0x2a5   : > { %v2226_v16 = vpack.c.bf16 %v1978_v18, %v1970_v6  ;;  %v4934_v6 = vld [vmem:[#allocation8 + $0x364] ss:$8 sps:$4 sm:$0xff]  }
 0x2a6   : > { %v2227_v10 = vpack.c.bf16 %v1979_v21, %v1971_v1  ;;  %v1624_v12 = vpop.f32.mrb[132].mxu1 }
 0x2a7   : > { %v1625_v15 = vadd.f32 %v1624_v12, %v5898_v56  ;;  %v1626_v11 = vpop.f32.mrb[133].mxu1  ;;  %v4932_v12 = vld [vmem:[#allocation8 + $0x360] ss:$8 sps:$4 sm:$0xff]  }
 0x2a8   : > { %v1627_v48 = vadd.f32 %v1626_v11, %v5901_v57  ;;  %v1628_v44 = vpop.f32.mrb[134].mxu1  ;;  %3548 = vmatprep.mubr.bf16.mxu0 %v2227_v10  ;;  %v4937_v11 = vld [vmem:[#allocation8 + $0x374] ss:$8 sps:$4 sm:$0xff]  }
 0x2a9   : > { %v1629_v53 = vadd.f32 %v1628_v44, %v5898_v56  ;;  %v1630_v45 = vpop.f32.mrb[135].mxu1  ;;  %3549 = vmatmul.mubr.bf16.vlgmr.msra.gmra.mrb[0].mxu0 %v2226_v16  ;;  %v1986_v24 = vmax.f32 %v1625_v15, 0.0 }
 0x2aa   : > { %v1631_v8 = vadd.f32 %v1630_v45, %v5901_v57  ;;  %3710 = vmatpush1.bf16.msra.mxu0 %v4914_v17  ;;  %v1987_v38 = vmax.f32 %v1627_v48, 0.0 }
 0x2ab   : > { %v1994_v9 = vmax.f32 %v1629_v53, 0.0  ;;  %1926 = vmatmul.mubr.bf16.gmra.mrb[240].mxu1 %v5610_v27  ;;  %3711 = vmatprep.subr.bf16.mxu0 %v4919_v14  ;;  %v4935_v53 = vld [vmem:[#allocation8 + $0x370] ss:$8 sps:$4 sm:$0xff]  }
 0x2ac   : > { %v1995_v4 = vmax.f32 %v1631_v8, 0.0  ;;  %1935 = vmatprep.mubr.bf16.mxu1 %v5612_v29 }
 0x2ad   : > { %v2234_v28 = vpack.c.bf16 %v1994_v9, %v1986_v24 }
 0x2ae   : > { %v2235_v39 = vpack.c.bf16 %v1995_v4, %v1987_v38  ;;  %v1634_v36 = vpop.f32.mrb[136].mxu1  ;;  %3712 = vmatpush1.bf16.msra.mxu0 %v4917_v13  ;;  %v4940_v13 = vld [vmem:[#allocation8 + $0x384] ss:$8 sps:$4 sm:$0xff]  }
 0x2af   : > { %v1635_v62 = vadd.f32 %v1634_v36, %v5898_v56  ;;  %v1636_v37 = vpop.f32.mrb[137].mxu1  ;;  %3713 = vmatprep.subr.bf16.mxu0 %v4922_v7 }
 0x2b0   : > { %v1637_v19 = vadd.f32 %v1636_v37, %v5901_v57  ;;  %v1638_v20 = vpop.f32.mrb[138].mxu1  ;;  %3558 = vmatprep.mubr.bf16.mxu0 %v2235_v39 }
 0x2b1   : > { %v1639_v27 = vadd.f32 %v1638_v20, %v5898_v56  ;;  %v1640_v47 = vpop.f32.mrb[139].mxu1  ;;  %3559 = vmatmul.mubr.bf16.gmra.mrb[4].mxu0 %v2234_v28  ;;  %v2002_v22 = vmax.f32 %v1635_v62, 0.0  ;;  %v4938_v28 = vld [vmem:[#allocation8 + $0x380] ss:$8 sps:$4 sm:$0xff]   ;;  %v4941_v20 = vld [vmem:[#allocation8 + $0x390] ss:$8 sps:$4 sm:$0xff]  }
 0x2b2   : > { %v1641_v29 = vadd.f32 %v1640_v47, %v5901_v57  ;;  %3714 = vmatpush1.bf16.msra.mxu0 %v4920_v23  ;;  %v2003_v51 = vmax.f32 %v1637_v19, 0.0  ;;  %v4943_v23 = vld [vmem:[#allocation8 + $0x394] ss:$8 sps:$4 sm:$0xff]  }
 0x2b3   : > { %v2010_v50 = vmax.f32 %v1639_v27, 0.0  ;;  %1936 = vmatmul.mubr.bf16.gmra.mrb[244].mxu1 %v5620_v41  ;;  %3715 = vmatprep.subr.bf16.mxu0 %v4925_v54 }
 0x2b4   : > { %v2011_v30 = vmax.f32 %v1641_v29, 0.0  ;;  %1945 = vmatprep.mubr.bf16.mxu1 %v5622_v42  ;;  %v4946_v29 = vld [vmem:[#allocation8 + $0x3a4] ss:$8 sps:$4 sm:$0xff]  }
 0x2b5   : > { %v2242_v33 = vpack.c.bf16 %v2010_v50, %v2002_v22 }
 0x2b6   : > { %v2243_v59 = vpack.c.bf16 %v2011_v30, %v2003_v51  ;;  %v1644_v25 = vpop.f32.mrb[140].mxu1  ;;  %3716 = vmatpush1.bf16.msra.mxu0 %v4923_v26  ;;  %v4944_v30 = vld [vmem:[#allocation8 + $0x3a0] ss:$8 sps:$4 sm:$0xff]  }
 0x2b7   : > { %v1645_v32 = vadd.f32 %v1644_v25, %v5898_v56  ;;  %v1646_v43 = vpop.f32.mrb[141].mxu1  ;;  %3717 = vmatprep.subr.bf16.mxu0 %v4928_v58  ;;  %v4949_v25 = vld [vmem:[#allocation8 + $0x3b4] ss:$8 sps:$4 sm:$0xff]  }
 0x2b8   : > { %v1647_v35 = vadd.f32 %v1646_v43, %v5901_v57  ;;  %v1648_v0 = vpop.f32.mrb[142].mxu1  ;;  %3568 = vmatprep.mubr.bf16.mxu0 %v2243_v59 }
 0x2b9   : > { %v1649_v41 = vadd.f32 %v1648_v0, %v5898_v56  ;;  %v1650_v40 = vpop.f32.mrb[143].mxu1  ;;  %3569 = vmatmul.mubr.bf16.gmra.mrb[8].mxu0 %v2242_v33  ;;  %v2018_v60 = vmax.f32 %v1645_v32, 0.0  ;;  %v4947_v0 = vld [vmem:[#allocation8 + $0x3b0] ss:$8 sps:$4 sm:$0xff]  }
 0x2ba   : > { %v1651_v42 = vadd.f32 %v1650_v40, %v5901_v57  ;;  %3718 = vmatpush1.bf16.msra.mxu0 %v4926_v61  ;;  %v2019_v18 = vmax.f32 %v1647_v35, 0.0 }
 0x2bb   : > { %v2026_v34 = vmax.f32 %v1649_v41, 0.0  ;;  %1946 = vmatmul.mubr.bf16.gmra.mrb[248].mxu1 %v5630_v49  ;;  %3719 = vmatprep.subr.bf16.mxu0 %v4931_v46 }
 0x2bc   : > { %v2027_v1 = vmax.f32 %v1651_v42, 0.0  ;;  %1955 = vmatprep.mubr.bf16.mxu1 %v5632_v52  ;;  %v4952_v42 = vld [vmem:[#allocation8 + $0x3c4] ss:$8 sps:$4 sm:$0xff]  }
 0x2bd   : > { %v2250_v21 = vpack.c.bf16 %v2026_v34, %v2018_v60 }
 0x2be   : > { %v2251_v16 = vpack.c.bf16 %v2027_v1, %v2019_v18  ;;  %v1654_v10 = vpop.f32.mrb[144].mxu1  ;;  %3720 = vmatpush1.bf16.msra.mxu0 %v4929_v63  ;;  %v4950_v1 = vld [vmem:[#allocation8 + $0x3c0] ss:$8 sps:$4 sm:$0xff]  }
 0x2bf   : > { %v1655_v17 = vadd.f32 %v1654_v10, %v5898_v56  ;;  %v1656_v15 = vpop.f32.mrb[145].mxu1  ;;  %3721 = vmatprep.subr.bf16.mxu0 %v4934_v6  ;;  %v4955_v10 = vld [vmem:[#allocation8 + $0x3d4] ss:$8 sps:$4 sm:$0xff]  }
 0x2c0   : > { %v1657_v14 = vadd.f32 %v1656_v15, %v5901_v57  ;;  %v1658_v48 = vpop.f32.mrb[146].mxu1  ;;  %3578 = vmatprep.mubr.bf16.mxu0 %v2251_v16 }
 0x2c1   : > { %v1659_v49 = vadd.f32 %v1658_v48, %v5898_v56  ;;  %v1660_v44 = vpop.f32.mrb[147].mxu1  ;;  %3579 = vmatmul.mubr.bf16.gmra.mrb[12].mxu0 %v2250_v21  ;;  %v2034_v45 = vmax.f32 %v1655_v17, 0.0  ;;  %v4953_v48 = vld [vmem:[#allocation8 + $0x3d0] ss:$8 sps:$4 sm:$0xff]  }
 0x2c2   : > { %v1661_v52 = vadd.f32 %v1660_v44, %v5901_v57  ;;  %3722 = vmatpush1.bf16.msra.mxu0 %v4932_v12  ;;  %v2035_v24 = vmax.f32 %v1657_v14, 0.0 }
 0x2c3   : > { %v2042_v8 = vmax.f32 %v1659_v49, 0.0  ;;  %1956 = vmatmul.mubr.bf16.gmra.mrb[252].mxu1 %v5638_v55  ;;  %3723 = vmatprep.subr.bf16.mxu0 %v4937_v11 }
 0x2c4   : > { %v2043_v9 = vmax.f32 %v1661_v52, 0.0  ;;  %v4958_v52 = vld [vmem:[#allocation8 + $0x3e4] ss:$8 sps:$4 sm:$0xff]  }
 0x2c5   : > { %v2258_v7 = vpack.c.bf16 %v2042_v8, %v2034_v45 }
 0x2c6   : > { %v2259_v38 = vpack.c.bf16 %v2043_v9, %v2035_v24  ;;  %v1664_v4 = vpop.f32.mrb[148].mxu1  ;;  %3724 = vmatpush1.bf16.msra.mxu0 %v4935_v53  ;;  %v4956_v9 = vld [vmem:[#allocation8 + $0x3e0] ss:$8 sps:$4 sm:$0xff]  }
 0x2c7   : > { %v1665_v39 = vadd.f32 %v1664_v4, %v5898_v56  ;;  %v1666_v36 = vpop.f32.mrb[149].mxu1  ;;  %3725 = vmatprep.subr.bf16.mxu0 %v4940_v13  ;;  %v4961_v4 = vld [vmem:[#allocation8 + $0x3f4] ss:$8 sps:$4 sm:$0xff]  }
 0x2c8   : > { %v1667_v62 = vadd.f32 %v1666_v36, %v5901_v57  ;;  %v1668_v37 = vpop.f32.mrb[150].mxu1  ;;  %3588 = vmatprep.mubr.bf16.mxu0 %v2259_v38 }
 0x2c9   : > { %v1669_v55 = vadd.f32 %v1668_v37, %v5898_v56  ;;  %v1670_v54 = vpop.f32.mrb[151].mxu1  ;;  %3589 = vmatmul.mubr.bf16.gmra.mrb[16].mxu0 %v2258_v7  ;;  %v2050_v27 = vmax.f32 %v1665_v39, 0.0  ;;  %v4959_v37 = vld [vmem:[#allocation8 + $0x3f0] ss:$8 sps:$4 sm:$0xff]  }
 0x2ca   : > { %v1671_v19 = vadd.f32 %v1670_v54, %v5901_v57  ;;  %3726 = vmatpush1.bf16.msra.mxu0 %v4938_v28  ;;  %v2051_v26 = vmax.f32 %v1667_v62, 0.0 }
 0x2cb   : > { %v2058_v47 = vmax.f32 %v1669_v55, 0.0  ;;  %3727 = vmatprep.subr.bf16.mxu0 %v4943_v23 }
 0x2cc   : > { %v2059_v22 = vmax.f32 %v1671_v19, 0.0 }
 0x2cd   : > { %v2266_v50 = vpack.c.bf16 %v2058_v47, %v2050_v27 }
 0x2ce   : > { %v2267_v58 = vpack.c.bf16 %v2059_v22, %v2051_v26  ;;  %v1674_v51 = vpop.f32.mrb[152].mxu1  ;;  %3728 = vmatpush1.bf16.msra.mxu0 %v4941_v20 }
 0x2cf   : > { %v1675_v33 = vadd.f32 %v1674_v51, %v5898_v56  ;;  %v1676_v59 = vpop.f32.mrb[153].mxu1  ;;  %3729 = vmatprep.subr.bf16.mxu0 %v4946_v29 }
 0x2d0   : > { %v1677_v61 = vadd.f32 %v1676_v59, %v5901_v57  ;;  %v1678_v32 = vpop.f32.mrb[154].mxu1  ;;  %3598 = vmatprep.mubr.bf16.mxu0 %v2267_v58 }
 0x2d1   : > { %v1679_v43 = vadd.f32 %v1678_v32, %v5898_v56  ;;  %v1680_v46 = vpop.f32.mrb[155].mxu1  ;;  %3599 = vmatmul.mubr.bf16.gmra.mrb[20].mxu0 %v2266_v50  ;;  %v2066_v41 = vmax.f32 %v1675_v33, 0.0 }
 0x2d2   : > { %v1681_v35 = vadd.f32 %v1680_v46, %v5901_v57  ;;  %3730 = vmatpush1.bf16.msra.mxu0 %v4944_v30  ;;  %v2067_v63 = vmax.f32 %v1677_v61, 0.0 }
 0x2d3   : > { %v2074_v40 = vmax.f32 %v1679_v43, 0.0  ;;  %3731 = vmatprep.subr.bf16.mxu0 %v4949_v25 }
 0x2d4   : > { %v2075_v60 = vmax.f32 %v1681_v35, 0.0 }
 0x2d5   : > { %v2274_v34 = vpack.c.bf16 %v2074_v40, %v2066_v41 }
 0x2d6   : > { %v2275_v6 = vpack.c.bf16 %v2075_v60, %v2067_v63  ;;  %v1684_v18 = vpop.f32.mrb[156].mxu1  ;;  %3732 = vmatpush1.bf16.msra.mxu0 %v4947_v0 }
 0x2d7   : > { %v1685_v21 = vadd.f32 %v1684_v18, %v5898_v56  ;;  %v1686_v16 = vpop.f32.mrb[157].mxu1  ;;  %3733 = vmatprep.subr.bf16.mxu0 %v4952_v42 }
 0x2d8   : > { %v1687_v12 = vadd.f32 %v1686_v16, %v5901_v57  ;;  %v1688_v17 = vpop.f32.mrb[158].mxu1  ;;  %3608 = vmatprep.mubr.bf16.mxu0 %v2275_v6 }
 0x2d9   : > { %v1689_v15 = vadd.f32 %v1688_v17, %v5898_v56  ;;  %v1690_v11 = vpop.f32.mrb[159].mxu1  ;;  %3609 = vmatmul.mubr.bf16.gmra.mrb[24].mxu0 %v2274_v34  ;;  %v2082_v49 = vmax.f32 %v1685_v21, 0.0 }
 0x2da   : > { %v1691_v14 = vadd.f32 %v1690_v11, %v5901_v57  ;;  %3734 = vmatpush1.bf16.msra.mxu0 %v4950_v1  ;;  %v2083_v53 = vmax.f32 %v1687_v12, 0.0 }
 0x2db   : > { %v2090_v44 = vmax.f32 %v1689_v15, 0.0  ;;  %3735 = vmatprep.subr.bf16.mxu0 %v4955_v10 }
 0x2dc   : > { %v2091_v45 = vmax.f32 %v1691_v14, 0.0 }
 0x2dd   : > { %v2282_v8 = vpack.c.bf16 %v2090_v44, %v2082_v49 }
 0x2de   : > { %v2283_v13 = vpack.c.bf16 %v2091_v45, %v2083_v53  ;;  %v1694_v24 = vpop.f32.mrb[160].mxu1  ;;  %3736 = vmatpush1.bf16.msra.mxu0 %v4953_v48 }
 0x2df   : > { %v1695_v7 = vadd.f32 %v1694_v24, %v5898_v56  ;;  %v1696_v38 = vpop.f32.mrb[161].mxu1  ;;  %3737 = vmatprep.subr.bf16.mxu0 %v4958_v52 }
 0x2e0   : > { %v1697_v28 = vadd.f32 %v1696_v38, %v5901_v57  ;;  %v1698_v39 = vpop.f32.mrb[162].mxu1  ;;  %3618 = vmatprep.mubr.bf16.mxu0 %v2283_v13 }
 0x2e1   : > { %v1699_v36 = vadd.f32 %v1698_v39, %v5898_v56  ;;  %v1700_v23 = vpop.f32.mrb[163].mxu1  ;;  %3619 = vmatmul.mubr.bf16.gmra.mrb[28].mxu0 %v2282_v8  ;;  %v2098_v55 = vmax.f32 %v1695_v7, 0.0 }
 0x2e2   : > { %v1701_v62 = vadd.f32 %v1700_v23, %v5901_v57  ;;  %3738 = vmatpush1.bf16.msra.mxu0 %v4956_v9  ;;  %v2099_v19 = vmax.f32 %v1697_v28, 0.0 }
 0x2e3   : > { %v2106_v54 = vmax.f32 %v1699_v36, 0.0  ;;  %3739 = vmatprep.subr.bf16.mxu0 %v4961_v4 }
 0x2e4   : > { %v2107_v20 = vmax.f32 %v1701_v62, 0.0 }
 0x2e5   : > { %v2290_v27 = vpack.c.bf16 %v2106_v54, %v2098_v55 }
 0x2e6   : > { %v2291_v47 = vpack.c.bf16 %v2107_v20, %v2099_v19  ;;  %v1704_v29 = vpop.f32.mrb[164].mxu1  ;;  %3740 = vmatpush1.bf16.msra.mxu0 %v4959_v37 }
 0x2e7   : > { %v1705_v26 = vadd.f32 %v1704_v29, %v5898_v56  ;;  %v1706_v22 = vpop.f32.mrb[165].mxu1 }
 0x2e8   : > { %v1707_v50 = vadd.f32 %v1706_v22, %v5901_v57  ;;  %v1708_v58 = vpop.f32.mrb[166].mxu1  ;;  %3628 = vmatprep.mubr.bf16.mxu0 %v2291_v47 }
 0x2e9   : > { %v1709_v51 = vadd.f32 %v1708_v58, %v5898_v56  ;;  %v1710_v30 = vpop.f32.mrb[167].mxu1  ;;  %3629 = vmatmul.mubr.bf16.gmra.mrb[32].mxu0 %v2290_v27  ;;  %v2114_v59 = vmax.f32 %v1705_v26, 0.0 }
 0x2ea   : > { %v1711_v33 = vadd.f32 %v1710_v30, %v5901_v57  ;;  %v2115_v61 = vmax.f32 %v1707_v50, 0.0 }
 0x2eb   : > { %v2122_v25 = vmax.f32 %v1709_v51, 0.0 }
 0x2ec   : > { %v2123_v32 = vmax.f32 %v1711_v33, 0.0 }
 0x2ed   : > { %v2298_v43 = vpack.c.bf16 %v2122_v25, %v2114_v59 }
 0x2ee   : > { %v2299_v46 = vpack.c.bf16 %v2123_v32, %v2115_v61  ;;  %v1714_v35 = vpop.f32.mrb[168].mxu1 }
 0x2ef   : > { %v1715_v0 = vadd.f32 %v1714_v35, %v5898_v56  ;;  %v1716_v41 = vpop.f32.mrb[169].mxu1 }
 0x2f0   : > { %v1717_v40 = vadd.f32 %v1716_v41, %v5901_v57  ;;  %v1718_v42 = vpop.f32.mrb[170].mxu1  ;;  %3638 = vmatprep.mubr.bf16.mxu0 %v2299_v46 }
 0x2f1   : > { %v1719_v63 = vadd.f32 %v1718_v42, %v5898_v56  ;;  %v1720_v60 = vpop.f32.mrb[171].mxu1  ;;  %3639 = vmatmul.mubr.bf16.gmra.mrb[36].mxu0 %v2298_v43  ;;  %v2130_v6 = vmax.f32 %v1715_v0, 0.0 }
 0x2f2   : > { %v1721_v34 = vadd.f32 %v1720_v60, %v5901_v57  ;;  %v2131_v1 = vmax.f32 %v1717_v40, 0.0 }
 0x2f3   : > { %v2138_v18 = vmax.f32 %v1719_v63, 0.0 }
 0x2f4   : > { %v2139_v21 = vmax.f32 %v1721_v34, 0.0 }
 0x2f5   : > { %v2306_v16 = vpack.c.bf16 %v2138_v18, %v2130_v6 }
 0x2f6   : > { %v2307_v10 = vpack.c.bf16 %v2139_v21, %v2131_v1  ;;  %v1724_v12 = vpop.f32.mrb[172].mxu1 }
 0x2f7   : > { %v1725_v17 = vadd.f32 %v1724_v12, %v5898_v56  ;;  %v1726_v15 = vpop.f32.mrb[173].mxu1 }
 0x2f8   : > { %v1727_v11 = vadd.f32 %v1726_v15, %v5901_v57  ;;  %v1728_v14 = vpop.f32.mrb[174].mxu1  ;;  %3648 = vmatprep.mubr.bf16.mxu0 %v2307_v10 }
 0x2f9   : > { %v1729_v48 = vadd.f32 %v1728_v14, %v5898_v56  ;;  %v1730_v49 = vpop.f32.mrb[175].mxu1  ;;  %3649 = vmatmul.mubr.bf16.gmra.mrb[40].mxu0 %v2306_v16  ;;  %v2146_v52 = vmax.f32 %v1725_v17, 0.0  ;;  %v540_v17 = vsub.s32 6, %v5672_v2  ;;  %v544_v14 = vsub.s32 7, %v5672_v2 }
 0x2fa   : > { %v1731_v44 = vadd.f32 %v1730_v49, %v5901_v57  ;;  %v2147_v45 = vmax.f32 %v1727_v11, 0.0 }
 0x2fb   : > { %v2154_v53 = vmax.f32 %v1729_v48, 0.0 }
 0x2fc   : > { %v2155_v8 = vmax.f32 %v1731_v44, 0.0 }
 0x2fd   : > { %v2314_v13 = vpack.c.bf16 %v2154_v53, %v2146_v52 }
 0x2fe   : > { %v2315_v24 = vpack.c.bf16 %v2155_v8, %v2147_v45  ;;  %v1734_v9 = vpop.f32.mrb[176].mxu1  ;;  %v5980_v45 = vrot.slane %v5895_v31, %v540_v17 }
 0x2ff   : > { %v1735_v7 = vadd.f32 %v1734_v9, %v5898_v56  ;;  %v1736_v38 = vpop.f32.mrb[177].mxu1 }
 0x300   : > { %v1737_v4 = vadd.f32 %v1736_v38, %v5901_v57  ;;  %v1738_v28 = vpop.f32.mrb[178].mxu1  ;;  %3658 = vmatprep.mubr.bf16.mxu0 %v2315_v24  ;;  %v5983_v24 = vrot.slane %v5895_v31, %v544_v14 }
 0x301   : > { %v1739_v39 = vadd.f32 %v1738_v28, %v5898_v56  ;;  %v1740_v36 = vpop.f32.mrb[179].mxu1  ;;  %3659 = vmatmul.mubr.bf16.gmra.mrb[44].mxu0 %v2314_v13  ;;  %v2162_v62 = vmax.f32 %v1735_v7, 0.0 }
 0x302   : > { %v1741_v23 = vadd.f32 %v1740_v36, %v5901_v57  ;;  %v2163_v55 = vmax.f32 %v1737_v4, 0.0 }
 0x303   : > { %v2170_v37 = vmax.f32 %v1739_v39, 0.0 }
 0x304   : > { %v2171_v54 = vmax.f32 %v1741_v23, 0.0 }
 0x305   : > { %v2322_v19 = vpack.c.bf16 %v2170_v37, %v2162_v62 }
 0x306   : > { %v2323_v20 = vpack.c.bf16 %v2171_v54, %v2163_v55  ;;  %v1744_v27 = vpop.f32.mrb[180].mxu1 }
 0x307   : > { %v1745_v47 = vadd.f32 %v1744_v27, %v5898_v56  ;;  %v1746_v29 = vpop.f32.mrb[181].mxu1 }
 0x308   : > { %v1747_v26 = vadd.f32 %v1746_v29, %v5901_v57  ;;  %v1748_v22 = vpop.f32.mrb[182].mxu1  ;;  %3668 = vmatprep.mubr.bf16.mxu0 %v2323_v20 }
 0x309   : > { %v1749_v50 = vadd.f32 %v1748_v22, %v5898_v56  ;;  %v1750_v58 = vpop.f32.mrb[183].mxu1  ;;  %3669 = vmatmul.mubr.bf16.gmra.mrb[48].mxu0 %v2322_v19  ;;  %v2178_v30 = vmax.f32 %v1745_v47, 0.0 }
 0x30a   : > { %v1751_v51 = vadd.f32 %v1750_v58, %v5901_v57  ;;  %v2179_v59 = vmax.f32 %v1747_v26, 0.0 }
 0x30b   : > { %v2186_v33 = vmax.f32 %v1749_v50, 0.0 }
 0x30c   : > { %v2187_v25 = vmax.f32 %v1751_v51, 0.0 }
 0x30d   : > { %v2330_v61 = vpack.c.bf16 %v2186_v33, %v2178_v30 }
 0x30e   : > { %v2331_v32 = vpack.c.bf16 %v2187_v25, %v2179_v59  ;;  %v1754_v43 = vpop.f32.mrb[184].mxu1 }
 0x30f   : > { %v1755_v46 = vadd.f32 %v1754_v43, %v5898_v56  ;;  %v1756_v35 = vpop.f32.mrb[185].mxu1 }
 0x310   : > { %v1757_v0 = vadd.f32 %v1756_v35, %v5901_v57  ;;  %v1758_v41 = vpop.f32.mrb[186].mxu1  ;;  %3678 = vmatprep.mubr.bf16.mxu0 %v2331_v32 }
 0x311   : > { %v1759_v40 = vadd.f32 %v1758_v41, %v5898_v56  ;;  %v1760_v42 = vpop.f32.mrb[187].mxu1  ;;  %3679 = vmatmul.mubr.bf16.gmra.mrb[52].mxu0 %v2330_v61  ;;  %v2194_v60 = vmax.f32 %v1755_v46, 0.0 }
 0x312   : > { %v1761_v63 = vadd.f32 %v1760_v42, %v5901_v57  ;;  %v2195_v6 = vmax.f32 %v1757_v0, 0.0 }
 0x313   : > { %v2202_v34 = vmax.f32 %v1759_v40, 0.0 }
 0x314   : > { %v2203_v18 = vmax.f32 %v1761_v63, 0.0 }
 0x315   : > { %v2338_v1 = vpack.c.bf16 %v2202_v34, %v2194_v60 }
 0x316   : > { %v2339_v21 = vpack.c.bf16 %v2203_v18, %v2195_v6  ;;  %v1764_v16 = vpop.f32.mrb[188].mxu1 }
 0x317   : > { %v1765_v10 = vadd.f32 %v1764_v16, %v5898_v56  ;;  %v1766_v12 = vpop.f32.mrb[189].mxu1 }
 0x318   : > { %v1767_v15 = vadd.f32 %v1766_v12, %v5901_v57  ;;  %v1768_v11 = vpop.f32.mrb[190].mxu1  ;;  %3688 = vmatprep.mubr.bf16.mxu0 %v2339_v21 }
 0x319   : > { %v1769_v48 = vadd.f32 %v1768_v11, %v5898_v56  ;;  %v1770_v49 = vpop.f32.mrb[191].mxu1  ;;  %3689 = vmatmul.mubr.bf16.gmra.mrb[56].mxu0 %v2338_v1  ;;  %v2210_v52 = vmax.f32 %v1765_v10, 0.0 }
 0x31a   : > { %v1771_v44 = vadd.f32 %v1770_v49, %v5901_v57  ;;  %v2211_v8 = vmax.f32 %v1767_v15, 0.0 }
 0x31b   : > { %v2218_v53 = vmax.f32 %v1769_v48, 0.0 }
 0x31c   : > { %v2219_v13 = vmax.f32 %v1771_v44, 0.0 }
 0x31d   : > { %v2346_v9 = vpack.c.bf16 %v2218_v53, %v2210_v52 }
 0x31e   : > { %v2347_v7 = vpack.c.bf16 %v2219_v13, %v2211_v8  ;;  %v1807_v38 = vpop.f32.mrb[192].mxu1 }
 0x31f   : > { %v1808_v4 = vadd.f32 %v1807_v38, %v5980_v45  ;;  %v1809_v56 = vpop.f32.mrb[193].mxu1 }
 0x320   : > { %v1810_v28 = vadd.f32 %v1809_v56, %v5983_v24  ;;  %v1811_v39 = vpop.f32.mrb[194].mxu1  ;;  %3698 = vmatprep.mubr.bf16.mxu0 %v2347_v7 }
 0x321   : > { %v1812_v57 = vadd.f32 %v1811_v39, %v5980_v45  ;;  %v1813_v36 = vpop.f32.mrb[195].mxu1  ;;  %3699 = vmatmul.mubr.bf16.gmra.mrb[60].mxu0 %v2346_v9  ;;  %v1972_v62 = vmax.f32 %v1808_v4, 0.0 }
 0x322   : > { %v1814_v23 = vadd.f32 %v1813_v36, %v5983_v24  ;;  %v1973_v31 = vmax.f32 %v1810_v28, 0.0 }
 0x323   : > { %v1980_v37 = vmax.f32 %v1812_v57, 0.0 }
 0x324   : > { %v1981_v55 = vmax.f32 %v1814_v23, 0.0 }
 0x325   : > { %v2228_v54 = vpack.c.bf16 %v1980_v37, %v1972_v62 }
 0x326   : > { %v2229_v19 = vpack.c.bf16 %v1981_v55, %v1973_v31  ;;  %v1817_v20 = vpop.f32.mrb[196].mxu1 }
 0x327   : > { %v1818_v27 = vadd.f32 %v1817_v20, %v5980_v45  ;;  %v1819_v47 = vpop.f32.mrb[197].mxu1 }
 0x328   : > { %v1820_v29 = vadd.f32 %v1819_v47, %v5983_v24  ;;  %v1821_v26 = vpop.f32.mrb[198].mxu1  ;;  %3741 = vmatprep.mubr.bf16.mxu0 %v2229_v19 }
 0x329   : > { %v1822_v22 = vadd.f32 %v1821_v26, %v5980_v45  ;;  %v1823_v50 = vpop.f32.mrb[199].mxu1  ;;  %3742 = vmatmul.mubr.bf16.vlgmr.msra.gmra.mrb[0].mxu0 %v2228_v54  ;;  %v1988_v51 = vmax.f32 %v1818_v27, 0.0 }
 0x32a   : > { %v1824_v58 = vadd.f32 %v1823_v50, %v5983_v24  ;;  %v1989_v33 = vmax.f32 %v1820_v29, 0.0 }
 0x32b   : > { %v1996_v30 = vmax.f32 %v1822_v22, 0.0 }
 0x32c   : > { %v1997_v59 = vmax.f32 %v1824_v58, 0.0 }
 0x32d   : > { %v2236_v25 = vpack.c.bf16 %v1996_v30, %v1988_v51 }
 0x32e   : > { %v2237_v61 = vpack.c.bf16 %v1997_v59, %v1989_v33  ;;  %v1827_v32 = vpop.f32.mrb[200].mxu1 }
 0x32f   : > { %v1828_v43 = vadd.f32 %v1827_v32, %v5980_v45  ;;  %v1829_v46 = vpop.f32.mrb[201].mxu1 }
 0x330   : > { %v1830_v35 = vadd.f32 %v1829_v46, %v5983_v24  ;;  %v1831_v0 = vpop.f32.mrb[202].mxu1  ;;  %3751 = vmatprep.mubr.bf16.mxu0 %v2237_v61 }
 0x331   : > { %v1832_v41 = vadd.f32 %v1831_v0, %v5980_v45  ;;  %v1833_v40 = vpop.f32.mrb[203].mxu1  ;;  %3752 = vmatmul.mubr.bf16.gmra.mrb[4].mxu0 %v2236_v25  ;;  %v2004_v63 = vmax.f32 %v1828_v43, 0.0 }
 0x332   : > { %v1834_v42 = vadd.f32 %v1833_v40, %v5983_v24  ;;  %v2005_v34 = vmax.f32 %v1830_v35, 0.0 }
 0x333   : > { %v2012_v60 = vmax.f32 %v1832_v41, 0.0 }
 0x334   : > { %v2013_v6 = vmax.f32 %v1834_v42, 0.0 }
 0x335   : > { %v2244_v18 = vpack.c.bf16 %v2012_v60, %v2004_v63 }
 0x336   : > { %v2245_v1 = vpack.c.bf16 %v2013_v6, %v2005_v34  ;;  %v1837_v21 = vpop.f32.mrb[204].mxu1 }
 0x337   : > { %v1838_v16 = vadd.f32 %v1837_v21, %v5980_v45  ;;  %v1839_v10 = vpop.f32.mrb[205].mxu1 }
 0x338   : > { %v1840_v12 = vadd.f32 %v1839_v10, %v5983_v24  ;;  %v1841_v17 = vpop.f32.mrb[206].mxu1  ;;  %3761 = vmatprep.mubr.bf16.mxu0 %v2245_v1 }
 0x339   : > { %v1842_v15 = vadd.f32 %v1841_v17, %v5980_v45  ;;  %v1843_v11 = vpop.f32.mrb[207].mxu1  ;;  %3762 = vmatmul.mubr.bf16.gmra.mrb[8].mxu0 %v2244_v18  ;;  %v2020_v48 = vmax.f32 %v1838_v16, 0.0 }
 0x33a   : > { %v1844_v14 = vadd.f32 %v1843_v11, %v5983_v24  ;;  %v2021_v44 = vmax.f32 %v1840_v12, 0.0 }
 0x33b   : > { %v2028_v49 = vmax.f32 %v1842_v15, 0.0 }
 0x33c   : > { %v2029_v52 = vmax.f32 %v1844_v14, 0.0 }
 0x33d   : > { %v2252_v53 = vpack.c.bf16 %v2028_v49, %v2020_v48 }
 0x33e   : > { %v2253_v8 = vpack.c.bf16 %v2029_v52, %v2021_v44  ;;  %v1847_v13 = vpop.f32.mrb[208].mxu1 }
 0x33f   : > { %v1848_v9 = vadd.f32 %v1847_v13, %v5980_v45  ;;  %v1849_v7 = vpop.f32.mrb[209].mxu1 }
 0x340   : > { %v1850_v38 = vadd.f32 %v1849_v7, %v5983_v24  ;;  %v1851_v4 = vpop.f32.mrb[210].mxu1  ;;  %3771 = vmatprep.mubr.bf16.mxu0 %v2253_v8 }
 0x341   : > { %v1852_v56 = vadd.f32 %v1851_v4, %v5980_v45  ;;  %v1853_v28 = vpop.f32.mrb[211].mxu1  ;;  %3772 = vmatmul.mubr.bf16.gmra.mrb[12].mxu0 %v2252_v53  ;;  %v2036_v57 = vmax.f32 %v1848_v9, 0.0 }
 0x342   : > { %v1854_v39 = vadd.f32 %v1853_v28, %v5983_v24  ;;  %v2037_v23 = vmax.f32 %v1850_v38, 0.0 }
 0x343   : > { %v2044_v36 = vmax.f32 %v1852_v56, 0.0 }
 0x344   : > { %v2045_v62 = vmax.f32 %v1854_v39, 0.0 }
 0x345   : > { %v2260_v37 = vpack.c.bf16 %v2044_v36, %v2036_v57 }
 0x346   : > { %v2261_v31 = vpack.c.bf16 %v2045_v62, %v2037_v23  ;;  %v1857_v55 = vpop.f32.mrb[212].mxu1 }
 0x347   : > { %v1858_v54 = vadd.f32 %v1857_v55, %v5980_v45  ;;  %v1859_v19 = vpop.f32.mrb[213].mxu1 }
 0x348   : > { %v1860_v20 = vadd.f32 %v1859_v19, %v5983_v24  ;;  %v1861_v27 = vpop.f32.mrb[214].mxu1  ;;  %3781 = vmatprep.mubr.bf16.mxu0 %v2261_v31 }
 0x349   : > { %v1862_v47 = vadd.f32 %v1861_v27, %v5980_v45  ;;  %v1863_v29 = vpop.f32.mrb[215].mxu1  ;;  %3782 = vmatmul.mubr.bf16.gmra.mrb[16].mxu0 %v2260_v37  ;;  %v2052_v22 = vmax.f32 %v1858_v54, 0.0 }
 0x34a   : > { %v1864_v26 = vadd.f32 %v1863_v29, %v5983_v24  ;;  %v2053_v58 = vmax.f32 %v1860_v20, 0.0 }
 0x34b   : > { %v2060_v50 = vmax.f32 %v1862_v47, 0.0 }
 0x34c   : > { %v2061_v51 = vmax.f32 %v1864_v26, 0.0 }
 0x34d   : > { %v2268_v30 = vpack.c.bf16 %v2060_v50, %v2052_v22 }
 0x34e   : > { %v2269_v33 = vpack.c.bf16 %v2061_v51, %v2053_v58  ;;  %v1867_v59 = vpop.f32.mrb[216].mxu1 }
 0x34f   : > { %v1868_v25 = vadd.f32 %v1867_v59, %v5980_v45  ;;  %v1869_v61 = vpop.f32.mrb[217].mxu1 }
 0x350   : > { %v1870_v32 = vadd.f32 %v1869_v61, %v5983_v24  ;;  %v1871_v43 = vpop.f32.mrb[218].mxu1  ;;  %3791 = vmatprep.mubr.bf16.mxu0 %v2269_v33 }
 0x351   : > { %v1872_v46 = vadd.f32 %v1871_v43, %v5980_v45  ;;  %v1873_v35 = vpop.f32.mrb[219].mxu1  ;;  %3792 = vmatmul.mubr.bf16.gmra.mrb[20].mxu0 %v2268_v30  ;;  %v2068_v41 = vmax.f32 %v1868_v25, 0.0 }
 0x352   : > { %v1874_v0 = vadd.f32 %v1873_v35, %v5983_v24  ;;  %v2069_v42 = vmax.f32 %v1870_v32, 0.0 }
 0x353   : > { %v2076_v40 = vmax.f32 %v1872_v46, 0.0 }
 0x354   : > { %v2077_v63 = vmax.f32 %v1874_v0, 0.0 }
 0x355   : > { %v2276_v60 = vpack.c.bf16 %v2076_v40, %v2068_v41 }
 0x356   : > { %v2277_v34 = vpack.c.bf16 %v2077_v63, %v2069_v42  ;;  %v1877_v6 = vpop.f32.mrb[220].mxu1 }
 0x357   : > { %v1878_v18 = vadd.f32 %v1877_v6, %v5980_v45  ;;  %v1879_v1 = vpop.f32.mrb[221].mxu1 }
 0x358   : > { %v1880_v21 = vadd.f32 %v1879_v1, %v5983_v24  ;;  %v1881_v16 = vpop.f32.mrb[222].mxu1  ;;  %3801 = vmatprep.mubr.bf16.mxu0 %v2277_v34 }
 0x359   : > { %v1882_v10 = vadd.f32 %v1881_v16, %v5980_v45  ;;  %v1883_v12 = vpop.f32.mrb[223].mxu1  ;;  %3802 = vmatmul.mubr.bf16.gmra.mrb[24].mxu0 %v2276_v60  ;;  %v2084_v15 = vmax.f32 %v1878_v18, 0.0 }
 0x35a   : > { %v1884_v17 = vadd.f32 %v1883_v12, %v5983_v24  ;;  %v2085_v14 = vmax.f32 %v1880_v21, 0.0 }
 0x35b   : > { %v2092_v11 = vmax.f32 %v1882_v10, 0.0 }
 0x35c   : > { %v2093_v48 = vmax.f32 %v1884_v17, 0.0 }
 0x35d   : > { %v2284_v49 = vpack.c.bf16 %v2092_v11, %v2084_v15 }
 0x35e   : > { %v2285_v44 = vpack.c.bf16 %v2093_v48, %v2085_v14  ;;  %v1887_v52 = vpop.f32.mrb[224].mxu1 }
 0x35f   : > { %v1888_v53 = vadd.f32 %v1887_v52, %v5980_v45  ;;  %v1889_v8 = vpop.f32.mrb[225].mxu1 }
 0x360   : > { %v1890_v13 = vadd.f32 %v1889_v8, %v5983_v24  ;;  %v1891_v9 = vpop.f32.mrb[226].mxu1  ;;  %3811 = vmatprep.mubr.bf16.mxu0 %v2285_v44 }
 0x361   : > { %v1892_v7 = vadd.f32 %v1891_v9, %v5980_v45  ;;  %v1893_v38 = vpop.f32.mrb[227].mxu1  ;;  %3812 = vmatmul.mubr.bf16.gmra.mrb[28].mxu0 %v2284_v49  ;;  %v2100_v56 = vmax.f32 %v1888_v53, 0.0 }
 0x362   : > { %v1894_v4 = vadd.f32 %v1893_v38, %v5983_v24  ;;  %v2101_v39 = vmax.f32 %v1890_v13, 0.0 }
 0x363   : > { %v2108_v28 = vmax.f32 %v1892_v7, 0.0 }
 0x364   : > { %v2109_v57 = vmax.f32 %v1894_v4, 0.0 }
 0x365   : > { %v2292_v36 = vpack.c.bf16 %v2108_v28, %v2100_v56 }
 0x366   : > { %v2293_v23 = vpack.c.bf16 %v2109_v57, %v2101_v39  ;;  %v1897_v62 = vpop.f32.mrb[228].mxu1 }
 0x367   : > { %v1898_v37 = vadd.f32 %v1897_v62, %v5980_v45  ;;  %v1899_v31 = vpop.f32.mrb[229].mxu1 }
 0x368   : > { %v1900_v55 = vadd.f32 %v1899_v31, %v5983_v24  ;;  %v1901_v54 = vpop.f32.mrb[230].mxu1  ;;  %3821 = vmatprep.mubr.bf16.mxu0 %v2293_v23 }
 0x369   : > { %v1902_v19 = vadd.f32 %v1901_v54, %v5980_v45  ;;  %v1903_v20 = vpop.f32.mrb[231].mxu1  ;;  %3822 = vmatmul.mubr.bf16.gmra.mrb[32].mxu0 %v2292_v36  ;;  %v2116_v47 = vmax.f32 %v1898_v37, 0.0 }
 0x36a   : > { %v1904_v27 = vadd.f32 %v1903_v20, %v5983_v24  ;;  %v2117_v26 = vmax.f32 %v1900_v55, 0.0 }
 0x36b   : > { %v2124_v29 = vmax.f32 %v1902_v19, 0.0 }
 0x36c   : > { %v2125_v22 = vmax.f32 %v1904_v27, 0.0 }
 0x36d   : > { %v2300_v50 = vpack.c.bf16 %v2124_v29, %v2116_v47 }
 0x36e   : > { %v2301_v58 = vpack.c.bf16 %v2125_v22, %v2117_v26  ;;  %v1907_v51 = vpop.f32.mrb[232].mxu1 }
 0x36f   : > { %v1908_v30 = vadd.f32 %v1907_v51, %v5980_v45  ;;  %v1909_v33 = vpop.f32.mrb[233].mxu1 }
 0x370   : > { %v1910_v59 = vadd.f32 %v1909_v33, %v5983_v24  ;;  %v1911_v25 = vpop.f32.mrb[234].mxu1  ;;  %3831 = vmatprep.mubr.bf16.mxu0 %v2301_v58 }
 0x371   : > { %v1912_v61 = vadd.f32 %v1911_v25, %v5980_v45  ;;  %v1913_v32 = vpop.f32.mrb[235].mxu1  ;;  %3832 = vmatmul.mubr.bf16.gmra.mrb[36].mxu0 %v2300_v50  ;;  %v2132_v46 = vmax.f32 %v1908_v30, 0.0 }
 0x372   : > { %v1914_v43 = vadd.f32 %v1913_v32, %v5983_v24  ;;  %v2133_v0 = vmax.f32 %v1910_v59, 0.0 }
 0x373   : > { %v2140_v35 = vmax.f32 %v1912_v61, 0.0 }
 0x374   : > { %v2141_v41 = vmax.f32 %v1914_v43, 0.0 }
 0x375   : > { %v2308_v40 = vpack.c.bf16 %v2140_v35, %v2132_v46 }
 0x376   : > { %v2309_v42 = vpack.c.bf16 %v2141_v41, %v2133_v0  ;;  %v1917_v63 = vpop.f32.mrb[236].mxu1 }
 0x377   : > { %v1918_v60 = vadd.f32 %v1917_v63, %v5980_v45  ;;  %v1919_v34 = vpop.f32.mrb[237].mxu1 }
 0x378   : > { %v1920_v6 = vadd.f32 %v1919_v34, %v5983_v24  ;;  %v1921_v18 = vpop.f32.mrb[238].mxu1  ;;  %3841 = vmatprep.mubr.bf16.mxu0 %v2309_v42 }
 0x379   : > { %v1922_v1 = vadd.f32 %v1921_v18, %v5980_v45  ;;  %v1923_v21 = vpop.f32.mrb[239].mxu1  ;;  %3842 = vmatmul.mubr.bf16.gmra.mrb[40].mxu0 %v2308_v40  ;;  %v2148_v10 = vmax.f32 %v1918_v60, 0.0 }
 0x37a   : > { %v1924_v16 = vadd.f32 %v1923_v21, %v5983_v24  ;;  %v2149_v17 = vmax.f32 %v1920_v6, 0.0 }
 0x37b   : > { %v2156_v12 = vmax.f32 %v1922_v1, 0.0 }
 0x37c   : > { %v2157_v15 = vmax.f32 %v1924_v16, 0.0 }
 0x37d   : > { %v2316_v11 = vpack.c.bf16 %v2156_v12, %v2148_v10 }
 0x37e   : > { %v2317_v14 = vpack.c.bf16 %v2157_v15, %v2149_v17  ;;  %v1927_v48 = vpop.f32.mrb[240].mxu1  ;;  %v2478_v15 = vld [vmem:[%s6311_s4] sm:$0x3] }
 0x37f   : > { %v1928_v49 = vadd.f32 %v1927_v48, %v5980_v45  ;;  %v1929_v44 = vpop.f32.mrb[241].mxu1 }
 0x380   : > { %v1930_v52 = vadd.f32 %v1929_v44, %v5983_v24  ;;  %v1931_v53 = vpop.f32.mrb[242].mxu1  ;;  %3851 = vmatprep.mubr.bf16.mxu0 %v2317_v14 }
 0x381   : > { %v1932_v8 = vadd.f32 %v1931_v53, %v5980_v45  ;;  %v1933_v13 = vpop.f32.mrb[243].mxu1  ;;  %3852 = vmatmul.mubr.bf16.gmra.mrb[44].mxu0 %v2316_v11  ;;  %v2164_v7 = vmax.f32 %v1928_v49, 0.0 }
 0x382   : > { %v1934_v9 = vadd.f32 %v1933_v13, %v5983_v24  ;;  %v2165_v4 = vmax.f32 %v1930_v52, 0.0  ;;  %v4963_v52 = vld [vmem:[%s5459_s8] sm:$0xff] }
 0x383   : > { %v2172_v38 = vmax.f32 %v1932_v8, 0.0 }
 0x384   : > { %v2173_v56 = vmax.f32 %v1934_v9, 0.0 }
 0x385   : > { %v2324_v28 = vpack.c.bf16 %v2172_v38, %v2164_v7  ;;  %v4966_v38 = vld [vmem:[%s5459_s8 + $0x18] sm:$0xff] }
 0x386   : > { %v2325_v39 = vpack.c.bf16 %v2173_v56, %v2165_v4  ;;  %v1937_v57 = vpop.f32.mrb[244].mxu1 }
 0x387   : > { %v1938_v36 = vadd.f32 %v1937_v57, %v5980_v45  ;;  %v1939_v23 = vpop.f32.mrb[245].mxu1 }
 0x388   : > { %v1940_v62 = vadd.f32 %v1939_v23, %v5983_v24  ;;  %v1941_v37 = vpop.f32.mrb[246].mxu1  ;;  %3861 = vmatprep.mubr.bf16.mxu0 %v2325_v39  ;;  %v4967_v23 = vld [vmem:[%s5459_s8 + $0x20] sm:$0xff] }
 0x389   : > { %v1942_v31 = vadd.f32 %v1941_v37, %v5980_v45  ;;  %v1943_v55 = vpop.f32.mrb[247].mxu1  ;;  %3862 = vmatmul.mubr.bf16.gmra.mrb[48].mxu0 %v2324_v28  ;;  %v2180_v19 = vmax.f32 %v1938_v36, 0.0 }
 0x38a   : > { %v1944_v54 = vadd.f32 %v1943_v55, %v5983_v24  ;;  %v2181_v27 = vmax.f32 %v1940_v62, 0.0  ;;  %v4968_v55 = vld [vmem:[%s5459_s8 + $0x28] sm:$0xff] }
 0x38b   : > { %v2188_v20 = vmax.f32 %v1942_v31, 0.0 }
 0x38c   : > { %v2189_v47 = vmax.f32 %v1944_v54, 0.0 }
 0x38d   : > { %v2332_v29 = vpack.c.bf16 %v2188_v20, %v2180_v19  ;;  %v4969_v20 = vld [vmem:[%s5459_s8 + $0x30] sm:$0xff] }
 0x38e   : > { %v2333_v26 = vpack.c.bf16 %v2189_v47, %v2181_v27  ;;  %v1947_v22 = vpop.f32.mrb[248].mxu1  ;;  %v4970_v47 = vld [vmem:[%s5459_s8 + $0x38] sm:$0xff] }
 0x38f   : > { %v1948_v50 = vadd.f32 %v1947_v22, %v5980_v45  ;;  %v1949_v58 = vpop.f32.mrb[249].mxu1 }
 0x390   : > { %v1950_v51 = vadd.f32 %v1949_v58, %v5983_v24  ;;  %v1951_v30 = vpop.f32.mrb[250].mxu1  ;;  %3871 = vmatprep.mubr.bf16.mxu0 %v2333_v26 }
 0x391   : > { %v1952_v33 = vadd.f32 %v1951_v30, %v5980_v45  ;;  %v1953_v59 = vpop.f32.mrb[251].mxu1  ;;  %3872 = vmatmul.mubr.bf16.gmra.mrb[52].mxu0 %v2332_v29  ;;  %v2196_v61 = vmax.f32 %v1948_v50, 0.0  ;;  %v4971_v30 = vld [vmem:[%s5459_s8 + $0x40] sm:$0xff] }
 0x392   : > { %v1954_v25 = vadd.f32 %v1953_v59, %v5983_v24  ;;  %v2197_v43 = vmax.f32 %v1950_v51, 0.0 }
 0x393   : > { %v2204_v32 = vmax.f32 %v1952_v33, 0.0 }
 0x394   : > { %v2205_v46 = vmax.f32 %v1954_v25, 0.0 }
 0x395   : > { %v2340_v35 = vpack.c.bf16 %v2204_v32, %v2196_v61  ;;  %v4972_v61 = vld [vmem:[%s5459_s8 + $0x48] sm:$0xff] }
 0x396   : > { %v2341_v0 = vpack.c.bf16 %v2205_v46, %v2197_v43  ;;  %v1957_v41 = vpop.f32.mrb[252].mxu1  ;;  %v4973_v46 = vld [vmem:[%s5459_s8 + $0x50] sm:$0xff] }
 0x397   : > { %v1958_v40 = vadd.f32 %v1957_v41, %v5980_v45  ;;  %v1959_v42 = vpop.f32.mrb[253].mxu1 }
 0x398   : > { %v1960_v63 = vadd.f32 %v1959_v42, %v5983_v24  ;;  %v1961_v60 = vpop.f32.mrb[254].mxu1  ;;  %3881 = vmatprep.mubr.bf16.mxu0 %v2341_v0  ;;  %v4974_v0 = vld [vmem:[%s5459_s8 + $0x58] sm:$0xff] }
 0x399   : > { %v1962_v34 = vadd.f32 %v1961_v60, %v5980_v45  ;;  %v1963_v6 = vpop.f32.mrb[255].mxu1  ;;  %3882 = vmatmul.mubr.bf16.gmra.mrb[56].mxu0 %v2340_v35  ;;  %v2212_v1 = vmax.f32 %v1958_v40, 0.0  ;;  %v6054_v45 = vrot.slane %v2478_v15, %v516_v3  ;;  %v4964_v3 = vld [vmem:[%s5459_s8 + $0x8] sm:$0xff] }
 0x39a   : > { %v1964_v18 = vadd.f32 %v1963_v6, %v5983_v24  ;;  %v2213_v16 = vmax.f32 %v1960_v63, 0.0  ;;  %v6058_v24 = vrot.slane %v2478_v15, %v520_v5  ;;  %v4965_v5 = vld [vmem:[%s5459_s8 + $0x10] sm:$0xff]  ;;  %v4975_v6 = vld [vmem:[%s5459_s8 + $0x60] sm:$0xff] }
 0x39b   : > { %v2220_v21 = vmax.f32 %v1962_v34, 0.0 }
 0x39c   : > { %v2221_v10 = vmax.f32 %v1964_v18, 0.0 }
 0x39d   : > { %v2348_v12 = vpack.c.bf16 %v2220_v21, %v2212_v1 }
 0x39e   : > { %v2349_v17 = vpack.c.bf16 %v2221_v10, %v2213_v16  ;;  %v4976_v16 = vld [vmem:[%s5459_s8 + $0x68] sm:$0xff] }
 0x3a0   : > { %3891 = vmatprep.mubr.bf16.mxu0 %v2349_v17  ;;  %v4977_v17 = vld [vmem:[%s5459_s8 + $0x70] sm:$0xff] }
 0x3a1   : > { %3892 = vmatmul.mubr.bf16.gmra.mrb[60].mxu0 %v2348_v12 }
 0x3fc   : > { %v3743_v11 = vpop.f32.mrb[0].mxu0 }
 0x3fd   : > { %v4429_v14 = vadd.f32 %v3743_v11, %v6054_v45  ;;  %v3745_v48 = vpop.f32.mrb[1].mxu0  ;;  %v4978_v11 = vld [vmem:[%s5459_s8 + $0x78] sm:$0xff] }
 0x3fe   : > { %v4430_v49 = vadd.f32 %v3745_v48, %v6058_v24  ;;  %v3747_v44 = vpop.f32.mrb[2].mxu0 }
 0x3ff   : > { %v3902_v53 = vadd.f32 %v4963_v52, %v4429_v14  ;;  %v4431_v8 = vadd.f32 %v3747_v44, %v6054_v45  ;;  %v3749_v13 = vpop.f32.mrb[3].mxu0 }
 0x400   : > { %v3903_v9 = vadd.f32 %v4964_v3, %v4430_v49  ;;  %v4432_v2 = vadd.f32 %v3749_v13, %v6058_v24 }
 0x401   : > { %3966 = vst [vmem:[%s6068_s11] sm:$0xff] %v3902_v53  ;;  %v3904_v7 = vadd.f32 %v4965_v5, %v4431_v8  ;;  %v4979_v8 = vld [vmem:[%s5459_s8 + $0x80] sm:$0xff] }
 0x402   : > { %3967 = vst [vmem:[%s6068_s11 + $0x8] sm:$0xff] %v3903_v9  ;;  %v3905_v4 = vadd.f32 %v4966_v38, %v4432_v2  ;;  %v4980_v2 = vld [vmem:[%s5459_s8 + $0x88] sm:$0xff]  ;;  %v4981_v38 = vld [vmem:[%s5459_s8 + $0x90] sm:$0xff] }
 0x403   : > { %3968 = vst [vmem:[%s6068_s11 + $0x10] sm:$0xff] %v3904_v7 }
 0x404   : > { %3969 = vst [vmem:[%s6068_s11 + $0x18] sm:$0xff] %v3905_v4  ;;  %v3753_v56 = vpop.f32.mrb[4].mxu0 }
 0x405   : > { %v4433_v28 = vadd.f32 %v3753_v56, %v6054_v45  ;;  %v3755_v39 = vpop.f32.mrb[5].mxu0  ;;  %v4982_v56 = vld [vmem:[%s5459_s8 + $0x98] sm:$0xff] }
 0x406   : > { %v4434_v57 = vadd.f32 %v3755_v39, %v6058_v24  ;;  %v3757_v36 = vpop.f32.mrb[6].mxu0 }
 0x407   : > { %v3906_v62 = vadd.f32 %v4967_v23, %v4433_v28  ;;  %v4435_v37 = vadd.f32 %v3757_v36, %v6054_v45  ;;  %v3759_v31 = vpop.f32.mrb[7].mxu0 }
 0x408   : > { %v3907_v54 = vadd.f32 %v4968_v55, %v4434_v57  ;;  %v4436_v19 = vadd.f32 %v3759_v31, %v6058_v24 }
 0x409   : > { %3970 = vst [vmem:[%s6068_s11 + $0x20] sm:$0xff] %v3906_v62  ;;  %v3908_v27 = vadd.f32 %v4969_v20, %v4435_v37  ;;  %v4983_v37 = vld [vmem:[%s5459_s8 + $0xa0] sm:$0xff] }
 0x40a   : > { %3971 = vst [vmem:[%s6068_s11 + $0x28] sm:$0xff] %v3907_v54  ;;  %v3909_v29 = vadd.f32 %v4970_v47, %v4436_v19  ;;  %v4984_v19 = vld [vmem:[%s5459_s8 + $0xa8] sm:$0xff]  ;;  %v4985_v47 = vld [vmem:[%s5459_s8 + $0xb0] sm:$0xff] }
 0x40b   : > { %3972 = vst [vmem:[%s6068_s11 + $0x30] sm:$0xff] %v3908_v27 }
 0x40c   : > { %3973 = vst [vmem:[%s6068_s11 + $0x38] sm:$0xff] %v3909_v29  ;;  %v3763_v26 = vpop.f32.mrb[8].mxu0 }
 0x40d   : > { %v4437_v22 = vadd.f32 %v3763_v26, %v6054_v45  ;;  %v3765_v50 = vpop.f32.mrb[9].mxu0  ;;  %v4986_v26 = vld [vmem:[%s5459_s8 + $0xb8] sm:$0xff] }
 0x40e   : > { %v4438_v58 = vadd.f32 %v3765_v50, %v6058_v24  ;;  %v3767_v51 = vpop.f32.mrb[10].mxu0 }
 0x40f   : > { %v3910_v33 = vadd.f32 %v4971_v30, %v4437_v22  ;;  %v4439_v59 = vadd.f32 %v3767_v51, %v6054_v45  ;;  %v3769_v25 = vpop.f32.mrb[11].mxu0 }
 0x410   : > { %v3911_v32 = vadd.f32 %v4972_v61, %v4438_v58  ;;  %v4440_v43 = vadd.f32 %v3769_v25, %v6058_v24 }
 0x411   : > { %3974 = vst [vmem:[%s6068_s11 + $0x40] sm:$0xff] %v3910_v33  ;;  %v3912_v35 = vadd.f32 %v4973_v46, %v4439_v59  ;;  %v4987_v59 = vld [vmem:[%s5459_s8 + $0xc0] sm:$0xff] }
 0x412   : > { %3975 = vst [vmem:[%s6068_s11 + $0x48] sm:$0xff] %v3911_v32  ;;  %v3913_v41 = vadd.f32 %v4974_v0, %v4440_v43  ;;  %v4988_v43 = vld [vmem:[%s5459_s8 + $0xc8] sm:$0xff]  ;;  %v4989_v0 = vld [vmem:[%s5459_s8 + $0xd0] sm:$0xff] }
 0x413   : > { %3976 = vst [vmem:[%s6068_s11 + $0x50] sm:$0xff] %v3912_v35 }
 0x414   : > { %3977 = vst [vmem:[%s6068_s11 + $0x58] sm:$0xff] %v3913_v41  ;;  %v3773_v40 = vpop.f32.mrb[12].mxu0 }
 0x415   : > { %v4441_v42 = vadd.f32 %v3773_v40, %v6054_v45  ;;  %v3775_v63 = vpop.f32.mrb[13].mxu0  ;;  %v4990_v40 = vld [vmem:[%s5459_s8 + $0xd8] sm:$0xff] }
 0x416   : > { %v4442_v60 = vadd.f32 %v3775_v63, %v6058_v24  ;;  %v3777_v34 = vpop.f32.mrb[14].mxu0 }
 0x417   : > { %v3914_v18 = vadd.f32 %v4975_v6, %v4441_v42  ;;  %v4443_v1 = vadd.f32 %v3777_v34, %v6054_v45  ;;  %v3779_v21 = vpop.f32.mrb[15].mxu0 }
 0x418   : > { %v3915_v10 = vadd.f32 %v4976_v16, %v4442_v60  ;;  %v4444_v12 = vadd.f32 %v3779_v21, %v6058_v24 }
 0x419   : > { %3978 = vst [vmem:[%s6068_s11 + $0x60] sm:$0xff] %v3914_v18  ;;  %v3916_v15 = vadd.f32 %v4977_v17, %v4443_v1  ;;  %v4991_v1 = vld [vmem:[%s5459_s8 + $0xe0] sm:$0xff] }
 0x41a   : > { %3979 = vst [vmem:[%s6068_s11 + $0x68] sm:$0xff] %v3915_v10  ;;  %v3917_v14 = vadd.f32 %v4978_v11, %v4444_v12  ;;  %v4992_v12 = vld [vmem:[%s5459_s8 + $0xe8] sm:$0xff]  ;;  %v4993_v11 = vld [vmem:[%s5459_s8 + $0xf0] sm:$0xff] }
 0x41b   : > { %3980 = vst [vmem:[%s6068_s11 + $0x70] sm:$0xff] %v3916_v15 }
 0x41c   : > { %3981 = vst [vmem:[%s6068_s11 + $0x78] sm:$0xff] %v3917_v14  ;;  %v3783_v48 = vpop.f32.mrb[16].mxu0 }
 0x41d   : > { %v4445_v49 = vadd.f32 %v3783_v48, %v6054_v45  ;;  %v3785_v44 = vpop.f32.mrb[17].mxu0  ;;  %v4994_v48 = vld [vmem:[%s5459_s8 + $0xf8] sm:$0xff] }
 0x41e   : > { %v4446_v52 = vadd.f32 %v3785_v44, %v6058_v24  ;;  %v3787_v53 = vpop.f32.mrb[18].mxu0 }
 0x41f   : > { %v3918_v13 = vadd.f32 %v4979_v8, %v4445_v49  ;;  %v4447_v3 = vadd.f32 %v3787_v53, %v6054_v45  ;;  %v3789_v9 = vpop.f32.mrb[19].mxu0 }
 0x420   : > { %v3919_v5 = vadd.f32 %v4980_v2, %v4446_v52  ;;  %v4448_v7 = vadd.f32 %v3789_v9, %v6058_v24 }
 0x421   : > { %3982 = vst [vmem:[%s6068_s11 + $0x80] sm:$0xff] %v3918_v13  ;;  %v3920_v4 = vadd.f32 %v4981_v38, %v4447_v3  ;;  %v4995_v3 = vld [vmem:[%s5459_s8 + $0x100] sm:$0xff] }
 0x422   : > { %3983 = vst [vmem:[%s6068_s11 + $0x88] sm:$0xff] %v3919_v5  ;;  %v3921_v28 = vadd.f32 %v4982_v56, %v4448_v7  ;;  %v4996_v7 = vld [vmem:[%s5459_s8 + $0x108] sm:$0xff]  ;;  %v4997_v56 = vld [vmem:[%s5459_s8 + $0x110] sm:$0xff] }
 0x423   : > { %3984 = vst [vmem:[%s6068_s11 + $0x90] sm:$0xff] %v3920_v4 }
 0x424   : > { %3985 = vst [vmem:[%s6068_s11 + $0x98] sm:$0xff] %v3921_v28  ;;  %v3793_v39 = vpop.f32.mrb[20].mxu0 }
 0x425   : > { %v4449_v57 = vadd.f32 %v3793_v39, %v6054_v45  ;;  %v3795_v36 = vpop.f32.mrb[21].mxu0  ;;  %v4998_v39 = vld [vmem:[%s5459_s8 + $0x118] sm:$0xff] }
 0x426   : > { %v4450_v23 = vadd.f32 %v3795_v36, %v6058_v24  ;;  %v3797_v62 = vpop.f32.mrb[22].mxu0 }
 0x427   : > { %v3922_v31 = vadd.f32 %v4983_v37, %v4449_v57  ;;  %v4451_v55 = vadd.f32 %v3797_v62, %v6054_v45  ;;  %v3799_v54 = vpop.f32.mrb[23].mxu0 }
 0x428   : > { %v3923_v20 = vadd.f32 %v4984_v19, %v4450_v23  ;;  %v4452_v27 = vadd.f32 %v3799_v54, %v6058_v24 }
 0x429   : > { %3986 = vst [vmem:[%s6068_s11 + $0xa0] sm:$0xff] %v3922_v31  ;;  %v3924_v29 = vadd.f32 %v4985_v47, %v4451_v55  ;;  %v4999_v55 = vld [vmem:[%s5459_s8 + $0x120] sm:$0xff] }
 0x42a   : > { %3987 = vst [vmem:[%s6068_s11 + $0xa8] sm:$0xff] %v3923_v20  ;;  %v3925_v22 = vadd.f32 %v4986_v26, %v4452_v27  ;;  %v5000_v27 = vld [vmem:[%s5459_s8 + $0x128] sm:$0xff]  ;;  %v5001_v26 = vld [vmem:[%s5459_s8 + $0x130] sm:$0xff] }
 0x42b   : > { %3988 = vst [vmem:[%s6068_s11 + $0xb0] sm:$0xff] %v3924_v29 }
 0x42c   : > { %3989 = vst [vmem:[%s6068_s11 + $0xb8] sm:$0xff] %v3925_v22  ;;  %v3803_v50 = vpop.f32.mrb[24].mxu0 }
 0x42d   : > { %v4453_v58 = vadd.f32 %v3803_v50, %v6054_v45  ;;  %v3805_v51 = vpop.f32.mrb[25].mxu0  ;;  %v5002_v50 = vld [vmem:[%s5459_s8 + $0x138] sm:$0xff] }
 0x42e   : > { %v4454_v30 = vadd.f32 %v3805_v51, %v6058_v24  ;;  %v3807_v33 = vpop.f32.mrb[26].mxu0 }
 0x42f   : > { %v3926_v25 = vadd.f32 %v4987_v59, %v4453_v58  ;;  %v4455_v61 = vadd.f32 %v3807_v33, %v6054_v45  ;;  %v3809_v32 = vpop.f32.mrb[27].mxu0 }
 0x430   : > { %v3927_v46 = vadd.f32 %v4988_v43, %v4454_v30  ;;  %v4456_v35 = vadd.f32 %v3809_v32, %v6058_v24 }
 0x431   : > { %3990 = vst [vmem:[%s6068_s11 + $0xc0] sm:$0xff] %v3926_v25  ;;  %v3928_v41 = vadd.f32 %v4989_v0, %v4455_v61  ;;  %v5003_v61 = vld [vmem:[%s5459_s8 + $0x140] sm:$0xff] }
 0x432   : > { %3991 = vst [vmem:[%s6068_s11 + $0xc8] sm:$0xff] %v3927_v46  ;;  %v3929_v42 = vadd.f32 %v4990_v40, %v4456_v35  ;;  %v5004_v35 = vld [vmem:[%s5459_s8 + $0x148] sm:$0xff]  ;;  %v5005_v40 = vld [vmem:[%s5459_s8 + $0x150] sm:$0xff] }
 0x433   : > { %3992 = vst [vmem:[%s6068_s11 + $0xd0] sm:$0xff] %v3928_v41 }
 0x434   : > { %3993 = vst [vmem:[%s6068_s11 + $0xd8] sm:$0xff] %v3929_v42  ;;  %v3813_v63 = vpop.f32.mrb[28].mxu0 }
 0x435   : > { %v4457_v60 = vadd.f32 %v3813_v63, %v6054_v45  ;;  %v3815_v34 = vpop.f32.mrb[29].mxu0  ;;  %v5006_v63 = vld [vmem:[%s5459_s8 + $0x158] sm:$0xff] }
 0x436   : > { %v4458_v6 = vadd.f32 %v3815_v34, %v6058_v24  ;;  %v3817_v18 = vpop.f32.mrb[30].mxu0 }
 0x437   : > { %v3930_v21 = vadd.f32 %v4991_v1, %v4457_v60  ;;  %v4459_v16 = vadd.f32 %v3817_v18, %v6054_v45  ;;  %v3819_v10 = vpop.f32.mrb[31].mxu0 }
 0x438   : > { %v3931_v17 = vadd.f32 %v4992_v12, %v4458_v6  ;;  %v4460_v15 = vadd.f32 %v3819_v10, %v6058_v24 }
 0x439   : > { %3994 = vst [vmem:[%s6068_s11 + $0xe0] sm:$0xff] %v3930_v21  ;;  %v3932_v14 = vadd.f32 %v4993_v11, %v4459_v16  ;;  %v5007_v16 = vld [vmem:[%s5459_s8 + $0x160] sm:$0xff] }
 0x43a   : > { %3995 = vst [vmem:[%s6068_s11 + $0xe8] sm:$0xff] %v3931_v17  ;;  %v3933_v49 = vadd.f32 %v4994_v48, %v4460_v15  ;;  %v5008_v15 = vld [vmem:[%s5459_s8 + $0x168] sm:$0xff]  ;;  %v5009_v48 = vld [vmem:[%s5459_s8 + $0x170] sm:$0xff] }
 0x43b   : > { %3996 = vst [vmem:[%s6068_s11 + $0xf0] sm:$0xff] %v3932_v14 }
 0x43c   : > { %3997 = vst [vmem:[%s6068_s11 + $0xf8] sm:$0xff] %v3933_v49  ;;  %v3823_v44 = vpop.f32.mrb[32].mxu0 }
 0x43d   : > { %v4461_v52 = vadd.f32 %v3823_v44, %v6054_v45  ;;  %v3825_v53 = vpop.f32.mrb[33].mxu0  ;;  %v5010_v44 = vld [vmem:[%s5459_s8 + $0x178] sm:$0xff] }
 0x43e   : > { %v4462_v8 = vadd.f32 %v3825_v53, %v6058_v24  ;;  %v3827_v13 = vpop.f32.mrb[34].mxu0 }
 0x43f   : > { %v3934_v9 = vadd.f32 %v4995_v3, %v4461_v52  ;;  %v4463_v2 = vadd.f32 %v3827_v13, %v6054_v45  ;;  %v3829_v5 = vpop.f32.mrb[35].mxu0 }
 0x440   : > { %v3935_v38 = vadd.f32 %v4996_v7, %v4462_v8  ;;  %v4464_v4 = vadd.f32 %v3829_v5, %v6058_v24 }
 0x441   : > { %3998 = vst [vmem:[%s6068_s11 + $0x100] sm:$0xff] %v3934_v9  ;;  %v3936_v28 = vadd.f32 %v4997_v56, %v4463_v2  ;;  %v5011_v2 = vld [vmem:[%s5459_s8 + $0x180] sm:$0xff] }
 0x442   : > { %3999 = vst [vmem:[%s6068_s11 + $0x108] sm:$0xff] %v3935_v38  ;;  %v3937_v57 = vadd.f32 %v4998_v39, %v4464_v4  ;;  %v5012_v4 = vld [vmem:[%s5459_s8 + $0x188] sm:$0xff]  ;;  %v5013_v39 = vld [vmem:[%s5459_s8 + $0x190] sm:$0xff] }
 0x443   : > { %4000 = vst [vmem:[%s6068_s11 + $0x110] sm:$0xff] %v3936_v28 }
 0x444   : > { %4001 = vst [vmem:[%s6068_s11 + $0x118] sm:$0xff] %v3937_v57  ;;  %v3833_v36 = vpop.f32.mrb[36].mxu0 }
 0x445   : > { %v4465_v23 = vadd.f32 %v3833_v36, %v6054_v45  ;;  %v3835_v62 = vpop.f32.mrb[37].mxu0  ;;  %v5014_v36 = vld [vmem:[%s5459_s8 + $0x198] sm:$0xff] }
 0x446   : > { %v4466_v37 = vadd.f32 %v3835_v62, %v6058_v24  ;;  %v3837_v31 = vpop.f32.mrb[38].mxu0 }
 0x447   : > { %v3938_v54 = vadd.f32 %v4999_v55, %v4465_v23  ;;  %v4467_v19 = vadd.f32 %v3837_v31, %v6054_v45  ;;  %v3839_v20 = vpop.f32.mrb[39].mxu0 }
 0x448   : > { %v3939_v47 = vadd.f32 %v5000_v27, %v4466_v37  ;;  %v4468_v29 = vadd.f32 %v3839_v20, %v6058_v24 }
 0x449   : > { %4002 = vst [vmem:[%s6068_s11 + $0x120] sm:$0xff] %v3938_v54  ;;  %v3940_v22 = vadd.f32 %v5001_v26, %v4467_v19  ;;  %v5015_v19 = vld [vmem:[%s5459_s8 + $0x1a0] sm:$0xff] }
 0x44a   : > { %4003 = vst [vmem:[%s6068_s11 + $0x128] sm:$0xff] %v3939_v47  ;;  %v3941_v58 = vadd.f32 %v5002_v50, %v4468_v29  ;;  %v5016_v29 = vld [vmem:[%s5459_s8 + $0x1a8] sm:$0xff]  ;;  %v5017_v50 = vld [vmem:[%s5459_s8 + $0x1b0] sm:$0xff] }
 0x44b   : > { %4004 = vst [vmem:[%s6068_s11 + $0x130] sm:$0xff] %v3940_v22 }
 0x44c   : > { %4005 = vst [vmem:[%s6068_s11 + $0x138] sm:$0xff] %v3941_v58  ;;  %v3843_v51 = vpop.f32.mrb[40].mxu0 }
 0x44d   : > { %v4469_v30 = vadd.f32 %v3843_v51, %v6054_v45  ;;  %v3845_v33 = vpop.f32.mrb[41].mxu0  ;;  %v5018_v51 = vld [vmem:[%s5459_s8 + $0x1b8] sm:$0xff] }
 0x44e   : > { %v4470_v59 = vadd.f32 %v3845_v33, %v6058_v24  ;;  %v3847_v25 = vpop.f32.mrb[42].mxu0 }
 0x44f   : > { %v3942_v32 = vadd.f32 %v5003_v61, %v4469_v30  ;;  %v4471_v43 = vadd.f32 %v3847_v25, %v6054_v45  ;;  %v3849_v46 = vpop.f32.mrb[43].mxu0 }
 0x450   : > { %v3943_v0 = vadd.f32 %v5004_v35, %v4470_v59  ;;  %v4472_v41 = vadd.f32 %v3849_v46, %v6058_v24 }
 0x451   : > { %4006 = vst [vmem:[%s6068_s11 + $0x140] sm:$0xff] %v3942_v32  ;;  %v3944_v42 = vadd.f32 %v5005_v40, %v4471_v43  ;;  %v5019_v43 = vld [vmem:[%s5459_s8 + $0x1c0] sm:$0xff] }
 0x452   : > { %4007 = vst [vmem:[%s6068_s11 + $0x148] sm:$0xff] %v3943_v0  ;;  %v3945_v60 = vadd.f32 %v5006_v63, %v4472_v41  ;;  %v5020_v41 = vld [vmem:[%s5459_s8 + $0x1c8] sm:$0xff]  ;;  %v5021_v63 = vld [vmem:[%s5459_s8 + $0x1d0] sm:$0xff] }
 0x453   : > { %4008 = vst [vmem:[%s6068_s11 + $0x150] sm:$0xff] %v3944_v42 }
 0x454   : > { %4009 = vst [vmem:[%s6068_s11 + $0x158] sm:$0xff] %v3945_v60  ;;  %v3853_v34 = vpop.f32.mrb[44].mxu0 }
 0x455   : > { %v4473_v6 = vadd.f32 %v3853_v34, %v6054_v45  ;;  %v3855_v18 = vpop.f32.mrb[45].mxu0  ;;  %v5022_v34 = vld [vmem:[%s5459_s8 + $0x1d8] sm:$0xff] }
 0x456   : > { %v4474_v1 = vadd.f32 %v3855_v18, %v6058_v24  ;;  %v3857_v21 = vpop.f32.mrb[46].mxu0 }
 0x457   : > { %v3946_v10 = vadd.f32 %v5007_v16, %v4473_v6  ;;  %v4475_v12 = vadd.f32 %v3857_v21, %v6054_v45  ;;  %v3859_v17 = vpop.f32.mrb[47].mxu0 }
 0x458   : > { %v3947_v11 = vadd.f32 %v5008_v15, %v4474_v1  ;;  %v4476_v14 = vadd.f32 %v3859_v17, %v6058_v24 }
 0x459   : > { %4010 = vst [vmem:[%s6068_s11 + $0x160] sm:$0xff] %v3946_v10  ;;  %v3948_v49 = vadd.f32 %v5009_v48, %v4475_v12  ;;  %v5023_v12 = vld [vmem:[%s5459_s8 + $0x1e0] sm:$0xff] }
 0x45a   : > { %4011 = vst [vmem:[%s6068_s11 + $0x168] sm:$0xff] %v3947_v11  ;;  %v3949_v52 = vadd.f32 %v5010_v44, %v4476_v14  ;;  %v5024_v14 = vld [vmem:[%s5459_s8 + $0x1e8] sm:$0xff]  ;;  %v5025_v44 = vld [vmem:[%s5459_s8 + $0x1f0] sm:$0xff] }
 0x45b   : > { %4012 = vst [vmem:[%s6068_s11 + $0x170] sm:$0xff] %v3948_v49 }
 0x45c   : > { %4013 = vst [vmem:[%s6068_s11 + $0x178] sm:$0xff] %v3949_v52  ;;  %v3863_v53 = vpop.f32.mrb[48].mxu0 }
 0x45d   : > { %v4477_v8 = vadd.f32 %v3863_v53, %v6054_v45  ;;  %v3865_v13 = vpop.f32.mrb[49].mxu0 }
 0x45e   : > { %v4478_v3 = vadd.f32 %v3865_v13, %v6058_v24  ;;  %v3867_v9 = vpop.f32.mrb[50].mxu0 }
 0x45f   : > { %v3950_v5 = vadd.f32 %v5011_v2, %v4477_v8  ;;  %v4479_v7 = vadd.f32 %v3867_v9, %v6054_v45  ;;  %v3869_v38 = vpop.f32.mrb[51].mxu0 }
 0x460   : > { %v3951_v56 = vadd.f32 %v5012_v4, %v4478_v3  ;;  %v4480_v28 = vadd.f32 %v3869_v38, %v6058_v24 }
 0x461   : > { %4014 = vst [vmem:[%s6068_s11 + $0x180] sm:$0xff] %v3950_v5  ;;  %v3952_v57 = vadd.f32 %v5013_v39, %v4479_v7 }
 0x462   : > { %4015 = vst [vmem:[%s6068_s11 + $0x188] sm:$0xff] %v3951_v56  ;;  %v3953_v23 = vadd.f32 %v5014_v36, %v4480_v28 }
 0x463   : > { %4016 = vst [vmem:[%s6068_s11 + $0x190] sm:$0xff] %v3952_v57 }
 0x464   : > { %4017 = vst [vmem:[%s6068_s11 + $0x198] sm:$0xff] %v3953_v23  ;;  %v3873_v62 = vpop.f32.mrb[52].mxu0 }
 0x465   : > { %v4481_v37 = vadd.f32 %v3873_v62, %v6054_v45  ;;  %v3875_v31 = vpop.f32.mrb[53].mxu0 }
 0x466   : > { %v4482_v55 = vadd.f32 %v3875_v31, %v6058_v24  ;;  %v3877_v54 = vpop.f32.mrb[54].mxu0 }
 0x467   : > { %v3954_v20 = vadd.f32 %v5015_v19, %v4481_v37  ;;  %v4483_v27 = vadd.f32 %v3877_v54, %v6054_v45  ;;  %v3879_v47 = vpop.f32.mrb[55].mxu0 }
 0x468   : > { %v3955_v26 = vadd.f32 %v5016_v29, %v4482_v55  ;;  %v4484_v22 = vadd.f32 %v3879_v47, %v6058_v24 }
 0x469   : > { %4018 = vst [vmem:[%s6068_s11 + $0x1a0] sm:$0xff] %v3954_v20  ;;  %v3956_v58 = vadd.f32 %v5017_v50, %v4483_v27 }
 0x46a   : > { %4019 = vst [vmem:[%s6068_s11 + $0x1a8] sm:$0xff] %v3955_v26  ;;  %v3957_v30 = vadd.f32 %v5018_v51, %v4484_v22 }
 0x46b   : > { %4020 = vst [vmem:[%s6068_s11 + $0x1b0] sm:$0xff] %v3956_v58 }
 0x46c   : > { %4021 = vst [vmem:[%s6068_s11 + $0x1b8] sm:$0xff] %v3957_v30  ;;  %v3883_v33 = vpop.f32.mrb[56].mxu0 }
 0x46d   : > { %v4485_v59 = vadd.f32 %v3883_v33, %v6054_v45  ;;  %v3885_v25 = vpop.f32.mrb[57].mxu0 }
 0x46e   : > { %v4486_v61 = vadd.f32 %v3885_v25, %v6058_v24  ;;  %v3887_v32 = vpop.f32.mrb[58].mxu0 }
 0x46f   : > { %v3958_v46 = vadd.f32 %v5019_v43, %v4485_v59  ;;  %v4487_v35 = vadd.f32 %v3887_v32, %v6054_v45  ;;  %v3889_v0 = vpop.f32.mrb[59].mxu0 }
 0x470   : > { %v3959_v40 = vadd.f32 %v5020_v41, %v4486_v61  ;;  %v4488_v42 = vadd.f32 %v3889_v0, %v6058_v24 }
 0x471   : > { %4022 = vst [vmem:[%s6068_s11 + $0x1c0] sm:$0xff] %v3958_v46  ;;  %v3960_v60 = vadd.f32 %v5021_v63, %v4487_v35 }
 0x472   : > { %4023 = vst [vmem:[%s6068_s11 + $0x1c8] sm:$0xff] %v3959_v40  ;;  %v3961_v6 = vadd.f32 %v5022_v34, %v4488_v42 }
 0x473   : > { %4024 = vst [vmem:[%s6068_s11 + $0x1d0] sm:$0xff] %v3960_v60 }
 0x474   : > { %4025 = vst [vmem:[%s6068_s11 + $0x1d8] sm:$0xff] %v3961_v6  ;;  %v3893_v18 = vpop.f32.mrb[60].mxu0 }
 0x475   : > { %v4489_v1 = vadd.f32 %v3893_v18, %v6054_v45  ;;  %v3895_v21 = vpop.f32.mrb[61].mxu0 }
 0x476   : > { %v4490_v16 = vadd.f32 %v3895_v21, %v6058_v24  ;;  %v3897_v10 = vpop.f32.mrb[62].mxu0 }
 0x477   : > { %v3962_v17 = vadd.f32 %v5023_v12, %v4489_v1  ;;  %v4491_v15 = vadd.f32 %v3897_v10, %v6054_v45  ;;  %v3899_v11 = vpop.f32.mrb[63].mxu0  ;;  %v5026_v45 = vld [vmem:[%s5459_s8 + $0x1f8] sm:$0xff] }
 0x478   : > { %v3963_v48 = vadd.f32 %v5024_v14, %v4490_v16  ;;  %v4492_v49 = vadd.f32 %v3899_v11, %v6058_v24 }
 0x479   : > { %4026 = vst [vmem:[%s6068_s11 + $0x1e0] sm:$0xff] %v3962_v17  ;;  %v3964_v52 = vadd.f32 %v5025_v44, %v4491_v15 }
 0x47a   : > { %4027 = vst [vmem:[%s6068_s11 + $0x1e8] sm:$0xff] %v3963_v48  ;;  %v3965_v53 = vadd.f32 %v5026_v45, %v4492_v49 }
 0x47b   : > { %4028 = vst [vmem:[%s6068_s11 + $0x1f0] sm:$0xff] %v3964_v52 }
 0x47c   : > { %4029 = vst [vmem:[%s6068_s11 + $0x1f8] sm:$0xff] %v3965_v53 }
 0x47d   : > { %5154 = shalt.err (!%p5151_p4)
}
 0x47e   : > { %s5155_s23 = scalar_lea.hbm %s6257_s22, 8192  ;;  %s5159_s24 = scalar_lea.hbm %s6312_s5, 16384 }
 0x47f   : > { %p5156_p9 = scmp.ne.s32.totalorder %s6257_s22, %s5155_s23  ;;  %p5160_p8 = scmp.lt.u32.totalorder %s6257_s22, %s6312_s5 }
 0x480   : > { %p5161_p13 = scmp.lt.u32.totalorder %s5159_s24, %s5155_s23  ;;  %p5163_p10 = scmp.lt.u32.totalorder %s5155_s23, %s6257_s22 }
 0x481   : > { %p5157_p0 = pnand %p5156_p9, %p5405_p5 }
 0x482   : > { %p5162_p6 = por %p5161_p13, %p5160_p8 }
 0x483   : > { %p5158_p11 = pneg %p5157_p0 }
 0x484   : > { %p5164_p3 = por %p5163_p10, %p5162_p6 }
 0x486   : > { %p5165_p7 = pnand %p5164_p3, %p5158_p11 }
 0x488   : > { %5168 = shalt.err (!%p5165_p7)
}
 0x489   : > { %s5228_s13 = smov 256   ;;  %s5229_s14 = smov 16  }
 0x48a   : > { %4699 = dma.vmem_to_hbm [thread:$0]  (%p5405_p5), %s6259_s6, 8192, %s6257_s22, %s4031_s9, %s5228_s13, %s5228_s13, %s5229_s14  }
 0x48b PF: > { %s4060_s29 = sand.u32 1, %s5203_s18   ;;  %p6330_p12 = scmp.ne.s32.totalorder %s6317_s25, 0 }
 0x48c   : > { %p6331_p2 = scmp.ge.s32.totalorder %s5215_s21, 2  ;;  %s4061_s10 = scalar_lea.sflag [#allocation4], %s4060_s29 }
 0x48e   : > { %p4716_p1 = pnand %p6331_p2, %p6330_p12 }
 0x490   : > { %5198 = dma.done.wait (!%p4716_p1), %s4061_s10, 8192  }
 0x491   : > { %5200 = vsyncadd (!%p4716_p1), %s4061_s10, 4294959104  ;;  %p20_p4 = scmp.ge.s32.totalorder %s5391_s28, 4   ;;  %s6332_s18 = smov %s5207_s19 }
 0x492   : > { %s6333_s19 = smov %s5211_s20  ;;  %s6334_s20 = smov %s5401_s27 }
 0x493   : > { %s6335_s21 = smov %s5391_s28  ;;  %22 = sbr.rel (!%p20_p4) target bundleno = 7 (0x7), region = 97 }
 0x49a   :  { %4066 = vsyncpa [#allocation3], 1 }
 0x49b   :  { %4068 = vsyncpa [#allocation3 + $0x1], 1 }
 0x49c   :  { %4069 = vsyncpa [#allocation6], 1 }
 0x49d   :  { %4070 = vsyncpa [#allocation9], 1 }
 0x49e   :  { %4071 = vsyncpa [#allocation4], 1 }
 0x49f   :  { %4073 = vsyncpa [#allocation4 + $0x1], 1 }

</bundles_post_ra>
